<compile_context>
chip_gen: v7x
topology: tpu7x:2x2x1
jax: 0.10.0
libtpu: 0.0.40
codegen_flags: <defaults>
</compile_context>

<pallas_src>
import functools

import jax
import jax.numpy as jnp
from jax import lax
from jax.experimental import pallas as pl
from jax.experimental.pallas import tpu as pltpu

_VMEM_LIMIT = 32 * 1024 * 1024  # explicit scoped-VMEM budget (safe on v5e/v6e/v7x)


def _round_up(v, m):
    return (v + m - 1) // m * m


def _pick_row_tile(m, target=512):
    """Largest row tile <= target that divides m and gives >= 2 grid steps."""
    for t in (512, 256, 128, 64, 32, 16, 8):
        if t <= target and m % t == 0 and m // t >= 2:
            return t
    return m


# --------------------------------------------------------------------------
# Pallas kernels
# --------------------------------------------------------------------------

def _matmul_bias_kernel(x_ref, w_ref, b_ref, o_ref):
    # x: [tm, K] (any float), w: [K, N] bf16, b: [1, N] f32
    x = x_ref[...].astype(jnp.bfloat16)
    y = jnp.dot(x, w_ref[...], preferred_element_type=jnp.float32)
    o_ref[...] = (y + b_ref[...]).astype(o_ref.dtype)


def matmul_bias(x, w, b, out_dtype):
    """1x1 conv as a row-tiled matmul: (M, K) @ (K, N) + b, N lane-padded."""
    m, k = x.shape
    n = w.shape[1]
    tm = _pick_row_tile(m)
    return pl.pallas_call(
        _matmul_bias_kernel,
        out_shape=jax.ShapeDtypeStruct((m, n), out_dtype),
        grid=(m // tm,),
        in_specs=[
            pl.BlockSpec((tm, k), lambda i: (i, 0)),
            pl.BlockSpec((k, n), lambda i: (0, 0)),   # resident weight
            pl.BlockSpec((1, n), lambda i: (0, 0)),   # resident bias
        ],
        out_specs=pl.BlockSpec((tm, n), lambda i: (i, 0)),
        compiler_params=pltpu.CompilerParams(
            dimension_semantics=("parallel",),
            vmem_limit_bytes=_VMEM_LIMIT),
    )(x, w, b)


def _dynconv_kernel(xpad_ref, w_ref, scale_ref, fatt_ref, o_ref, *, hs, ws):
    # xpad:  [hs+2, ws+2, Cp] bf16 (spatially zero-padded, channels-last)
    # w:     [9, Cp, Cp] bf16     (static base weight, resident across batches)
    # scale: [9, Cp] f32          (spatial_att[k] * channel_att[c], per batch)
    # fatt:  [1, Cp] f32          (filter attention, per batch)
    # o:     [hs*ws, Cp] bf16
    cp = w_ref.shape[-1]
    hw = hs * ws
    xp = xpad_ref[...].astype(jnp.float32)          # keep VPU math in f32 (v5e)
    scl = scale_ref[...]                            # [9, Cp]
    acc = jnp.zeros((hw, cp), jnp.float32)
    for dj in range(3):                             # column shift
        cols = xp[:, dj:dj + ws, :]                 # [hs+2, ws, Cp]
        for di in range(3):                         # row shift
            k = di * 3 + dj
            xs = cols[di:di + hs, :, :] * scl[k:k + 1, :]   # ODConv ch*spatial att
            xs = xs.reshape(hw, cp)
            acc = acc + jnp.dot(xs.astype(jnp.bfloat16), w_ref[k],
                                preferred_element_type=jnp.float32)
    o_ref[...] = (acc * fatt_ref[...]).astype(o_ref.dtype)


def dynamic_conv3x3(xpad, w9, scale, fatt, hs, ws):
    """ODConv-3x3 (kernel_num=1): 9 shifted matmuls, no im2col materialization."""
    b, hp, wp, cp = xpad.shape
    hw = hs * ws
    kernel = functools.partial(_dynconv_kernel, hs=hs, ws=ws)
    return pl.pallas_call(
        kernel,
        out_shape=jax.ShapeDtypeStruct((b, hw, cp), jnp.bfloat16),
        grid=(b,),
        in_specs=[
            pl.BlockSpec((None, hp, wp, cp), lambda i: (i, 0, 0, 0)),
            pl.BlockSpec((9, cp, cp), lambda i: (0, 0, 0)),    # resident weight
            pl.BlockSpec((None, 9, cp), lambda i: (i, 0, 0)),
            pl.BlockSpec((None, 1, cp), lambda i: (i, 0, 0)),
        ],
        out_specs=pl.BlockSpec((None, hw, cp), lambda i: (i, 0, 0)),
        compiler_params=pltpu.CompilerParams(
            dimension_semantics=("parallel",),
            vmem_limit_bytes=_VMEM_LIMIT),
    )(xpad, w9, scale, fatt)


def _chan_attn_proj_kernel(x_ref, tsc_ref, mask_ref, sel_ref, pw_ref, pb_ref, o_ref):
    # x: [HW, Cp] bf16 channels-last (q|k|v|pad columns).  All heads processed
    # at once via a block-diagonal masked gram matrix; 1x1 projection fused.
    x = x_ref[...]
    xf = x.astype(jnp.float32)
    # F.normalize(dim=-1) == per-channel L2 over pixels (columns here):
    # x / max(||x||, 1e-12)  ==  x * rsqrt(max(||x||^2, 1e-24))
    ss = jnp.sum(xf * xf, axis=0, keepdims=True)                    # [1, Cp]
    xn = (xf * lax.rsqrt(jnp.maximum(ss, 1e-24))).astype(jnp.bfloat16)
    # gram over channels: g[c, d] = <xn[:, c], xn[:, d]>
    g = lax.dot_general(xn, xn, (((0,), (0,)), ((), ())),
                        preferred_element_type=jnp.float32)          # [Cp, Cp]
    logits = g * tsc_ref[...] + mask_ref[...]                        # temp + mask
    m = jnp.max(logits, axis=-1, keepdims=True)
    e = jnp.exp(logits - m)
    attn = (e * pl.reciprocal(jnp.sum(e, axis=-1, keepdims=True), approx=True)
            ).astype(jnp.bfloat16)
    # xv[:, d] = x[:, d + C]  (v channels aligned with the k-indexed attn cols)
    xv = jnp.dot(x, sel_ref[...],
                 preferred_element_type=jnp.float32).astype(jnp.bfloat16)
    outv = lax.dot_general(xv, attn, (((1,), (1,)), ((), ())),
                           preferred_element_type=jnp.float32)       # [HW, Cp]
    # fused 1x1 projection; zero weight rows kill padded/garbage columns
    y = jnp.dot(outv.astype(jnp.bfloat16), pw_ref[...],
                preferred_element_type=jnp.float32) + pb_ref[...]    # [HW, C]
    o_ref[...] = y.astype(o_ref.dtype)


def chan_attn_proj(xqkv, tscale, mask, sel, proj_w, proj_b):
    b, hw, cp = xqkv.shape
    c_out = proj_w.shape[1]
    return pl.pallas_call(
        _chan_attn_proj_kernel,
        out_shape=jax.ShapeDtypeStruct((b, hw, c_out), jnp.float32),
        grid=(b,),
        in_specs=[
            pl.BlockSpec((None, hw, cp), lambda i: (i, 0, 0)),
            pl.BlockSpec((cp, 1), lambda i: (0, 0)),
            pl.BlockSpec((cp, cp), lambda i: (0, 0)),
            pl.BlockSpec((cp, cp), lambda i: (0, 0)),
            pl.BlockSpec((cp, c_out), lambda i: (0, 0)),
            pl.BlockSpec((1, c_out), lambda i: (0, 0)),
        ],
        out_specs=pl.BlockSpec((None, hw, c_out), lambda i: (i, 0, 0)),
        compiler_params=pltpu.CompilerParams(
            dimension_semantics=("parallel",),
            vmem_limit_bytes=_VMEM_LIMIT),
    )(xqkv, tscale, mask, sel, proj_w, proj_b)


# --------------------------------------------------------------------------
# Parameters (deterministic synthetic init; mirrors the PyTorch shapes)
# --------------------------------------------------------------------------

def make_params(key, dim, num_heads, reduction=0.0625):
    d3 = dim * 3
    att_ch = max(int(d3 * reduction), 16)     # ODConv attention channels (min 16)
    keys = jax.random.split(key, 13)
    s = 0.1
    p = {}
    p["qkv_w"] = jax.random.normal(keys[0], (dim, d3), jnp.float32) * s
    p["qkv_b"] = jax.random.normal(keys[1], (d3,), jnp.float32) * s
    p["od_fc_w"] = jax.random.normal(keys[2], (d3, att_ch), jnp.float32) * s
    p["od_bn_gamma"] = jnp.ones((att_ch,), jnp.float32)
    p["od_bn_beta"] = jnp.zeros((att_ch,), jnp.float32)
    p["od_bn_mean"] = jnp.zeros((att_ch,), jnp.float32)
    p["od_bn_var"] = jnp.ones((att_ch,), jnp.float32)
    p["od_channel_fc_w"] = jax.random.normal(keys[3], (att_ch, d3), jnp.float32) * s
    p["od_channel_fc_b"] = jax.random.normal(keys[4], (d3,), jnp.float32) * s
    p["od_filter_fc_w"] = jax.random.normal(keys[5], (att_ch, d3), jnp.float32) * s
    p["od_filter_fc_b"] = jax.random.normal(keys[6], (d3,), jnp.float32) * s
    p["od_spatial_fc_w"] = jax.random.normal(keys[7], (att_ch, 9), jnp.float32) * s
    p["od_spatial_fc_b"] = jax.random.normal(keys[8], (9,), jnp.float32) * s
    # ODConv base weight [kernel_num=1 squeezed]: [Cout, Cin, 3, 3]
    p["od_weight"] = jax.random.normal(keys[9], (d3, d3, 3, 3), jnp.float32) * 0.05
    # temperature: nn.Parameter(num_heads, 1, 1) (non-trivial values for testing)
    p["temperature"] = jax.random.uniform(keys[12], (num_heads, 1, 1),
                                          jnp.float32, 0.5, 1.5)
    p["proj_w"] = jax.random.normal(keys[10], (dim, dim), jnp.float32) * s
    p["proj_b"] = jax.random.normal(keys[11], (dim,), jnp.float32) * s
    return p


# --------------------------------------------------------------------------
# Plain-JAX glue: ODConv attention branch (tiny FCs)
# --------------------------------------------------------------------------

def _odconv_attention(pooled, p, eps=1e-5):
    # pooled: [B, 3C] global average pool of the qkv activation
    y = pooled @ p["od_fc_w"]                                    # 1x1 conv, no bias
    y = (y - p["od_bn_mean"]) * lax.rsqrt(p["od_bn_var"] + eps)  # BatchNorm (eval)
    y = y * p["od_bn_gamma"] + p["od_bn_beta"]
    y = jnp.maximum(y, 0.0)                                      # ReLU
    channel_att = jax.nn.sigmoid(y @ p["od_channel_fc_w"] + p["od_channel_fc_b"])
    filter_att = jax.nn.sigmoid(y @ p["od_filter_fc_w"] + p["od_filter_fc_b"])
    spatial_att = jax.nn.sigmoid(y @ p["od_spatial_fc_w"] + p["od_spatial_fc_b"])
    # kernel attention skipped (kernel_num == 1 -> constant 1.0)
    return channel_att, filter_att, spatial_att.reshape(-1, 3, 3)


# --------------------------------------------------------------------------
# Pallas forward
# --------------------------------------------------------------------------

def attention_forward(x, params, num_heads):
    b, c, h, w = x.shape
    d3 = 3 * c
    hw = h * w
    c_head = c // num_heads
    cp = _round_up(d3, 128)          # lane-dense channel padding
    # TODO(synk): W must be a multiple of 8 for the in-kernel (H,W,C)->(HW,C)
    # flatten; other widths would need spatial tiling or an im2col fallback.
    assert w % 8 == 0

    bf16, f32 = jnp.bfloat16, jnp.float32

    # ---- qkv 1x1 conv (row-tiled, lane-padded, bf16 MXU / f32 acc) ----------
    x_flat = x.transpose(0, 2, 3, 1).reshape(b * hw, c)
    qkv_w = jnp.pad(params["qkv_w"], ((0, 0), (0, cp - d3))).astype(bf16)
    qkv_b = jnp.pad(params["qkv_b"], (0, cp - d3)).reshape(1, cp).astype(f32)
    qkv_flat = matmul_bias(x_flat, qkv_w, qkv_b, out_dtype=bf16)   # [B*HW, Cp]
    qkv_bhwc = qkv_flat.reshape(b, h, w, cp)

    # ---- ODConv attention branch (tiny, plain JAX) --------------------------
    pooled = jnp.mean(qkv_bhwc.astype(f32), axis=(1, 2))[:, :d3]   # [B, 3C]
    ch_att, fl_att, sp_att = _odconv_attention(pooled, params)
    ch_p = jnp.pad(ch_att, ((0, 0), (0, cp - d3)))
    fl_p = jnp.pad(fl_att, ((0, 0), (0, cp - d3)))
    scale = (sp_att.reshape(b, 9, 1) * ch_p[:, None, :]).astype(f32)  # [B,9,Cp]
    fatt = fl_p[:, None, :].astype(f32)                               # [B,1,Cp]

    # ---- dynamic 3x3 conv: shifted matmuls vs a single resident weight ------
    xpad = jnp.pad(qkv_bhwc, ((0, 0), (1, 1), (1, 1), (0, 0)))     # [B,H+2,W+2,Cp]
    w9 = params["od_weight"].transpose(2, 3, 1, 0).reshape(9, d3, d3)
    w9 = jnp.pad(w9, ((0, 0), (0, cp - d3), (0, cp - d3))).astype(bf16)
    conv_out = dynamic_conv3x3(xpad, w9, scale, fatt, h, w)        # [B, HW, Cp]

    # ---- fused multi-head channel attention + 1x1 projection ----------------
    idx = jnp.arange(cp)
    row_is_q = idx < c
    col_is_k = (idx >= c) & (idx < 2 * c)
    same_head = (idx[:, None] // c_head) == ((idx[None, :] - c) // c_head)
    mask = jnp.where(row_is_q[:, None] & col_is_k[None, :] & same_head,
                     0.0, -1e30).astype(f32)                       # [Cp, Cp]
    temp = jnp.repeat(params["temperature"].reshape(num_heads), c_head)
    tscale = jnp.concatenate([temp, jnp.ones((cp - c,), f32)]).reshape(cp, 1)
    sel = (idx[:, None] == (idx[None, :] + c)).astype(bf16)        # shift-by-C
    proj_w = jnp.pad(params["proj_w"], ((0, cp - c), (0, 0))).astype(bf16)
    proj_b = params["proj_b"].reshape(1, c).astype(f32)

    out_flat = chan_attn_proj(conv_out, tscale, mask, sel, proj_w, proj_b)
    return out_flat.reshape(b, h, w, c).transpose(0, 3, 1, 2)      # NCHW f32


# --------------------------------------------------------------------------
# Pure-JAX f32 reference (same math, used for the self-check)
# --------------------------------------------------------------------------

def _im2col_3x3(x_nchw):
    b, c, h, w = x_nchw.shape
    xp = jnp.pad(x_nchw, ((0, 0), (0, 0), (1, 1), (1, 1)))
    cols = [xp[:, :, i:i + h, j:j + w] for i in range(3) for j in range(3)]
    patches = jnp.stack(cols, axis=2)                 # [B, C, 9, H, W]
    patches = patches.transpose(0, 3, 4, 1, 2)        # [B, H, W, C, 9]
    return patches.reshape(b, h * w, c * 9)


def attention_reference(x, p, num_heads):
    b, c, h, w = x.shape
    d3 = 3 * c
    hw = h * w
    x_flat = x.transpose(0, 2, 3, 1).reshape(b * hw, c)
    qkv_flat = x_flat @ p["qkv_w"] + p["qkv_b"]
    qkv_nchw = qkv_flat.reshape(b, h, w, d3).transpose(0, 3, 1, 2)
    pooled = jnp.mean(qkv_nchw, axis=(2, 3))
    ch_att, fl_att, sp_att = _odconv_attention(pooled, p)
    x_ch = qkv_nchw * ch_att[:, :, None, None]
    patches = _im2col_3x3(x_ch)
    agg_w = sp_att[:, None, None, :, :] * p["od_weight"][None]
    w_flat = agg_w.reshape(b, d3, d3 * 9).transpose(0, 2, 1)
    conv_out = jnp.einsum("bpk,bkn->bpn", patches, w_flat) * fl_att[:, None, :]
    qkv_cf = conv_out.transpose(0, 2, 1)
    q, k, v = jnp.split(qkv_cf, 3, axis=1)
    c_head = c // num_heads
    q = q.reshape(b, num_heads, c_head, hw)
    k = k.reshape(b, num_heads, c_head, hw)
    v = v.reshape(b, num_heads, c_head, hw)
    qn = q / jnp.maximum(jnp.linalg.norm(q, axis=-1, keepdims=True), 1e-12)
    kn = k / jnp.maximum(jnp.linalg.norm(k, axis=-1, keepdims=True), 1e-12)
    logits = jnp.einsum("bhcl,bhdl->bhcd", qn, kn) * p["temperature"]
    attn = jax.nn.softmax(logits, axis=-1)
    out = jnp.einsum("bhcd,bhdl->bhcl", attn, v)
    out = out.reshape(b, c, hw).transpose(0, 2, 1).reshape(b * hw, c)
    out = out @ p["proj_w"] + p["proj_b"]
    return out.reshape(b, h, w, c).transpose(0, 3, 1, 2)


# --------------------------------------------------------------------------
# Driver
# --------------------------------------------------------------------------

if __name__ == "__main__":
    B, dim, H, W = 2, 32, 16, 16
    num_heads = 4

    key = jax.random.PRNGKey(0)
    kx, kp = jax.random.split(key)
    x = jax.random.normal(kx, (B, dim, H, W), jnp.float32)
    params = make_params(kp, dim, num_heads)

    fwd = jax.jit(functools.partial(attention_forward, num_heads=num_heads))
    out = jax.block_until_ready(fwd(x, params))
    assert out.shape == (B, dim, H, W)

    ref_fn = jax.jit(functools.partial(attention_reference, num_heads=num_heads))
    ref = jax.block_until_ready(ref_fn(x, params))
    err = float(jnp.max(jnp.abs(out - ref)))
    # bf16 MXU operands with f32 accumulation -> loose per-element tolerance
    assert err < 3e-2, f"max abs error too large: {err}"

    print("KERNEL_OK")
</pallas_src>

<mosaic_0001>
module attributes {stable_mosaic.version = 11 : i64} {
  func.func @_matmul_bias_kernel(%arg0: i32, %arg1: memref<256x32xf32, #tpu.memory_space<vmem>>, %arg2: memref<32x128xbf16, #tpu.memory_space<vmem>>, %arg3: memref<1x128xf32, #tpu.memory_space<vmem>>, %arg4: memref<256x128xbf16, #tpu.memory_space<vmem>>) attributes {dimension_semantics = [#tpu.dimension_semantics<parallel>], iteration_bounds = array<i64: 2>, scalar_prefetch = 0 : i64, scratch_operands = 0 : i64, tpu.core_type = #tpu.core_type<tc>, window_params = [{transform_indices = @transform_0, window_bounds = array<i64: 256, 32>}, {pipeline_mode = #tpu.pipeline_mode<synchronous>, transform_indices = @transform_1, window_bounds = array<i64: 32, 128>}, {pipeline_mode = #tpu.pipeline_mode<synchronous>, transform_indices = @transform_2, window_bounds = array<i64: 1, 128>}, {transform_indices = @transform_3, window_bounds = array<i64: 256, 128>}]} {
    %c0 = arith.constant 0 : index
    %c0_0 = arith.constant 0 : index
    %0 = vector.load %arg1[%c0, %c0_0] : memref<256x32xf32, #tpu.memory_space<vmem>>, vector<256x32xf32>
    %1 = arith.truncf %0 : vector<256x32xf32> to vector<256x32xbf16>
    %c0_1 = arith.constant 0 : index
    %c0_2 = arith.constant 0 : index
    %2 = vector.load %arg2[%c0_1, %c0_2] : memref<32x128xbf16, #tpu.memory_space<vmem>>, vector<32x128xbf16>
    %cst = arith.constant dense<0.000000e+00> : vector<256x128xf32>
    %3 = tpu.matmul %1, %2, %cst {dimension_numbers = #tpu.dot_dimension_numbers<[1], [0], [0], [1], [0, 0, 1, 1], [], []>} : vector<256x32xbf16>, vector<32x128xbf16>, vector<256x128xf32> -> vector<256x128xf32>
    %c0_3 = arith.constant 0 : index
    %c0_4 = arith.constant 0 : index
    %4 = vector.load %arg3[%c0_3, %c0_4] : memref<1x128xf32, #tpu.memory_space<vmem>>, vector<1x128xf32>
    %5 = vector.broadcast %4 : vector<1x128xf32> to vector<256x128xf32>
    %6 = arith.addf %3, %5 : vector<256x128xf32>
    %7 = arith.truncf %6 : vector<256x128xf32> to vector<256x128xbf16>
    %c0_5 = arith.constant 0 : index
    %c0_6 = arith.constant 0 : index
    %8 = vector.load %arg4[%c0_5, %c0_6] : memref<256x128xbf16, #tpu.memory_space<vmem>>, vector<256x128xbf16>
    tpu.vector_store %arg4[%c0_5, %c0_6], %7 {strides = array<i32>} : memref<256x128xbf16, #tpu.memory_space<vmem>>, vector<256x128xbf16>,
    return
  }
  func.func @transform_0(%arg0: i32) -> (i32, i32) {
    %c0_i32 = arith.constant 0 : i32
    %c0_i32_0 = arith.constant 0 : i32
    return %arg0, %c0_i32 : i32, i32
  }
  func.func @transform_1(%arg0: i32) -> (i32, i32) {
    %c0_i32 = arith.constant 0 : i32
    %c0_i32_0 = arith.constant 0 : i32
    %c0_i32_1 = arith.constant 0 : i32
    return %c0_i32, %c0_i32_0 : i32, i32
  }
  func.func @transform_2(%arg0: i32) -> (i32, i32) {
    %c0_i32 = arith.constant 0 : i32
    %c0_i32_0 = arith.constant 0 : i32
    %c0_i32_1 = arith.constant 0 : i32
    return %c0_i32, %c0_i32_0 : i32, i32
  }
  func.func @transform_3(%arg0: i32) -> (i32, i32) {
    %c0_i32 = arith.constant 0 : i32
    %c0_i32_0 = arith.constant 0 : i32
    return %arg0, %c0_i32 : i32, i32
  }
}

module attributes {stable_mosaic.version = 11 : i64} {
  func.func @_dynconv_kernel(%arg0: i32, %arg1: memref<1x18x18x128xbf16, #tpu.memory_space<vmem>>, %arg2: memref<9x128x128xbf16, #tpu.memory_space<vmem>>, %arg3: memref<1x9x128xf32, #tpu.memory_space<vmem>>, %arg4: memref<1x1x128xf32, #tpu.memory_space<vmem>>, %arg5: memref<1x256x128xbf16, #tpu.memory_space<vmem>>) attributes {dimension_semantics = [#tpu.dimension_semantics<parallel>], iteration_bounds = array<i64: 2>, scalar_prefetch = 0 : i64, scratch_operands = 0 : i64, tpu.core_type = #tpu.core_type<tc>, window_params = [{transform_indices = @transform_0, window_bounds = array<i64: 1, 18, 18, 128>}, {pipeline_mode = #tpu.pipeline_mode<synchronous>, transform_indices = @transform_1, window_bounds = array<i64: 9, 128, 128>}, {transform_indices = @transform_2, window_bounds = array<i64: 1, 9, 128>}, {transform_indices = @transform_3, window_bounds = array<i64: 1, 1, 128>}, {transform_indices = @transform_4, window_bounds = array<i64: 1, 256, 128>}]} {
    %c0 = arith.constant 0 : index
    %c0_0 = arith.constant 0 : index
    %c0_1 = arith.constant 0 : index
    %c0_2 = arith.constant 0 : index
    %0 = vector.load %arg1[%c0, %c0_0, %c0_1, %c0_2] : memref<1x18x18x128xbf16, #tpu.memory_space<vmem>>, vector<1x18x18x128xbf16>
    %1 = vector.shape_cast %0 : vector<1x18x18x128xbf16> to vector<18x18x128xbf16>
    %2 = arith.extf %1 : vector<18x18x128xbf16> to vector<18x18x128xf32>
    %c0_3 = arith.constant 0 : index
    %c0_4 = arith.constant 0 : index
    %c0_5 = arith.constant 0 : index
    %3 = vector.load %arg3[%c0_3, %c0_4, %c0_5] : memref<1x9x128xf32, #tpu.memory_space<vmem>>, vector<1x9x128xf32>
    %4 = vector.shape_cast %3 : vector<1x9x128xf32> to vector<9x128xf32>
    %cst = arith.constant 0.000000e+00 : f32
    %5 = vector.broadcast %cst : f32 to vector<256x128xf32>
    %6 = vector.extract_strided_slice %2 {offsets = [0, 0, 0], sizes = [18, 16, 128], strides = [1, 1, 1]} : vector<18x18x128xf32> to vector<18x16x128xf32>
    %7 = vector.extract_strided_slice %6 {offsets = [0, 0, 0], sizes = [16, 16, 128], strides = [1, 1, 1]} : vector<18x16x128xf32> to vector<16x16x128xf32>
    %8 = vector.extract_strided_slice %4 {offsets = [0, 0], sizes = [1, 128], strides = [1, 1]} : vector<9x128xf32> to vector<1x128xf32>
    %9 = vector.shape_cast %8 : vector<1x128xf32> to vector<1x1x128xf32>
    %10 = vector.broadcast %9 : vector<1x1x128xf32> to vector<16x16x128xf32>
    %11 = arith.mulf %7, %10 : vector<16x16x128xf32>
    %12 = vector.shape_cast %11 : vector<16x16x128xf32> to vector<256x128xf32>
    %13 = arith.truncf %12 : vector<256x128xf32> to vector<256x128xbf16>
    %c0_6 = arith.constant 0 : index
    %c0_7 = arith.constant 0 : index
    %c0_8 = arith.constant 0 : index
    %14 = vector.load %arg2[%c0_6, %c0_7, %c0_8] : memref<9x128x128xbf16, #tpu.memory_space<vmem>>, vector<1x128x128xbf16>
    %15 = vector.shape_cast %14 : vector<1x128x128xbf16> to vector<128x128xbf16>
    %cst_9 = arith.constant dense<0.000000e+00> : vector<256x128xf32>
    %16 = tpu.matmul %13, %15, %cst_9 {dimension_numbers = #tpu.dot_dimension_numbers<[1], [0], [0], [1], [0, 0, 1, 1], [], []>} : vector<256x128xbf16>, vector<128x128xbf16>, vector<256x128xf32> -> vector<256x128xf32>
    %17 = arith.addf %5, %16 : vector<256x128xf32>
    %18 = vector.extract_strided_slice %6 {offsets = [1, 0, 0], sizes = [16, 16, 128], strides = [1, 1, 1]} : vector<18x16x128xf32> to vector<16x16x128xf32>
    %19 = vector.extract_strided_slice %4 {offsets = [3, 0], sizes = [1, 128], strides = [1, 1]} : vector<9x128xf32> to vector<1x128xf32>
    %20 = vector.shape_cast %19 : vector<1x128xf32> to vector<1x1x128xf32>
    %21 = vector.broadcast %20 : vector<1x1x128xf32> to vector<16x16x128xf32>
    %22 = arith.mulf %18, %21 : vector<16x16x128xf32>
    %23 = vector.shape_cast %22 : vector<16x16x128xf32> to vector<256x128xf32>
    %24 = arith.truncf %23 : vector<256x128xf32> to vector<256x128xbf16>
    %c3 = arith.constant 3 : index
    %c0_10 = arith.constant 0 : index
    %c0_11 = arith.constant 0 : index
    %25 = vector.load %arg2[%c3, %c0_10, %c0_11] : memref<9x128x128xbf16, #tpu.memory_space<vmem>>, vector<1x128x128xbf16>
    %26 = vector.shape_cast %25 : vector<1x128x128xbf16> to vector<128x128xbf16>
    %cst_12 = arith.constant dense<0.000000e+00> : vector<256x128xf32>
    %27 = tpu.matmul %24, %26, %cst_12 {dimension_numbers = #tpu.dot_dimension_numbers<[1], [0], [0], [1], [0, 0, 1, 1], [], []>} : vector<256x128xbf16>, vector<128x128xbf16>, vector<256x128xf32> -> vector<256x128xf32>
    %28 = arith.addf %17, %27 : vector<256x128xf32>
    %29 = vector.extract_strided_slice %6 {offsets = [2, 0, 0], sizes = [16, 16, 128], strides = [1, 1, 1]} : vector<18x16x128xf32> to vector<16x16x128xf32>
    %30 = vector.extract_strided_slice %4 {offsets = [6, 0], sizes = [1, 128], strides = [1, 1]} : vector<9x128xf32> to vector<1x128xf32>
    %31 = vector.shape_cast %30 : vector<1x128xf32> to vector<1x1x128xf32>
    %32 = vector.broadcast %31 : vector<1x1x128xf32> to vector<16x16x128xf32>
    %33 = arith.mulf %29, %32 : vector<16x16x128xf32>
    %34 = vector.shape_cast %33 : vector<16x16x128xf32> to vector<256x128xf32>
    %35 = arith.truncf %34 : vector<256x128xf32> to vector<256x128xbf16>
    %c6 = arith.constant 6 : index
    %c0_13 = arith.constant 0 : index
    %c0_14 = arith.constant 0 : index
    %36 = vector.load %arg2[%c6, %c0_13, %c0_14] : memref<9x128x128xbf16, #tpu.memory_space<vmem>>, vector<1x128x128xbf16>
    %37 = vector.shape_cast %36 : vector<1x128x128xbf16> to vector<128x128xbf16>
    %cst_15 = arith.constant dense<0.000000e+00> : vector<256x128xf32>
    %38 = tpu.matmul %35, %37, %cst_15 {dimension_numbers = #tpu.dot_dimension_numbers<[1], [0], [0], [1], [0, 0, 1, 1], [], []>} : vector<256x128xbf16>, vector<128x128xbf16>, vector<256x128xf32> -> vector<256x128xf32>
    %39 = arith.addf %28, %38 : vector<256x128xf32>
    %40 = vector.extract_strided_slice %2 {offsets = [0, 1, 0], sizes = [18, 16, 128], strides = [1, 1, 1]} : vector<18x18x128xf32> to vector<18x16x128xf32>
    %41 = vector.extract_strided_slice %40 {offsets = [0, 0, 0], sizes = [16, 16, 128], strides = [1, 1, 1]} : vector<18x16x128xf32> to vector<16x16x128xf32>
    %42 = vector.extract_strided_slice %4 {offsets = [1, 0], sizes = [1, 128], strides = [1, 1]} : vector<9x128xf32> to vector<1x128xf32>
    %43 = vector.shape_cast %42 : vector<1x128xf32> to vector<1x1x128xf32>
    %44 = vector.broadcast %43 : vector<1x1x128xf32> to vector<16x16x128xf32>
    %45 = arith.mulf %41, %44 : vector<16x16x128xf32>
    %46 = vector.shape_cast %45 : vector<16x16x128xf32> to vector<256x128xf32>
    %47 = arith.truncf %46 : vector<256x128xf32> to vector<256x128xbf16>
    %c1 = arith.constant 1 : index
    %c0_16 = arith.constant 0 : index
    %c0_17 = arith.constant 0 : index
    %48 = vector.load %arg2[%c1, %c0_16, %c0_17] : memref<9x128x128xbf16, #tpu.memory_space<vmem>>, vector<1x128x128xbf16>
    %49 = vector.shape_cast %48 : vector<1x128x128xbf16> to vector<128x128xbf16>
    %cst_18 = arith.constant dense<0.000000e+00> : vector<256x128xf32>
    %50 = tpu.matmul %47, %49, %cst_18 {dimension_numbers = #tpu.dot_dimension_numbers<[1], [0], [0], [1], [0, 0, 1, 1], [], []>} : vector<256x128xbf16>, vector<128x128xbf16>, vector<256x128xf32> -> vector<256x128xf32>
    %51 = arith.addf %39, %50 : vector<256x128xf32>
    %52 = vector.extract_strided_slice %40 {offsets = [1, 0, 0], sizes = [16, 16, 128], strides = [1, 1, 1]} : vector<18x16x128xf32> to vector<16x16x128xf32>
    %53 = vector.extract_strided_slice %4 {offsets = [4, 0], sizes = [1, 128], strides = [1, 1]} : vector<9x128xf32> to vector<1x128xf32>
    %54 = vector.shape_cast %53 : vector<1x128xf32> to vector<1x1x128xf32>
    %55 = vector.broadcast %54 : vector<1x1x128xf32> to vector<16x16x128xf32>
    %56 = arith.mulf %52, %55 : vector<16x16x128xf32>
    %57 = vector.shape_cast %56 : vector<16x16x128xf32> to vector<256x128xf32>
    %58 = arith.truncf %57 : vector<256x128xf32> to vector<256x128xbf16>
    %c4 = arith.constant 4 : index
    %c0_19 = arith.constant 0 : index
    %c0_20 = arith.constant 0 : index
    %59 = vector.load %arg2[%c4, %c0_19, %c0_20] : memref<9x128x128xbf16, #tpu.memory_space<vmem>>, vector<1x128x128xbf16>
    %60 = vector.shape_cast %59 : vector<1x128x128xbf16> to vector<128x128xbf16>
    %cst_21 = arith.constant dense<0.000000e+00> : vector<256x128xf32>
    %61 = tpu.matmul %58, %60, %cst_21 {dimension_numbers = #tpu.dot_dimension_numbers<[1], [0], [0], [1], [0, 0, 1, 1], [], []>} : vector<256x128xbf16>, vector<128x128xbf16>, vector<256x128xf32> -> vector<256x128xf32>
    %62 = arith.addf %51, %61 : vector<256x128xf32>
    %63 = vector.extract_strided_slice %40 {offsets = [2, 0, 0], sizes = [16, 16, 128], strides = [1, 1, 1]} : vector<18x16x128xf32> to vector<16x16x128xf32>
    %64 = vector.extract_strided_slice %4 {offsets = [7, 0], sizes = [1, 128], strides = [1, 1]} : vector<9x128xf32> to vector<1x128xf32>
    %65 = vector.shape_cast %64 : vector<1x128xf32> to vector<1x1x128xf32>
    %66 = vector.broadcast %65 : vector<1x1x128xf32> to vector<16x16x128xf32>
    %67 = arith.mulf %63, %66 : vector<16x16x128xf32>
    %68 = vector.shape_cast %67 : vector<16x16x128xf32> to vector<256x128xf32>
    %69 = arith.truncf %68 : vector<256x128xf32> to vector<256x128xbf16>
    %c7 = arith.constant 7 : index
    %c0_22 = arith.constant 0 : index
    %c0_23 = arith.constant 0 : index
    %70 = vector.load %arg2[%c7, %c0_22, %c0_23] : memref<9x128x128xbf16, #tpu.memory_space<vmem>>, vector<1x128x128xbf16>
    %71 = vector.shape_cast %70 : vector<1x128x128xbf16> to vector<128x128xbf16>
    %cst_24 = arith.constant dense<0.000000e+00> : vector<256x128xf32>
    %72 = tpu.matmul %69, %71, %cst_24 {dimension_numbers = #tpu.dot_dimension_numbers<[1], [0], [0], [1], [0, 0, 1, 1], [], []>} : vector<256x128xbf16>, vector<128x128xbf16>, vector<256x128xf32> -> vector<256x128xf32>
    %73 = arith.addf %62, %72 : vector<256x128xf32>
    %74 = vector.extract_strided_slice %2 {offsets = [0, 2, 0], sizes = [18, 16, 128], strides = [1, 1, 1]} : vector<18x18x128xf32> to vector<18x16x128xf32>
    %75 = vector.extract_strided_slice %74 {offsets = [0, 0, 0], sizes = [16, 16, 128], strides = [1, 1, 1]} : vector<18x16x128xf32> to vector<16x16x128xf32>
    %76 = vector.extract_strided_slice %4 {offsets = [2, 0], sizes = [1, 128], strides = [1, 1]} : vector<9x128xf32> to vector<1x128xf32>
    %77 = vector.shape_cast %76 : vector<1x128xf32> to vector<1x1x128xf32>
    %78 = vector.broadcast %77 : vector<1x1x128xf32> to vector<16x16x128xf32>
    %79 = arith.mulf %75, %78 : vector<16x16x128xf32>
    %80 = vector.shape_cast %79 : vector<16x16x128xf32> to vector<256x128xf32>
    %81 = arith.truncf %80 : vector<256x128xf32> to vector<256x128xbf16>
    %c2 = arith.constant 2 : index
    %c0_25 = arith.constant 0 : index
    %c0_26 = arith.constant 0 : index
    %82 = vector.load %arg2[%c2, %c0_25, %c0_26] : memref<9x128x128xbf16, #tpu.memory_space<vmem>>, vector<1x128x128xbf16>
    %83 = vector.shape_cast %82 : vector<1x128x128xbf16> to vector<128x128xbf16>
    %cst_27 = arith.constant dense<0.000000e+00> : vector<256x128xf32>
    %84 = tpu.matmul %81, %83, %cst_27 {dimension_numbers = #tpu.dot_dimension_numbers<[1], [0], [0], [1], [0, 0, 1, 1], [], []>} : vector<256x128xbf16>, vector<128x128xbf16>, vector<256x128xf32> -> vector<256x128xf32>
    %85 = arith.addf %73, %84 : vector<256x128xf32>
    %86 = vector.extract_strided_slice %74 {offsets = [1, 0, 0], sizes = [16, 16, 128], strides = [1, 1, 1]} : vector<18x16x128xf32> to vector<16x16x128xf32>
    %87 = vector.extract_strided_slice %4 {offsets = [5, 0], sizes = [1, 128], strides = [1, 1]} : vector<9x128xf32> to vector<1x128xf32>
    %88 = vector.shape_cast %87 : vector<1x128xf32> to vector<1x1x128xf32>
    %89 = vector.broadcast %88 : vector<1x1x128xf32> to vector<16x16x128xf32>
    %90 = arith.mulf %86, %89 : vector<16x16x128xf32>
    %91 = vector.shape_cast %90 : vector<16x16x128xf32> to vector<256x128xf32>
    %92 = arith.truncf %91 : vector<256x128xf32> to vector<256x128xbf16>
    %c5 = arith.constant 5 : index
    %c0_28 = arith.constant 0 : index
    %c0_29 = arith.constant 0 : index
    %93 = vector.load %arg2[%c5, %c0_28, %c0_29] : memref<9x128x128xbf16, #tpu.memory_space<vmem>>, vector<1x128x128xbf16>
    %94 = vector.shape_cast %93 : vector<1x128x128xbf16> to vector<128x128xbf16>
    %cst_30 = arith.constant dense<0.000000e+00> : vector<256x128xf32>
    %95 = tpu.matmul %92, %94, %cst_30 {dimension_numbers = #tpu.dot_dimension_numbers<[1], [0], [0], [1], [0, 0, 1, 1], [], []>} : vector<256x128xbf16>, vector<128x128xbf16>, vector<256x128xf32> -> vector<256x128xf32>
    %96 = arith.addf %85, %95 : vector<256x128xf32>
    %97 = vector.extract_strided_slice %74 {offsets = [2, 0, 0], sizes = [16, 16, 128], strides = [1, 1, 1]} : vector<18x16x128xf32> to vector<16x16x128xf32>
    %98 = vector.extract_strided_slice %4 {offsets = [8, 0], sizes = [1, 128], strides = [1, 1]} : vector<9x128xf32> to vector<1x128xf32>
    %99 = vector.shape_cast %98 : vector<1x128xf32> to vector<1x1x128xf32>
    %100 = vector.broadcast %99 : vector<1x1x128xf32> to vector<16x16x128xf32>
    %101 = arith.mulf %97, %100 : vector<16x16x128xf32>
    %102 = vector.shape_cast %101 : vector<16x16x128xf32> to vector<256x128xf32>
    %103 = arith.truncf %102 : vector<256x128xf32> to vector<256x128xbf16>
    %c8 = arith.constant 8 : index
    %c0_31 = arith.constant 0 : index
    %c0_32 = arith.constant 0 : index
    %104 = vector.load %arg2[%c8, %c0_31, %c0_32] : memref<9x128x128xbf16, #tpu.memory_space<vmem>>, vector<1x128x128xbf16>
    %105 = vector.shape_cast %104 : vector<1x128x128xbf16> to vector<128x128xbf16>
    %cst_33 = arith.constant dense<0.000000e+00> : vector<256x128xf32>
    %106 = tpu.matmul %103, %105, %cst_33 {dimension_numbers = #tpu.dot_dimension_numbers<[1], [0], [0], [1], [0, 0, 1, 1], [], []>} : vector<256x128xbf16>, vector<128x128xbf16>, vector<256x128xf32> -> vector<256x128xf32>
    %107 = arith.addf %96, %106 : vector<256x128xf32>
    %c0_34 = arith.constant 0 : index
    %c0_35 = arith.constant 0 : index
    %c0_36 = arith.constant 0 : index
    %108 = vector.load %arg4[%c0_34, %c0_35, %c0_36] : memref<1x1x128xf32, #tpu.memory_space<vmem>>, vector<1x1x128xf32>
    %109 = vector.shape_cast %108 : vector<1x1x128xf32> to vector<1x128xf32>
    %110 = vector.broadcast %109 : vector<1x128xf32> to vector<256x128xf32>
    %111 = arith.mulf %107, %110 : vector<256x128xf32>
    %112 = arith.truncf %111 : vector<256x128xf32> to vector<256x128xbf16>
    %c0_37 = arith.constant 0 : index
    %c0_38 = arith.constant 0 : index
    %c0_39 = arith.constant 0 : index
    %113 = vector.load %arg5[%c0_37, %c0_38, %c0_39] : memref<1x256x128xbf16, #tpu.memory_space<vmem>>, vector<1x256x128xbf16>
    %114 = vector.shape_cast %113 : vector<1x256x128xbf16> to vector<256x128xbf16>
    %115 = vector.shape_cast %112 : vector<256x128xbf16> to vector<1x256x128xbf16>
    tpu.vector_store %arg5[%c0_37, %c0_38, %c0_39], %115 {strides = array<i32>} : memref<1x256x128xbf16, #tpu.memory_space<vmem>>, vector<1x256x128xbf16>,
    return
  }
  func.func @transform_0(%arg0: i32) -> (i32, i32, i32, i32) {
    %c0_i32 = arith.constant 0 : i32
    %c0_i32_0 = arith.constant 0 : i32
    %c0_i32_1 = arith.constant 0 : i32
    %c0_i32_2 = arith.constant 0 : i32
    return %arg0, %c0_i32, %c0_i32_0, %c0_i32_1 : i32, i32, i32, i32
  }
  func.func @transform_1(%arg0: i32) -> (i32, i32, i32) {
    %c0_i32 = arith.constant 0 : i32
    %c0_i32_0 = arith.constant 0 : i32
    %c0_i32_1 = arith.constant 0 : i32
    %c0_i32_2 = arith.constant 0 : i32
    return %c0_i32, %c0_i32_0, %c0_i32_1 : i32, i32, i32
  }
  func.func @transform_2(%arg0: i32) -> (i32, i32, i32) {
    %c0_i32 = arith.constant 0 : i32
    %c0_i32_0 = arith.constant 0 : i32
    %c0_i32_1 = arith.constant 0 : i32
    return %arg0, %c0_i32, %c0_i32_0 : i32, i32, i32
  }
  func.func @transform_3(%arg0: i32) -> (i32, i32, i32) {
    %c0_i32 = arith.constant 0 : i32
    %c0_i32_0 = arith.constant 0 : i32
    %c0_i32_1 = arith.constant 0 : i32
    return %arg0, %c0_i32, %c0_i32_0 : i32, i32, i32
  }
  func.func @transform_4(%arg0: i32) -> (i32, i32, i32) {
    %c0_i32 = arith.constant 0 : i32
    %c0_i32_0 = arith.constant 0 : i32
    %c0_i32_1 = arith.constant 0 : i32
    return %arg0, %c0_i32, %c0_i32_0 : i32, i32, i32
  }
}

module attributes {stable_mosaic.version = 11 : i64} {
  func.func @_chan_attn_proj_kernel(%arg0: i32, %arg1: memref<1x256x128xbf16, #tpu.memory_space<vmem>>, %arg2: memref<128x1xf32, #tpu.memory_space<vmem>>, %arg3: memref<128x128xf32, #tpu.memory_space<vmem>>, %arg4: memref<128x128xbf16, #tpu.memory_space<vmem>>, %arg5: memref<128x32xbf16, #tpu.memory_space<vmem>>, %arg6: memref<1x32xf32, #tpu.memory_space<vmem>>, %arg7: memref<1x256x32xf32, #tpu.memory_space<vmem>>) attributes {dimension_semantics = [#tpu.dimension_semantics<parallel>], iteration_bounds = array<i64: 2>, scalar_prefetch = 0 : i64, scratch_operands = 0 : i64, tpu.core_type = #tpu.core_type<tc>, window_params = [{transform_indices = @transform_0, window_bounds = array<i64: 1, 256, 128>}, {pipeline_mode = #tpu.pipeline_mode<synchronous>, transform_indices = @transform_1, window_bounds = array<i64: 128, 1>}, {pipeline_mode = #tpu.pipeline_mode<synchronous>, transform_indices = @transform_2, window_bounds = array<i64: 128, 128>}, {pipeline_mode = #tpu.pipeline_mode<synchronous>, transform_indices = @transform_3, window_bounds = array<i64: 128, 128>}, {pipeline_mode = #tpu.pipeline_mode<synchronous>, transform_indices = @transform_4, window_bounds = array<i64: 128, 32>}, {pipeline_mode = #tpu.pipeline_mode<synchronous>, transform_indices = @transform_5, window_bounds = array<i64: 1, 32>}, {transform_indices = @transform_6, window_bounds = array<i64: 1, 256, 32>}]} {
    %c0 = arith.constant 0 : index
    %c0_0 = arith.constant 0 : index
    %c0_1 = arith.constant 0 : index
    %0 = vector.load %arg1[%c0, %c0_0, %c0_1] : memref<1x256x128xbf16, #tpu.memory_space<vmem>>, vector<1x256x128xbf16>
    %1 = vector.shape_cast %0 : vector<1x256x128xbf16> to vector<256x128xbf16>
    %2 = arith.extf %1 : vector<256x128xbf16> to vector<256x128xf32>
    %3 = arith.mulf %2, %2 : vector<256x128xf32>
    %cst = arith.constant dense<0.000000e+00> : vector<128xf32>
    %4 = vector.multi_reduction <add>, %3, %cst [0] : vector<256x128xf32> to vector<128xf32>
    %5 = vector.shape_cast %4 : vector<128xf32> to vector<1x128xf32>
    %cst_2 = arith.constant 1.000000e-24 : f32
    %6 = vector.broadcast %cst_2 : f32 to vector<1x128xf32>
    %7 = arith.maximumf %5, %6 : vector<1x128xf32>
    %8 = math.rsqrt %7 : vector<1x128xf32>
    %9 = vector.broadcast %8 : vector<1x128xf32> to vector<256x128xf32>
    %10 = arith.mulf %2, %9 : vector<256x128xf32>
    %11 = arith.truncf %10 : vector<256x128xf32> to vector<256x128xbf16>
    %cst_3 = arith.constant dense<0.000000e+00> : vector<128x128xf32>
    %12 = tpu.matmul %11, %11, %cst_3 {dimension_numbers = #tpu.dot_dimension_numbers<[0], [0], [1], [1], [0, 1, 1, 1], [], []>} : vector<256x128xbf16>, vector<256x128xbf16>, vector<128x128xf32> -> vector<128x128xf32>
    %c0_4 = arith.constant 0 : index
    %c0_5 = arith.constant 0 : index
    %13 = vector.load %arg2[%c0_4, %c0_5] : memref<128x1xf32, #tpu.memory_space<vmem>>, vector<128x1xf32>
    %14 = vector.broadcast %13 : vector<128x1xf32> to vector<128x128xf32>
    %15 = arith.mulf %12, %14 : vector<128x128xf32>
    %c0_6 = arith.constant 0 : index
    %c0_7 = arith.constant 0 : index
    %16 = vector.load %arg3[%c0_6, %c0_7] : memref<128x128xf32, #tpu.memory_space<vmem>>, vector<128x128xf32>
    %17 = arith.addf %15, %16 : vector<128x128xf32>
    %cst_8 = arith.constant dense<0xFF800000> : vector<128xf32>
    %18 = vector.multi_reduction <maximumf>, %17, %cst_8 [1] : vector<128x128xf32> to vector<128xf32>
    %19 = vector.shape_cast %18 : vector<128xf32> to vector<128x1xf32>
    %20 = vector.broadcast %19 : vector<128x1xf32> to vector<128x128xf32>
    %21 = arith.subf %17, %20 : vector<128x128xf32>
    %22 = math.exp %21 : vector<128x128xf32>
    %cst_9 = arith.constant dense<0.000000e+00> : vector<128xf32>
    %23 = vector.multi_reduction <add>, %22, %cst_9 [1] : vector<128x128xf32> to vector<128xf32>
    %24 = vector.shape_cast %23 : vector<128xf32> to vector<128x1xf32>
    %25 = tpu.reciprocal %24 {approx = true} : vector<128x1xf32> -> vector<128x1xf32>
    %26 = vector.broadcast %25 : vector<128x1xf32> to vector<128x128xf32>
    %27 = arith.mulf %22, %26 : vector<128x128xf32>
    %28 = arith.truncf %27 : vector<128x128xf32> to vector<128x128xbf16>
    %c0_10 = arith.constant 0 : index
    %c0_11 = arith.constant 0 : index
    %29 = vector.load %arg4[%c0_10, %c0_11] : memref<128x128xbf16, #tpu.memory_space<vmem>>, vector<128x128xbf16>
    %cst_12 = arith.constant dense<0.000000e+00> : vector<256x128xf32>
    %30 = tpu.matmul %1, %29, %cst_12 {dimension_numbers = #tpu.dot_dimension_numbers<[1], [0], [0], [1], [0, 0, 1, 1], [], []>} : vector<256x128xbf16>, vector<128x128xbf16>, vector<256x128xf32> -> vector<256x128xf32>
    %31 = arith.truncf %30 : vector<256x128xf32> to vector<256x128xbf16>
    %cst_13 = arith.constant dense<0.000000e+00> : vector<256x128xf32>
    %32 = tpu.matmul %31, %28, %cst_13 {dimension_numbers = #tpu.dot_dimension_numbers<[1], [1], [0], [0], [0, 0, 1, 0], [], []>} : vector<256x128xbf16>, vector<128x128xbf16>, vector<256x128xf32> -> vector<256x128xf32>
    %33 = arith.truncf %32 : vector<256x128xf32> to vector<256x128xbf16>
    %c0_14 = arith.constant 0 : index
    %c0_15 = arith.constant 0 : index
    %34 = vector.load %arg5[%c0_14, %c0_15] : memref<128x32xbf16, #tpu.memory_space<vmem>>, vector<128x32xbf16>
    %cst_16 = arith.constant dense<0.000000e+00> : vector<256x32xf32>
    %35 = tpu.matmul %33, %34, %cst_16 {dimension_numbers = #tpu.dot_dimension_numbers<[1], [0], [0], [1], [0, 0, 1, 1], [], []>} : vector<256x128xbf16>, vector<128x32xbf16>, vector<256x32xf32> -> vector<256x32xf32>
    %c0_17 = arith.constant 0 : index
    %c0_18 = arith.constant 0 : index
    %36 = vector.load %arg6[%c0_17, %c0_18] : memref<1x32xf32, #tpu.memory_space<vmem>>, vector<1x32xf32>
    %37 = vector.broadcast %36 : vector<1x32xf32> to vector<256x32xf32>
    %38 = arith.addf %35, %37 : vector<256x32xf32>
    %c0_19 = arith.constant 0 : index
    %c0_20 = arith.constant 0 : index
    %c0_21 = arith.constant 0 : index
    %39 = vector.load %arg7[%c0_19, %c0_20, %c0_21] : memref<1x256x32xf32, #tpu.memory_space<vmem>>, vector<1x256x32xf32>
    %40 = vector.shape_cast %39 : vector<1x256x32xf32> to vector<256x32xf32>
    %41 = vector.shape_cast %38 : vector<256x32xf32> to vector<1x256x32xf32>
    tpu.vector_store %arg7[%c0_19, %c0_20, %c0_21], %41 {strides = array<i32>} : memref<1x256x32xf32, #tpu.memory_space<vmem>>, vector<1x256x32xf32>,
    return
  }
  func.func @transform_0(%arg0: i32) -> (i32, i32, i32) {
    %c0_i32 = arith.constant 0 : i32
    %c0_i32_0 = arith.constant 0 : i32
    %c0_i32_1 = arith.constant 0 : i32
    return %arg0, %c0_i32, %c0_i32_0 : i32, i32, i32
  }
  func.func @transform_1(%arg0: i32) -> (i32, i32) {
    %c0_i32 = arith.constant 0 : i32
    %c0_i32_0 = arith.constant 0 : i32
    %c0_i32_1 = arith.constant 0 : i32
    return %c0_i32, %c0_i32_0 : i32, i32
  }
  func.func @transform_2(%arg0: i32) -> (i32, i32) {
    %c0_i32 = arith.constant 0 : i32
    %c0_i32_0 = arith.constant 0 : i32
    %c0_i32_1 = arith.constant 0 : i32
    return %c0_i32, %c0_i32_0 : i32, i32
  }
  func.func @transform_3(%arg0: i32) -> (i32, i32) {
    %c0_i32 = arith.constant 0 : i32
    %c0_i32_0 = arith.constant 0 : i32
    %c0_i32_1 = arith.constant 0 : i32
    return %c0_i32, %c0_i32_0 : i32, i32
  }
  func.func @transform_4(%arg0: i32) -> (i32, i32) {
    %c0_i32 = arith.constant 0 : i32
    %c0_i32_0 = arith.constant 0 : i32
    %c0_i32_1 = arith.constant 0 : i32
    return %c0_i32, %c0_i32_0 : i32, i32
  }
  func.func @transform_5(%arg0: i32) -> (i32, i32) {
    %c0_i32 = arith.constant 0 : i32
    %c0_i32_0 = arith.constant 0 : i32
    %c0_i32_1 = arith.constant 0 : i32
    return %c0_i32, %c0_i32_0 : i32, i32
  }
  func.func @transform_6(%arg0: i32) -> (i32, i32, i32) {
    %c0_i32 = arith.constant 0 : i32
    %c0_i32_0 = arith.constant 0 : i32
    %c0_i32_1 = arith.constant 0 : i32
    return %arg0, %c0_i32, %c0_i32_0 : i32, i32, i32
  }
}

</mosaic_0001>

<bundles_post_ra>
// kernel: attention_forward.3
= control target key start
LH: loop header
LB: loop body
LE: loop exit
PB: predicated region body
PF: predicated region fallthrough
CT: control target
= control target key end

     0   :  { %8 = vsyncpa [#allocation3], 0  ;;  %s1302_s0 = inlined_call_operand.hbm [shape: f32[512,32], index: 0, kind: input, shape index: {}]   ;;  %s1303_s1 = inlined_call_operand.vmem [shape: bf16[32,128], index: 1, kind: input, shape index: {}]   ;;  %s1304_s2 = inlined_call_operand.vmem [shape: f32[1,128], index: 2, kind: input, shape index: {}]   ;;  %s1305_s3 = inlined_call_operand.vmem [shape: bf16[512,128], index: 3, kind: output, shape index: {}]  }
   0x1   :  { %10 = vsyncpa [#allocation3 + $0x1], 0  ;;  %s1084_s12 = smov 0   ;;  %s1086_s13 = smov 0  }
   0x2   :  { %s1088_s14 = smov 0   ;;  %s1090_s15 = smov 0  }
   0x3 LB: > { %s702_s16 = sadd.s32 4294967295, %s1059_s15   ;;  %s1104_s17 = sadd.s32 1, %s1059_s15   ;;  %s1059_s15 = sphi %s1090_s15, %s1312_s15   ;;  %s1055_s14 = sphi %s1088_s14, %s1311_s14   ;;  %s1051_s13 = sphi %s1086_s13, %s1310_s13   ;;  %s1047_s12 = sphi %s1084_s12, %s1309_s12  }
   0x4   : > { %s20_s18 = ssub.s32 %s1059_s15, %s1104_s17  ;;  %s23_s19 = sadd.s32 1, %s1055_s14 }
   0x5   : > { %p21_p0 = scmp.eq.s32.totalorder %s20_s18, 0  ;;  %p30_p1 = scmp.ne.s32.totalorder %s1055_s14, %s1051_s13 }
   0x6   : > { %p31_p2 = scmp.eq.s32.totalorder %s1059_s15, 0  ;;  %p36_p3 = scmp.ne.s32.totalorder %s1051_s13, %s1047_s12 }
   0x7   : > { %s1114_s20 = scalar_select %p21_p0, %s1055_s14, %s23_s19  }
   0x8   : > { %p32_p4 = por %p31_p2, %p30_p1  ;;  %p37_p5 = scmp.eq.s32.totalorder %s702_s16, 0 }
   0x9   : > { %p958_p6 = scmp.lt.s32.totalorder %s1059_s15, 2  ;;  %s134_s22 = sand.u32 1, %s1055_s14  }
   0xa   : > { %p1119_p7 = por %p37_p5, %p36_p3  ;;  %s706_s23 = sshll.u32 %s134_s22, 8 }
   0xb   : > { %s766_s24 = sshll.u32 %s1059_s15, 12  ;;  %s138_s28 = scalar_lea.vmem [#allocation2], %s706_s23 }
   0xc   : > { %s1128_s27 = scalar_lea.hbm %s1302_s0, %s766_s24  ;;  %s145_s29 = sshll.u32 %s138_s28, 4  ;;  %s1130_s29 = int_to_ptr.vmem [resolvable:$true] %s145_s29 }
   0xd   : > { %p1132_p8 = pnand %p958_p6, %p32_p4  ;;  %s1137_s4 = scalar_lea.sflag [#allocation3], %s134_s22 }
   0xe   : > { %s995_s5 = scalar_lea.hbm %s1128_s27, 4096  ;;  %s1000_s8 = scalar_lea.hbm %s1302_s0, 8192 }
   0xf   : > { %p996_p10 = scmp.ne.s32.totalorder %s1128_s27, %s995_s5  ;;  %p997_p11 = pneg %p1132_p8 }
  0x10   : > { %p1001_p0 = scmp.lt.u32.totalorder %s1128_s27, %s1302_s0  ;;  %p1002_p1 = scmp.lt.u32.totalorder %s1000_s8, %s995_s5 }
  0x11   : > { %p998_p12 = pnand %p997_p11, %p996_p10  ;;  %p1004_p3 = scmp.lt.u32.totalorder %s995_s5, %s1128_s27 }
  0x12   : > { %p1003_p2 = por %p1002_p1, %p1001_p0 }
  0x13   : > { %p999_p13 = pneg %p998_p12 }
  0x14   : > { %p1005_p4 = por %p1004_p3, %p1003_p2 }
  0x16   : > { %p1006_p5 = pnand %p1005_p4, %p999_p13 }
  0x18   : > { %1009 = shalt.err (!%p1006_p5)
}
  0x19   : > { %s1010_s11 = scalar_lea.vmem %s1130_s29, 4096  ;;  %s1061_s12 = smov [#allocation2]  }
  0x1a   : > { %p1011_p6 = scmp.ne.s32.totalorder %s1130_s29, %s1010_s11  ;;  %s1015_s18 = sshll.u32 %s1061_s12, 4  ;;  %s1016_s18 = int_to_ptr.vmem [resolvable:$false] %s1015_s18 }
  0x1b   : > { %s1017_s19 = scalar_lea.vmem %s1016_s18, 8192  ;;  %p1018_p9 = scmp.lt.s32.totalorder %s1130_s29, %s1016_s18 }
  0x1c   : > { %p1013_p10 = pnand %p1011_p6, %p997_p11  ;;  %p1019_p0 = scmp.lt.s32.totalorder %s1017_s19, %s1010_s11 }
  0x1e   : > { %p1014_p12 = pneg %p1013_p10  ;;  %p1020_p1 = por %p1019_p0, %p1018_p9 }
  0x20   : > { %p1021_p2 = pnand %p1020_p1, %p1014_p12 }
  0x22   : > { %1024 = shalt.err (!%p1021_p2)
}
  0x23   : > { %s1062_s22 = smov 128   ;;  %s1063_s23 = smov 8  }
  0x24   : > { %957 = dma.hbm_to_vmem [thread:$0]  (!%p1132_p8), %s1128_s27, 4096, %s1130_s29, %s1137_s4, %s1062_s22, %s1062_s22, %s1063_s23  }
  0x25   : > { %p153_p11 = scmp.lt.s32.totalorder %s1059_s15, 3  ;;  %p1308_p13 = scmp.ge.s32.totalorder %s1059_s15, 1 }
  0x27   : > { %p154_p3 = pnand %p1308_p13, %p153_p11 }
  0x28   : > { %s159_s24 = sand.u32 (!%p154_p3), 1, %s1051_s13  }
  0x29   : > { %157 = sbr.rel (%p154_p3) target bundleno = 302 (0x12e), region = 32  ;;  %s710_s25 = sshll.u32 (!%p154_p3), %s159_s24, 8 }
  0x2a   : > { %s160_s26 = scalar_lea.sflag (!%p154_p3), [#allocation3], %s159_s24  ;;  %s1169_s28 = scalar_lea.vmem (!%p154_p3), [#allocation2], %s710_s25 }
  0x30   : > { %1042 = dma.done.wait (%p1119_p7), %s160_s26, 4096  }
  0x31   : > { %1044 = vsyncadd (%p1119_p7), %s160_s26, 4294963200  ;;  %v993_v0 = vld [vmem:[%s1303_s1] sm:$0xff]   ;;  %v994_v1 = vld [vmem:[%s1303_s1 + $0x8] sm:$0xff]   ;;  %vm265_vm0 = vcmask 261120   ;;  %s711_s21 = sshll.u32 %s702_s16, 5 }
  0x32   : > { %912 = vmatprep.subr.bf16.mxu0 %v993_v0  ;;  %948 = vmatprep.subr.bf16.mxu1 %v993_v0  ;;  %v194_v2 = vld [vmem:[%s1169_s28] sm:$0xff]  ;;  %v195_v3 = vld [vmem:[%s1169_s28 + $0x8] sm:$0xff]  ;;  %v196_v7 = vld [vmem:[%s1169_s28 + $0x10] sm:$0xff]  ;;  %p188_p7 = scmp.lt.s32.totalorder %s711_s21, 63 }
  0x33   : > { %v210_v4 = vld [vmem:[%s1169_s28 + $0x80] sm:$0xff]  ;;  %913 = vmatpush3.bf16.msra.mxu0 %v993_v0  ;;  %950 = vmatpush3.bf16.msra.mxu1 %v993_v0  ;;  %v226_v5 = vpack.c.bf16 %v195_v3, %v194_v2  ;;  %v211_v6 = vld [vmem:[%s1169_s28 + $0x88] sm:$0xff]  ;;  %v197_v8 = vld [vmem:[%s1169_s28 + $0x18] sm:$0xff] }
  0x34   : > { %914 = vmatprep.subr.bf16.mxu0 %v994_v1  ;;  %949 = vmatprep.subr.bf16.mxu1 %v994_v1  ;;  %v234_v9 = vpack.c.bf16 %v211_v6, %v210_v4  ;;  %v212_v10 = vld [vmem:[%s1169_s28 + $0x90] sm:$0xff]  ;;  %v213_v11 = vld [vmem:[%s1169_s28 + $0x98] sm:$0xff]  ;;  %v198_v12 = vld [vmem:[%s1169_s28 + $0x20] sm:$0xff]  ;;  %v227_v16 = vpack.c.bf16 %v197_v8, %v196_v7  ;;  %s1314_s21 = smov (!%p188_p7, %s711_s21), 63 }
  0x35   : > { %916 = vmatprep.mubr.msk.bf16.mxu0 %vm265_vm0, %v226_v5  ;;  %v199_v13 = vld [vmem:[%s1169_s28 + $0x28] sm:$0xff]  ;;  %v214_v14 = vld [vmem:[%s1169_s28 + $0xa0] sm:$0xff]  ;;  %v235_v17 = vpack.c.bf16 %v213_v11, %v212_v10  ;;  %v200_v20 = vld [vmem:[%s1169_s28 + $0x30] sm:$0xff]  ;;  %s712_s7 = sshll.u32 %s1314_s21, 2 }
  0x36   : > { %v215_v15 = vld [vmem:[%s1169_s28 + $0xa8] sm:$0xff]  ;;  %932 = vmatprep.mubr.msk.bf16.mxu1 %vm265_vm0, %v234_v9  ;;  %v228_v18 = vpack.c.bf16 %v199_v13, %v198_v12  ;;  %v201_v21 = vld [vmem:[%s1169_s28 + $0x38] sm:$0xff]  ;;  %v216_v22 = vld [vmem:[%s1169_s28 + $0xb0] sm:$0xff]  ;;  %s1245_s8 = scalar_lea.vmem %s1305_s3, %s712_s7 }
  0x37   : > { %915 = vmatpush3.bf16.msra.mxu0 %v994_v1  ;;  %951 = vmatpush3.bf16.msra.mxu1 %v994_v1  ;;  %v236_v19 = vpack.c.bf16 %v215_v15, %v214_v14  ;;  %v217_v23 = vld [vmem:[%s1169_s28 + $0xb8] sm:$0xff]  ;;  %v202_v24 = vld [vmem:[%s1169_s28 + $0x40] sm:$0xff]  ;;  %v203_v25 = vld [vmem:[%s1169_s28 + $0x48] sm:$0xff]  ;;  %v229_v28 = vpack.c.bf16 %v201_v21, %v200_v20 }
  0x38   : > { %v218_v26 = vld [vmem:[%s1169_s28 + $0xc0] sm:$0xff]  ;;  %v219_v27 = vld [vmem:[%s1169_s28 + $0xc8] sm:$0xff]  ;;  %v237_v29 = vpack.c.bf16 %v217_v23, %v216_v22  ;;  %v230_v30 = vpack.c.bf16 %v203_v25, %v202_v24  ;;  %v204_v32 = vld [vmem:[%s1169_s28 + $0x50] sm:$0xff] }
  0x39   : > { %v238_v31 = vpack.c.bf16 %v219_v27, %v218_v26  ;;  %v205_v33 = vld [vmem:[%s1169_s28 + $0x58] sm:$0xff]  ;;  %v220_v34 = vld [vmem:[%s1169_s28 + $0xd0] sm:$0xff]  ;;  %v206_v36 = vld [vmem:[%s1169_s28 + $0x60] sm:$0xff] }
  0x3a   : > { %917 = vmatmul.mubr.msk.bf16.vlgmr.msra.gmra.mrb[0].mxu0 %vm265_vm0, %v227_v16  ;;  %933 = vmatmul.mubr.msk.bf16.vlgmr.msra.gmra.mrb[0].mxu1 %vm265_vm0, %v235_v17  ;;  %v221_v35 = vld [vmem:[%s1169_s28 + $0xd8] sm:$0xff]  ;;  %v207_v37 = vld [vmem:[%s1169_s28 + $0x68] sm:$0xff]  ;;  %v222_v38 = vld [vmem:[%s1169_s28 + $0xe0] sm:$0xff]  ;;  %v231_v40 = vpack.c.bf16 %v205_v33, %v204_v32 }
  0x3b   : > { %920 = vmatprep.mubr.msk.bf16.mxu0 %vm265_vm0, %v228_v18  ;;  %936 = vmatprep.mubr.msk.bf16.mxu1 %vm265_vm0, %v236_v19  ;;  %v223_v39 = vld [vmem:[%s1169_s28 + $0xe8] sm:$0xff]  ;;  %v239_v41 = vpack.c.bf16 %v221_v35, %v220_v34  ;;  %v232_v42 = vpack.c.bf16 %v207_v37, %v206_v36  ;;  %v208_v44 = vld [vmem:[%s1169_s28 + $0x70] sm:$0xff]  ;;  %v209_v45 = vld [vmem:[%s1169_s28 + $0x78] sm:$0xff] }
  0x3c   : > { %v240_v43 = vpack.c.bf16 %v223_v39, %v222_v38  ;;  %v224_v46 = vld [vmem:[%s1169_s28 + $0xf0] sm:$0xff]  ;;  %v225_v47 = vld [vmem:[%s1169_s28 + $0xf8] sm:$0xff]  ;;  %v233_v48 = vpack.c.bf16 %v209_v45, %v208_v44  ;;  %v1234_v51 = vld [vmem:[%s1304_s2] ss:$0 sm:$0xff] }
  0x3d   : > { %v241_v49 = vpack.c.bf16 %v225_v47, %v224_v46 }
  0x42   : > { %921 = vmatmul.mubr.msk.bf16.gmra.mrb[4].mxu0 %vm265_vm0, %v229_v28  ;;  %937 = vmatmul.mubr.msk.bf16.gmra.mrb[4].mxu1 %vm265_vm0, %v237_v29 }
  0x43   : > { %924 = vmatprep.mubr.msk.bf16.mxu0 %vm265_vm0, %v230_v30  ;;  %940 = vmatprep.mubr.msk.bf16.mxu1 %vm265_vm0, %v238_v31 }
  0x4a   : > { %925 = vmatmul.mubr.msk.bf16.gmra.mrb[8].mxu0 %vm265_vm0, %v231_v40  ;;  %941 = vmatmul.mubr.msk.bf16.gmra.mrb[8].mxu1 %vm265_vm0, %v239_v41 }
  0x4b   : > { %928 = vmatprep.mubr.msk.bf16.mxu0 %vm265_vm0, %v232_v42  ;;  %944 = vmatprep.mubr.msk.bf16.mxu1 %vm265_vm0, %v240_v43 }
  0x52   : > { %929 = vmatmul.mubr.msk.bf16.gmra.mrb[12].mxu0 %vm265_vm0, %v233_v48  ;;  %945 = vmatmul.mubr.msk.bf16.gmra.mrb[12].mxu1 %vm265_vm0, %v241_v49 }
 0x10d   : > { %v918_v50 = vpop.f32.mrb[0].mxu0  ;;  %v934_v52 = vpop.f32.mrb[0].mxu1 }
 0x10e   : > { %v348_v53 = vpop.f32.mrb[1].mxu0  ;;  %v412_v54 = vpop.f32.mrb[1].mxu1  ;;  %v357_v57 = vadd.f32 %v918_v50, %v1234_v51  ;;  %v421_v58 = vadd.f32 %v934_v52, %v1234_v51 }
 0x10f   : > { %v919_v55 = vpop.f32.mrb[2].mxu0  ;;  %v935_v56 = vpop.f32.mrb[2].mxu1  ;;  %v349_v63 = vadd.f32 %v1234_v51, %v348_v53  ;;  %v413_v0 = vadd.f32 %v1234_v51, %v412_v54 }
 0x110   : > { %v360_v59 = vadd.f32 %v919_v55, %v1234_v51  ;;  %v424_v60 = vadd.f32 %v935_v56, %v1234_v51  ;;  %v351_v61 = vpop.f32.mrb[3].mxu0  ;;  %v415_v62 = vpop.f32.mrb[3].mxu1 }
 0x111   : > { %v352_v1 = vadd.f32 %v1234_v51, %v351_v61  ;;  %v416_v2 = vadd.f32 %v1234_v51, %v415_v62 }
 0x112   : > { %v807_v3 = vpack.c.bf16 %v360_v59, %v357_v57  ;;  %v847_v4 = vpack.c.bf16 %v424_v60, %v421_v58 }
 0x113   : > { %v802_v5 = vpack.c.bf16 %v352_v1, %v349_v63  ;;  %v842_v6 = vpack.c.bf16 %v416_v2, %v413_v0 }
 0x114   : > { %879 = vst [vmem:[%s1245_s8 + $0x8] sm:$0xff] %v807_v3   ;;  %887 = vst [vmem:[%s1245_s8 + $0x48] sm:$0xff] %v847_v4  }
 0x115   : > { %803 = vst [vmem:[%s1245_s8] sm:$0xff] %v802_v5   ;;  %886 = vst [vmem:[%s1245_s8 + $0x40] sm:$0xff] %v842_v6   ;;  %v922_v7 = vpop.f32.mrb[4].mxu0  ;;  %v938_v8 = vpop.f32.mrb[4].mxu1 }
 0x116   : > { %v364_v9 = vpop.f32.mrb[5].mxu0  ;;  %v428_v10 = vpop.f32.mrb[5].mxu1  ;;  %v373_v13 = vadd.f32 %v922_v7, %v1234_v51  ;;  %v437_v14 = vadd.f32 %v938_v8, %v1234_v51 }
 0x117   : > { %v923_v11 = vpop.f32.mrb[6].mxu0  ;;  %v939_v12 = vpop.f32.mrb[6].mxu1  ;;  %v365_v19 = vadd.f32 %v1234_v51, %v364_v9  ;;  %v429_v20 = vadd.f32 %v1234_v51, %v428_v10 }
 0x118   : > { %v376_v15 = vadd.f32 %v923_v11, %v1234_v51  ;;  %v440_v16 = vadd.f32 %v939_v12, %v1234_v51  ;;  %v367_v17 = vpop.f32.mrb[7].mxu0  ;;  %v431_v18 = vpop.f32.mrb[7].mxu1 }
 0x119   : > { %v368_v21 = vadd.f32 %v1234_v51, %v367_v17  ;;  %v432_v22 = vadd.f32 %v1234_v51, %v431_v18 }
 0x11a   : > { %v817_v23 = vpack.c.bf16 %v376_v15, %v373_v13  ;;  %v857_v24 = vpack.c.bf16 %v440_v16, %v437_v14 }
 0x11b   : > { %v812_v25 = vpack.c.bf16 %v368_v21, %v365_v19  ;;  %v852_v26 = vpack.c.bf16 %v432_v22, %v429_v20 }
 0x11c   : > { %881 = vst [vmem:[%s1245_s8 + $0x18] sm:$0xff] %v817_v23   ;;  %889 = vst [vmem:[%s1245_s8 + $0x58] sm:$0xff] %v857_v24  }
 0x11d   : > { %880 = vst [vmem:[%s1245_s8 + $0x10] sm:$0xff] %v812_v25   ;;  %888 = vst [vmem:[%s1245_s8 + $0x50] sm:$0xff] %v852_v26   ;;  %v926_v27 = vpop.f32.mrb[8].mxu0  ;;  %v942_v28 = vpop.f32.mrb[8].mxu1 }
 0x11e   : > { %v380_v29 = vpop.f32.mrb[9].mxu0  ;;  %v444_v30 = vpop.f32.mrb[9].mxu1  ;;  %v389_v33 = vadd.f32 %v926_v27, %v1234_v51  ;;  %v453_v34 = vadd.f32 %v942_v28, %v1234_v51 }
 0x11f   : > { %v927_v31 = vpop.f32.mrb[10].mxu0  ;;  %v943_v32 = vpop.f32.mrb[10].mxu1  ;;  %v381_v39 = vadd.f32 %v1234_v51, %v380_v29  ;;  %v445_v40 = vadd.f32 %v1234_v51, %v444_v30 }
 0x120   : > { %v392_v35 = vadd.f32 %v927_v31, %v1234_v51  ;;  %v456_v36 = vadd.f32 %v943_v32, %v1234_v51  ;;  %v383_v37 = vpop.f32.mrb[11].mxu0  ;;  %v447_v38 = vpop.f32.mrb[11].mxu1 }
 0x121   : > { %v384_v41 = vadd.f32 %v1234_v51, %v383_v37  ;;  %v448_v42 = vadd.f32 %v1234_v51, %v447_v38 }
 0x122   : > { %v827_v43 = vpack.c.bf16 %v392_v35, %v389_v33  ;;  %v867_v44 = vpack.c.bf16 %v456_v36, %v453_v34 }
 0x123   : > { %v822_v45 = vpack.c.bf16 %v384_v41, %v381_v39  ;;  %v862_v46 = vpack.c.bf16 %v448_v42, %v445_v40 }
 0x124   : > { %883 = vst [vmem:[%s1245_s8 + $0x28] sm:$0xff] %v827_v43   ;;  %891 = vst [vmem:[%s1245_s8 + $0x68] sm:$0xff] %v867_v44  }
 0x125   : > { %882 = vst [vmem:[%s1245_s8 + $0x20] sm:$0xff] %v822_v45   ;;  %890 = vst [vmem:[%s1245_s8 + $0x60] sm:$0xff] %v862_v46   ;;  %v930_v47 = vpop.f32.mrb[12].mxu0  ;;  %v946_v48 = vpop.f32.mrb[12].mxu1 }
 0x126   : > { %v396_v49 = vpop.f32.mrb[13].mxu0  ;;  %v460_v50 = vpop.f32.mrb[13].mxu1  ;;  %v405_v54 = vadd.f32 %v930_v47, %v1234_v51  ;;  %v469_v55 = vadd.f32 %v946_v48, %v1234_v51 }
 0x127   : > { %v931_v52 = vpop.f32.mrb[14].mxu0  ;;  %v947_v53 = vpop.f32.mrb[14].mxu1  ;;  %v397_v60 = vadd.f32 %v1234_v51, %v396_v49  ;;  %v461_v61 = vadd.f32 %v1234_v51, %v460_v50 }
 0x128   : > { %v408_v56 = vadd.f32 %v931_v52, %v1234_v51  ;;  %v472_v57 = vadd.f32 %v947_v53, %v1234_v51  ;;  %v399_v58 = vpop.f32.mrb[15].mxu0  ;;  %v463_v59 = vpop.f32.mrb[15].mxu1 }
 0x129   : > { %v400_v62 = vadd.f32 %v1234_v51, %v399_v58  ;;  %v464_v63 = vadd.f32 %v1234_v51, %v463_v59 }
 0x12a   : > { %v837_v0 = vpack.c.bf16 %v408_v56, %v405_v54  ;;  %v877_v1 = vpack.c.bf16 %v472_v57, %v469_v55 }
 0x12b   : > { %v832_v2 = vpack.c.bf16 %v400_v62, %v397_v60  ;;  %v872_v3 = vpack.c.bf16 %v464_v63, %v461_v61 }
 0x12c   : > { %885 = vst [vmem:[%s1245_s8 + $0x38] sm:$0xff] %v837_v0   ;;  %893 = vst [vmem:[%s1245_s8 + $0x78] sm:$0xff] %v877_v1  }
 0x12d   : > { %884 = vst [vmem:[%s1245_s8 + $0x30] sm:$0xff] %v832_v2   ;;  %892 = vst [vmem:[%s1245_s8 + $0x70] sm:$0xff] %v872_v3  }
 0x12e PF: > { %p13_p8 = scmp.ge.s32.totalorder %s1104_s17, 4   ;;  %s1309_s12 = smov %s1051_s13 }
 0x12f   : > { %s1310_s13 = smov %s1055_s14  ;;  %s1311_s14 = smov %s1114_s20 }
 0x130   : > { %s1312_s15 = smov %s1104_s17  ;;  %15 = sbr.rel (!%p13_p8) target bundleno = 3 (0x3), region = 72 }
 0x137   :  { %657 = vsyncpa [#allocation3], 1 }
 0x138   :  { %659 = vsyncpa [#allocation3 + $0x1], 1 }

// kernel: attention_forward.5
= control target key start
LH: loop header
LB: loop body
LE: loop exit
PB: predicated region body
PF: predicated region fallthrough
CT: control target
= control target key end

     0   :  { %11 = vsyncpa [#allocation3], 0  ;;  %s3212_s0 = inlined_call_operand.vmem [shape: bf16[2,256,128], index: 0, kind: input, shape index: {}]   ;;  %s3213_s1 = inlined_call_operand.vmem [shape: f32[128,1], index: 1, kind: input, shape index: {}]   ;;  %s3214_s2 = inlined_call_operand.vmem [shape: f32[128,128], index: 2, kind: input, shape index: {}]   ;;  %s3215_s3 = inlined_call_operand.vmem [shape: bf16[128,128], index: 3, kind: input, shape index: {}]   ;;  %s3216_s4 = inlined_call_operand.vmem [shape: bf16[128,32], index: 4, kind: input, shape index: {}]   ;;  %s3217_s5 = inlined_call_operand.vmem [shape: f32[1,32], index: 5, kind: input, shape index: {}]   ;;  %s3218_s6 = inlined_call_operand.hbm [shape: f32[2,256,32], index: 6, kind: output, shape index: {}]  }
   0x1   :  { %13 = vsyncpa [#allocation3 + $0x1], 0  ;;  %s2302_s21 = smov 0   ;;  %s2304_s22 = smov 0  }
   0x2   :  { %s2306_s23 = smov 0   ;;  %s2308_s24 = smov 0  }
   0x3 LB: > { %s2323_s25 = sadd.s32 4294967295, %s2261_s24   ;;  %s1714_s26 = sadd.s32 4294967294, %s2261_s24   ;;  %s2261_s24 = sphi %s2308_s24, %s3241_s24   ;;  %s2257_s23 = sphi %s2306_s23, %s3240_s23   ;;  %s2253_s22 = sphi %s2304_s22, %s3239_s22   ;;  %s2249_s21 = sphi %s2302_s21, %s3238_s21  }
   0x4   : > { %s2327_s27 = sadd.s32 1, %s2261_s24   ;;  %s157_s28 = sadd.s32 1, %s2257_s23 }
   0x5   : > { %s154_s29 = ssub.s32 %s2261_s24, %s2327_s27  ;;  %p167_p0 = scmp.ne.s32.totalorder %s2257_s23, %s2253_s22 }
   0x6   : > { %p155_p1 = scmp.eq.s32.totalorder %s154_s29, 0  ;;  %p168_p2 = scmp.eq.s32.totalorder %s2323_s25, 1 }
   0x7   : > { %p173_p3 = scmp.ne.s32.totalorder %s2253_s22, %s2249_s21  ;;  %p174_p4 = scmp.eq.s32.totalorder %s1714_s26, 1 }
   0x8   : > { %s2338_s30 = scalar_select %p155_p1, %s2257_s23, %s157_s28  }
   0x9   : > { %p2340_p5 = por %p168_p2, %p167_p0  ;;  %p2344_p6 = por %p174_p4, %p173_p3 }
   0xa   : > { %p1717_p7 = scmp.ge.s32.totalorder %s2261_s24, 1  ;;  %p215_p8 = scmp.lt.s32.totalorder %s2261_s24, 3 }
   0xc   : > { %p216_p9 = pnand %p1717_p7, %p215_p8 }
   0xe   : > { %219 = sbr.rel (%p216_p9) target bundleno = 1334 (0x536), region = 44 }
  0x15   : > { %p245_p10 = scmp.lt.s32.totalorder %s2323_s25, 1  ;;  %s242_s20 = sand.u32 1, %s2253_s22   ;;  %vm1605_vm0 = vcmask 261120  }
  0x16   : > { %s1718_s26 = sshll.u32 %s242_s20, 8  ;;  %s2264_s16 = smov [#allocation2]  }
  0x17   : > { %s246_s9 = scalar_select %p245_p10, %s2323_s25, 1 }
  0x18   : > { %s2203_s17 = sshll.u32 %s2264_s16, 4  ;;  %s2204_s17 = int_to_ptr.vmem [resolvable:$false] %s2203_s17 }
  0x19   : > { %s1759_s10 = sshll.u32 %s246_s9, 7  ;;  %s3064_s9 = scalar_lea.vmem [#allocation2], %s1718_s26 }
  0x1a   : > { %s2355_s13 = scalar_lea.vmem %s3212_s0, %s1759_s10  ;;  %s1760_s10 = sshll.u32 %s2323_s25, 12 }
  0x1b   : > { %v2358_v0 = vld [vmem:[%s2355_s13] sm:$0xff]   ;;  %v2361_v1 = vld [vmem:[%s2355_s13 + $0x8] sm:$0xff]   ;;  %v2373_v5 = vld [vmem:[%s2355_s13 + $0x10] sm:$0xff]   ;;  %s1652_s11 = sshll.u32 %s3064_s9, 4  ;;  %s3158_s14 = scalar_lea.hbm %s3218_s6, %s1760_s10  ;;  %s3160_s11 = int_to_ptr.vmem [resolvable:$true] %s1652_s11 }
  0x1c   : > { %v2364_v2 = vunpack.c.l.bf16 %v2358_v0  ;;  %v2367_v3 = vunpack.c.h.bf16 %v2358_v0  ;;  %v2370_v4 = vunpack.c.l.bf16 %v2361_v1  ;;  %v2376_v6 = vunpack.c.h.bf16 %v2361_v1  ;;  %v2388_v11 = vld [vmem:[%s2355_s13 + $0x18] sm:$0xff]   ;;  %v2401_v18 = vld [vmem:[%s2355_s13 + $0x20] sm:$0xff]   ;;  %v2414_v25 = vld [vmem:[%s2355_s13 + $0x28] sm:$0xff]   ;;  %1913 = vmatprep.mubr.bf16.mxu1 %v2358_v0  ;;  %s3171_s25 = scalar_lea.sflag [#allocation3], %s242_s20  ;;  %s2199_s15 = scalar_lea.vmem %s3160_s11, 4096 }
  0x1d   : > { %v2383_v9 = vunpack.c.l.bf16 %v2373_v5  ;;  %v2391_v12 = vunpack.c.h.bf16 %v2373_v5  ;;  %v2396_v15 = vunpack.c.l.bf16 %v2388_v11  ;;  %v2404_v19 = vunpack.c.h.bf16 %v2388_v11  ;;  %v2427_v32 = vld [vmem:[%s2355_s13 + $0x30] sm:$0xff]   ;;  %v2440_v39 = vld [vmem:[%s2355_s13 + $0x38] sm:$0xff]   ;;  %v2453_v46 = vld [vmem:[%s2355_s13 + $0x40] sm:$0xff]   ;;  %p2200_p11 = scmp.ne.s32.totalorder %s3160_s11, %s2199_s15  ;;  %s2205_s18 = scalar_lea.vmem %s2204_s17, 8192 }
  0x1e   : > { %v315_v7 = vmul.f32 %v2364_v2, %v2364_v2  ;;  %v316_v8 = vmul.f32 %v2367_v3, %v2367_v3  ;;  %v317_v10 = vmul.f32 %v2370_v4, %v2370_v4  ;;  %v318_v13 = vmul.f32 %v2376_v6, %v2376_v6  ;;  %v2466_v53 = vld [vmem:[%s2355_s13 + $0x48] sm:$0xff]   ;;  %v2479_v60 = vld [vmem:[%s2355_s13 + $0x50] sm:$0xff]   ;;  %v686_v0 = vld [vmem:[%s3214_s2 + $0x58] sm:$0xff]  ;;  %p2206_p0 = scmp.lt.s32.totalorder %s3160_s11, %s2204_s17  ;;  %p2207_p1 = scmp.lt.s32.totalorder %s2205_s18, %s2199_s15 }
  0x1f   : > { %v319_v16 = vmul.f32 %v2383_v9, %v2383_v9  ;;  %v320_v20 = vmul.f32 %v2391_v12, %v2391_v12  ;;  %v2409_v22 = vunpack.c.l.bf16 %v2401_v18  ;;  %v321_v23 = vmul.f32 %v2396_v15, %v2396_v15  ;;  %p2201_p12 = pnand %p2200_p11, %p2340_p5 }
  0x20   : > { %v347_v14 = vadd.f32 %v316_v8, %v315_v7  ;;  %v2417_v26 = vunpack.c.h.bf16 %v2401_v18  ;;  %v322_v27 = vmul.f32 %v2404_v19, %v2404_v19  ;;  %v2422_v29 = vunpack.c.l.bf16 %v2414_v25  ;;  %p2208_p2 = por %p2207_p1, %p2206_p0 }
  0x21   : > { %v323_v30 = vmul.f32 %v2409_v22, %v2409_v22  ;;  %v2430_v33 = vunpack.c.h.bf16 %v2414_v25  ;;  %v2435_v36 = vunpack.c.l.bf16 %v2427_v32  ;;  %v2443_v40 = vunpack.c.h.bf16 %v2427_v32  ;;  %p2202_p13 = pneg %p2201_p12 }
  0x22   : > { %v348_v17 = vadd.f32 %v347_v14, %v317_v10  ;;  %v324_v34 = vmul.f32 %v2417_v26, %v2417_v26  ;;  %v325_v37 = vmul.f32 %v2422_v29, %v2422_v29  ;;  %v2448_v43 = vunpack.c.l.bf16 %v2440_v39 }
  0x23   : > { %v326_v41 = vmul.f32 %v2430_v33, %v2430_v33  ;;  %v327_v44 = vmul.f32 %v2435_v36, %v2435_v36  ;;  %v2456_v47 = vunpack.c.h.bf16 %v2440_v39  ;;  %v328_v48 = vmul.f32 %v2443_v40, %v2443_v40  ;;  %p2209_p3 = pnand %p2208_p2, %p2202_p13 }
  0x24   : > { %v349_v21 = vadd.f32 %v348_v17, %v318_v13  ;;  %v2461_v50 = vunpack.c.l.bf16 %v2453_v46  ;;  %v329_v51 = vmul.f32 %v2448_v43, %v2448_v43  ;;  %v2469_v54 = vunpack.c.h.bf16 %v2453_v46  ;;  %v2492_v13 = vld [vmem:[%s2355_s13 + $0x58] sm:$0xff]  }
  0x25   : > { %v330_v55 = vmul.f32 %v2456_v47, %v2456_v47  ;;  %v2474_v57 = vunpack.c.l.bf16 %v2466_v53  ;;  %v2482_v61 = vunpack.c.h.bf16 %v2466_v53  ;;  %v2487_v7 = vunpack.c.l.bf16 %v2479_v60 }
  0x26   : > { %v350_v24 = vadd.f32 %v349_v21, %v319_v16  ;;  %v331_v58 = vmul.f32 %v2461_v50, %v2461_v50  ;;  %v332_v62 = vmul.f32 %v2469_v54, %v2469_v54  ;;  %v2495_v14 = vunpack.c.h.bf16 %v2479_v60 }
  0x27   : > { %v333_v8 = vmul.f32 %v2474_v57, %v2474_v57  ;;  %v334_v16 = vmul.f32 %v2482_v61, %v2482_v61  ;;  %v335_v21 = vmul.f32 %v2487_v7, %v2487_v7 }
  0x28   : > { %v351_v28 = vadd.f32 %v350_v24, %v320_v20  ;;  %v2500_v20 = vunpack.c.l.bf16 %v2492_v13  ;;  %v2505_v24 = vld [vmem:[%s2355_s13 + $0x60] sm:$0xff]  }
  0x2a   : > { %v352_v31 = vadd.f32 %v351_v28, %v321_v23  ;;  %v336_v28 = vmul.f32 %v2495_v14, %v2495_v14 }
  0x2c   : > { %v353_v35 = vadd.f32 %v352_v31, %v322_v27  ;;  %v2508_v27 = vunpack.c.h.bf16 %v2492_v13  ;;  %v2513_v31 = vunpack.c.l.bf16 %v2505_v24 }
  0x2e   : > { %v354_v38 = vadd.f32 %v353_v35, %v323_v30 }
  0x30   : > { %v355_v42 = vadd.f32 %v354_v38, %v324_v34  ;;  %v337_v34 = vmul.f32 %v2500_v20, %v2500_v20  ;;  %v2521_v38 = vunpack.c.h.bf16 %v2505_v24 }
  0x32   : > { %v356_v45 = vadd.f32 %v355_v42, %v325_v37  ;;  %v2518_v37 = vld [vmem:[%s2355_s13 + $0x68] sm:$0xff]  }
  0x33   : > { %3224 = vst [vmem:[#allocation5_spill] sm:$0xff] %v2518_v37 }
  0x34   : > { %v357_v49 = vadd.f32 %v356_v45, %v326_v41  ;;  %v338_v41 = vmul.f32 %v2508_v27, %v2508_v27  ;;  %v339_v45 = vmul.f32 %v2513_v31, %v2513_v31 }
  0x36   : > { %v358_v52 = vadd.f32 %v357_v49, %v327_v44  ;;  %v2526_v44 = vunpack.c.l.bf16 %v2518_v37  ;;  %v2531_v49 = vld [vmem:[%s2355_s13 + $0x70] sm:$0xff]  }
  0x37   : > { %3225 = vst [vmem:[#allocation6_spill] sm:$0xff] %v2531_v49 }
  0x38   : > { %v359_v56 = vadd.f32 %v358_v52, %v328_v48  ;;  %v340_v52 = vmul.f32 %v2521_v38, %v2521_v38 }
  0x3a   : > { %v360_v59 = vadd.f32 %v359_v56, %v329_v51  ;;  %v2534_v51 = vunpack.c.h.bf16 %v2518_v37  ;;  %v2539_v56 = vunpack.c.l.bf16 %v2531_v49 }
  0x3c   : > { %v361_v63 = vadd.f32 %v360_v59, %v330_v55 }
  0x3e   : > { %v362_v10 = vadd.f32 %v361_v63, %v331_v58  ;;  %v341_v58 = vmul.f32 %v2526_v44, %v2526_v44  ;;  %v2547_v63 = vunpack.c.h.bf16 %v2531_v49 }
  0x40   : > { %v363_v17 = vadd.f32 %v362_v10, %v332_v62  ;;  %v2544_v62 = vld [vmem:[%s2355_s13 + $0x78] sm:$0xff]  }
  0x41   : > { %3226 = vst [vmem:[#allocation7_spill] sm:$0xff] %v2544_v62 }
  0x42   : > { %v364_v23 = vadd.f32 %v363_v17, %v333_v8  ;;  %v342_v8 = vmul.f32 %v2534_v51, %v2534_v51  ;;  %v343_v17 = vmul.f32 %v2539_v56, %v2539_v56 }
  0x44   : > { %v365_v30 = vadd.f32 %v364_v23, %v334_v16  ;;  %v2552_v16 = vunpack.c.l.bf16 %v2544_v62  ;;  %v2557_v23 = vunpack.c.h.bf16 %v2544_v62 }
  0x46   : > { %v366_v35 = vadd.f32 %v365_v30, %v335_v21 }
  0x48   : > { %v367_v42 = vadd.f32 %v366_v35, %v336_v28  ;;  %v344_v28 = vmul.f32 %v2547_v63, %v2547_v63 }
  0x4a   : > { %v368_v48 = vadd.f32 %v367_v42, %v337_v34  ;;  %v345_v34 = vmul.f32 %v2552_v16, %v2552_v16 }
  0x4c   : > { %v369_v55 = vadd.f32 %v368_v48, %v338_v41  ;;  %v346_v41 = vmul.f32 %v2557_v23, %v2557_v23 }
  0x4e   : > { %v370_v59 = vadd.f32 %v369_v55, %v339_v45 }
  0x50   : > { %v371_v10 = vadd.f32 %v370_v59, %v340_v52 }
  0x52   : > { %v372_v21 = vadd.f32 %v371_v10, %v341_v58 }
  0x54   : > { %v373_v30 = vadd.f32 %v372_v21, %v342_v8 }
  0x56   : > { %v374_v35 = vadd.f32 %v373_v30, %v343_v17 }
  0x58   : > { %v375_v42 = vadd.f32 %v374_v35, %v344_v28 }
  0x5a   : > { %v376_v45 = vadd.f32 %v375_v42, %v345_v34 }
  0x5c   : > { %v377_v48 = vadd.f32 %v376_v45, %v346_v41 }
  0x5e   : > { %v378_v52 = vrot.slane %v377_v48, 4 }
  0x60   : > { %v379_v55 = vadd.f32 %v378_v52, %v377_v48 }
  0x62   : > { %v380_v58 = vrot.slane %v379_v55, 2 }
  0x64   : > { %v381_v59 = vadd.f32 %v380_v58, %v379_v55 }
  0x66   : > { %v382_v10 = vrot.slane %v381_v59, 1 }
  0x68   : > { %v383_v62 = vadd.f32 %v382_v10, %v381_v59 }
  0x6a   : > { %v384_v49 = vmax.f32 %v383_v62, 1e-24 }
  0x6c   : > { %2133 = vrsqrt.f32 %v384_v49 }
  0x76   : > { %v2565_v37 = vpop.eup %2133 }
  0x77   : > { %v402_v8 = vmul.f32 %v2565_v37, %v2461_v50  ;;  %v403_v17 = vmul.f32 %v2565_v37, %v2469_v54  ;;  %v386_v21 = vmul.f32 %v2565_v37, %v2364_v2  ;;  %v387_v28 = vmul.f32 %v2565_v37, %v2367_v3 }
  0x78   : > { %v404_v30 = vmul.f32 %v2565_v37, %v2474_v57  ;;  %v405_v49 = vmul.f32 %v2565_v37, %v2482_v61  ;;  %v388_v62 = vmul.f32 %v2565_v37, %v2370_v4  ;;  %v389_v50 = vmul.f32 %v2565_v37, %v2376_v6 }
  0x79   : > { %v426_v34 = vpack.c.bf16 %v403_v17, %v402_v8  ;;  %v418_v54 = vpack.c.bf16 %v387_v28, %v386_v21  ;;  %v406_v2 = vmul.f32 %v2565_v37, %v2487_v7  ;;  %v407_v3 = vmul.f32 %v2565_v37, %v2495_v14  ;;  %v567_v21 = vld [vmem:[%s3213_s1 + $0x20] sm:$0xff]  ;;  %v568_v28 = vld [vmem:[%s3213_s1 + $0x28] sm:$0xff] }
  0x7a   : > { %v427_v35 = vpack.c.bf16 %v405_v49, %v404_v30  ;;  %v419_v57 = vpack.c.bf16 %v389_v50, %v388_v62  ;;  %v390_v61 = vmul.f32 %v2565_v37, %v2383_v9  ;;  %v391_v4 = vmul.f32 %v2565_v37, %v2391_v12  ;;  %v569_v30 = vld [vmem:[%s3213_s1 + $0x30] sm:$0xff]  ;;  %v570_v49 = vld [vmem:[%s3213_s1 + $0x38] sm:$0xff]  ;;  %v571_v62 = vld [vmem:[%s3213_s1 + $0x40] sm:$0xff] }
  0x7b   : > { %450 = vxpose.xlu0.c.b16.start [1/8] %v426_v34, 128  ;;  %434 = vxpose.xlu1.c.b16.start [1/8] %v418_v54, 128  ;;  %v428_v6 = vpack.c.bf16 %v407_v3, %v406_v2  ;;  %v408_v41 = vmul.f32 %v2565_v37, %v2500_v20  ;;  %v409_v7 = vmul.f32 %v2565_v37, %v2508_v27  ;;  %v572_v50 = vld [vmem:[%s3213_s1 + $0x48] sm:$0xff]  ;;  %v577_v3 = vld [vmem:[%s3213_s1 + $0x70] sm:$0xff] }
  0x7c   : > { %1761 = vmatprep.subr.bf16.mxu0 %v426_v34  ;;  %v420_v14 = vpack.c.bf16 %v391_v4, %v390_v61  ;;  %v392_v42 = vmul.f32 %v2565_v37, %v2396_v15  ;;  %v393_v9 = vmul.f32 %v2565_v37, %v2404_v19  ;;  %v410_v45 = vmul.f32 %v2565_v37, %v2513_v31  ;;  %v573_v34 = vld [vmem:[%s3213_s1 + $0x50] sm:$0xff]  ;;  %v576_v2 = vld [vmem:[%s3213_s1 + $0x68] sm:$0xff] }
  0x7d   : > { %1762 = vmatpush3.bf16.msra.mxu0 %v418_v54  ;;  %v429_v12 = vpack.c.bf16 %v409_v7, %v408_v41  ;;  %v411_v20 = vmul.f32 %v2565_v37, %v2521_v38  ;;  %v394_v48 = vmul.f32 %v2565_v37, %v2409_v22  ;;  %v395_v15 = vmul.f32 %v2565_v37, %v2417_v26  ;;  %v574_v54 = vld [vmem:[%s3213_s1 + $0x58] sm:$0xff] }
  0x7e   : > { %1763 = vmatprep.subr.bf16.mxu0 %v427_v35  ;;  %v421_v27 = vpack.c.bf16 %v393_v9, %v392_v42  ;;  %v412_v19 = vmul.f32 %v2565_v37, %v2526_v44  ;;  %v413_v31 = vmul.f32 %v2565_v37, %v2534_v51  ;;  %v396_v38 = vmul.f32 %v2565_v37, %v2422_v29 }
  0x7f   : > { %451 = vxpose.xlu0.c.b16.cont [2/8] %v427_v35, 128  ;;  %435 = vxpose.xlu1.c.b16.cont [2/8] %v419_v57, 128  ;;  %v430_v52 = vpack.c.bf16 %v411_v20, %v410_v45  ;;  %v422_v55 = vpack.c.bf16 %v395_v15, %v394_v48  ;;  %v397_v22 = vmul.f32 %v2565_v37, %v2430_v33  ;;  %v575_v35 = vld [vmem:[%s3213_s1 + $0x60] sm:$0xff] }
  0x80   : > { %v431_v26 = vpack.c.bf16 %v413_v31, %v412_v19  ;;  %v414_v58 = vmul.f32 %v2565_v37, %v2539_v56  ;;  %v415_v44 = vmul.f32 %v2565_v37, %v2547_v63  ;;  %v398_v51 = vmul.f32 %v2565_v37, %v2435_v36 }
  0x81   : > { %1764 = vmatpush3.bf16.msra.mxu0 %v419_v57  ;;  %v423_v29 = vpack.c.bf16 %v397_v22, %v396_v38  ;;  %v399_v59 = vmul.f32 %v2565_v37, %v2443_v40  ;;  %v416_v10 = vmul.f32 %v2565_v37, %v2552_v16  ;;  %v417_v56 = vmul.f32 %v2565_v37, %v2557_v23  ;;  %v564_v16 = vld [vmem:[%s3213_s1 + $0x8] sm:$0xff]  ;;  %v578_v57 = vld [vmem:[%s3213_s1 + $0x78] sm:$0xff]  ;;  %v2085_v38 = vld [vmem:[%s3215_s3] sm:$0xff]  }
  0x82   : > { %1765 = vmatprep.subr.bf16.mxu0 %v428_v6  ;;  %v432_v33 = vpack.c.bf16 %v415_v44, %v414_v58  ;;  %v400_v8 = vmul.f32 %v2565_v37, %v2448_v43  ;;  %v401_v36 = vmul.f32 %v2565_v37, %v2456_v47  ;;  %v2263_v23 = vmov 0   ;;  %v565_v43 = vld [vmem:[%s3213_s1 + $0x10] sm:$0xff]  ;;  %v563_v47 = vld [vmem:[%s3213_s1] sm:$0xff]  ;;  %v566_v37 = vld [vmem:[%s3213_s1 + $0x18] sm:$0xff]  ;;  %1897 = vmatprep.subr.bf16.mxu1 %v2085_v38 }
  0x83   : > { %452 = vxpose.xlu0.c.b16.cont [3/8] %v428_v6, 128  ;;  %436 = vxpose.xlu1.c.b16.cont [3/8] %v420_v14, 128  ;;  %v424_v63 = vpack.c.bf16 %v399_v59, %v398_v51  ;;  %v433_v40 = vpack.c.bf16 %v417_v56, %v416_v10 }
  0x84   : > { %v425_v17 = vpack.c.bf16 %v401_v36, %v400_v8  ;;  %1898 = vmatpush3.bf16.msra.mxu1 %v2085_v38 }
  0x85   : > { %1766 = vmatpush3.bf16.msra.mxu0 %v420_v14 }
  0x86   : > { %1767 = vmatprep.subr.bf16.mxu0 %v429_v12 }
  0x87   : > { %453 = vxpose.xlu0.c.b16.cont [4/8] %v429_v12, 128  ;;  %437 = vxpose.xlu1.c.b16.cont [4/8] %v421_v27, 128 }
  0x89   : > { %1768 = vmatpush3.bf16.msra.mxu0 %v421_v27 }
  0x8a   : > { %1769 = vmatprep.subr.bf16.mxu0 %v430_v52 }
  0x8b   : > { %454 = vxpose.xlu0.c.b16.cont [5/8] %v430_v52, 128  ;;  %438 = vxpose.xlu1.c.b16.cont [5/8] %v422_v55, 128  ;;  %v2086_v52 = vld [vmem:[%s3215_s3 + $0x8] sm:$0xff]  }
  0x8c   : > { %1899 = vmatprep.subr.bf16.mxu1 %v2086_v52 }
  0x8d   : > { %1770 = vmatpush3.bf16.msra.mxu0 %v422_v55  ;;  %v2087_v55 = vld [vmem:[%s3215_s3 + $0x10] sm:$0xff]   ;;  %1900 = vmatpush3.bf16.msra.mxu1 %v2086_v52 }
  0x8e   : > { %1771 = vmatprep.subr.bf16.mxu0 %v431_v26  ;;  %1901 = vmatprep.subr.bf16.mxu1 %v2087_v55 }
  0x8f   : > { %455 = vxpose.xlu0.c.b16.cont [6/8] %v431_v26, 128  ;;  %439 = vxpose.xlu1.c.b16.cont [6/8] %v423_v29, 128 }
  0x91   : > { %1772 = vmatpush3.bf16.msra.mxu0 %v423_v29  ;;  %1902 = vmatpush3.bf16.msra.mxu1 %v2087_v55  ;;  %v681_v55 = vld [vmem:[%s3214_s2 + $0x30] sm:$0xff] }
  0x92   : > { %1773 = vmatprep.subr.bf16.mxu0 %v432_v33 }
  0x93   : > { %456 = vxpose.xlu0.c.b16.cont [7/8] %v432_v33, 128  ;;  %440 = vxpose.xlu1.c.b16.cont [7/8] %v424_v63, 128  ;;  %v675_v33 = vld [vmem:[%s3214_s2] sm:$0xff] }
  0x95   : > { %1774 = vmatpush3.bf16.msra.mxu0 %v424_v63  ;;  %v676_v63 = vld [vmem:[%s3214_s2 + $0x8] sm:$0xff] }
  0x96   : > { %1775 = vmatprep.subr.bf16.mxu0 %v433_v40 }
  0x97   : > { %457 = vxpose.xlu0.c.b16.end [8/8] %v433_v40, 128  ;;  %441 = vxpose.xlu1.c.b16.end [8/8] %v425_v17, 128 }
  0x99   : > { %1776 = vmatpush3.bf16.msra.mxu0 %v425_v17 }
  0x9b   : > { %2084 = vset.pattern.permute.xlu1 %v2263_v23 }
  0x9c   : > { %586 = vperm.xlu1 %2084, %v564_v16  }
  0xa0   : > { %2083 = vset.pattern.permute.xlu0 %v2263_v23  ;;  %591 = vperm.xlu1 %2084, %v565_v43  }
  0xa1   : > { %581 = vperm.xlu0 %2083, %v563_v47  }
  0xa4   : > { %596 = vperm.xlu1 %2084, %v566_v37  }
  0xa5   : > { %601 = vperm.xlu0 %2083, %v567_v21   ;;  %v677_v21 = vld [vmem:[%s3214_s2 + $0x10] sm:$0xff] }
  0xa8   : > { %606 = vperm.xlu1 %2084, %v568_v28  }
  0xa9   : > { %611 = vperm.xlu0 %2083, %v569_v30  }
  0xac   : > { %616 = vperm.xlu1 %2084, %v570_v49  }
  0xad   : > { %621 = vperm.xlu0 %2083, %v571_v62  }
  0xb0   : > { %626 = vperm.xlu1 %2084, %v572_v50  }
  0xb1   : > { %631 = vperm.xlu0 %2083, %v573_v34   ;;  %v678_v34 = vld [vmem:[%s3214_s2 + $0x18] sm:$0xff] }
  0xb4   : > { %636 = vperm.xlu1 %2084, %v574_v54  }
  0xb5   : > { %641 = vperm.xlu0 %2083, %v575_v35  }
  0xb8   : > { %646 = vperm.xlu1 %2084, %v576_v2  }
  0xb9   : > { %651 = vperm.xlu0 %2083, %v577_v3  }
  0xbc   : > { %656 = vperm.xlu1 %2084, %v578_v57  }
  0xe1   : > { %v458_v61 = vpop.trf.xlu0  ;;  %v442_v4 = vpop.trf.xlu1 }
  0xe2   : > { %498 = vmatprep.mubr.bf16.mxu0 %v458_v61 }
  0xe3   : > { %499 = vmatmul.mubr.bf16.vlgmr.msra.gmra.mrb[0].mxu0 %v442_v4 }
  0xe5   : > { %v459_v6 = vpop.trf.xlu0  ;;  %v443_v41 = vpop.trf.xlu1 }
  0xe6   : > { %506 = vmatprep.mubr.bf16.mxu0 %v459_v6  ;;  %v679_v6 = vld [vmem:[%s3214_s2 + $0x20] sm:$0xff] }
  0xe9   : > { %v460_v7 = vpop.trf.xlu0  ;;  %v444_v14 = vpop.trf.xlu1 }
  0xeb   : > { %507 = vmatmul.mubr.bf16.gmra.mrb[4].mxu0 %v443_v41  ;;  %v2088_v41 = vld [vmem:[%s3215_s3 + $0x18] sm:$0xff]  }
  0xec   : > { %514 = vmatprep.mubr.bf16.mxu0 %v460_v7  ;;  %1903 = vmatprep.subr.bf16.mxu1 %v2088_v41 }
  0xed   : > { %v461_v42 = vpop.trf.xlu0  ;;  %v445_v9 = vpop.trf.xlu1  ;;  %1904 = vmatpush3.bf16.msra.mxu1 %v2088_v41 }
  0xf1   : > { %v462_v12 = vpop.trf.xlu0  ;;  %v446_v45 = vpop.trf.xlu1 }
  0xf3   : > { %515 = vmatmul.mubr.bf16.gmra.mrb[8].mxu0 %v444_v14 }
  0xf4   : > { %522 = vmatprep.mubr.bf16.mxu0 %v461_v42 }
  0xf5   : > { %v463_v20 = vpop.trf.xlu0  ;;  %v447_v27 = vpop.trf.xlu1 }
  0xf9   : > { %v464_v48 = vpop.trf.xlu0  ;;  %v448_v15 = vpop.trf.xlu1 }
  0xfb   : > { %523 = vmatmul.mubr.bf16.gmra.mrb[12].mxu0 %v445_v9  ;;  %v680_v9 = vld [vmem:[%s3214_s2 + $0x28] sm:$0xff] }
  0xfc   : > { %530 = vmatprep.mubr.bf16.mxu0 %v462_v12 }
  0xfd   : > { %v465_v19 = vpop.trf.xlu0  ;;  %v449_v31 = vpop.trf.xlu1 }
 0x103   : > { %531 = vmatmul.mubr.bf16.gmra.mrb[16].mxu0 %v446_v45 }
 0x104   : > { %538 = vmatprep.mubr.bf16.mxu0 %v463_v20  ;;  %v2089_v20 = vld [vmem:[%s3215_s3 + $0x20] sm:$0xff]  }
 0x105   : > { %1905 = vmatprep.subr.bf16.mxu1 %v2089_v20 }
 0x106   : > { %1906 = vmatpush3.bf16.msra.mxu1 %v2089_v20 }
 0x10b   : > { %539 = vmatmul.mubr.bf16.gmra.mrb[20].mxu0 %v447_v27 }
 0x10c   : > { %546 = vmatprep.mubr.bf16.mxu0 %v464_v48 }
 0x113   : > { %547 = vmatmul.mubr.bf16.gmra.mrb[24].mxu0 %v448_v15 }
 0x114   : > { %554 = vmatprep.mubr.bf16.mxu0 %v465_v19 }
 0x11b   : > { %555 = vmatmul.mubr.bf16.gmra.mrb[28].mxu0 %v449_v31  ;;  %v587_v26 = vpop.permute.xlu1 %586 }
 0x11f   : > { %v592_v40 = vpop.permute.xlu1 %591 }
 0x120   : > { %v582_v51 = vpop.permute.xlu0 %581 }
 0x123   : > { %v597_v49 = vpop.permute.xlu1 %596 }
 0x124   : > { %v602_v61 = vpop.permute.xlu0 %601 }
 0x127   : > { %v607_v42 = vpop.permute.xlu1 %606 }
 0x128   : > { %v612_v38 = vpop.permute.xlu0 %611 }
 0x1b6   : > { %v1777_v22 = vpop.f32.mrb[0].mxu0 }
 0x1b7   : > { %v1778_v58 = vpop.f32.mrb[1].mxu0 }
 0x1b8   : > { %v1779_v44 = vadd.f32 %v1778_v58, %v1777_v22  ;;  %v1780_v29 = vpop.f32.mrb[2].mxu0  ;;  %v2090_v22 = vld [vmem:[%s3215_s3 + $0x28] sm:$0xff]  }
 0x1b9   : > { %v1781_v59 = vpop.f32.mrb[3].mxu0  ;;  %1907 = vmatprep.subr.bf16.mxu1 %v2090_v22 }
 0x1ba   : > { %v659_v10 = vmul.f32 %v1779_v44, %v582_v51  ;;  %v1782_v56 = vadd.f32 %v1781_v59, %v1780_v29  ;;  %v617_v44 = vpop.permute.xlu1 %616  ;;  %v682_v29 = vld [vmem:[%s3214_s2 + $0x38] sm:$0xff]  ;;  %1908 = vmatpush3.bf16.msra.mxu1 %v2090_v22 }
 0x1bc   : > { %v660_v8 = vmul.f32 %v1782_v56, %v587_v26  ;;  %v2694_v36 = vadd.f32 %v675_v33, %v659_v10  ;;  %v2091_v33 = vld [vmem:[%s3215_s3 + $0x30] sm:$0xff]  }
 0x1bd   : > { %1909 = vmatprep.subr.bf16.mxu1 %v2091_v33 }
 0x1be   : > { %v1783_v17 = vpop.f32.mrb[4].mxu0  ;;  %707 = vmax.xlane.f32.xlu0 %v2694_v36  ;;  %v2697_v16 = vadd.f32 %v676_v63, %v660_v8  ;;  %1910 = vmatpush3.bf16.msra.mxu1 %v2091_v33 }
 0x1bf   : > { %v1784_v23 = vpop.f32.mrb[5].mxu0 }
 0x1c0   : > { %v1785_v43 = vadd.f32 %v1784_v23, %v1783_v17  ;;  %v1786_v47 = vpop.f32.mrb[6].mxu0  ;;  %709 = vmax.xlane.f32.xlu1 %v2697_v16  ;;  %v622_v17 = vpop.permute.xlu0 %621 }
 0x1c1   : > { %v1787_v37 = vpop.f32.mrb[7].mxu0 }
 0x1c2   : > { %v661_v28 = vmul.f32 %v1785_v43, %v592_v40  ;;  %v1788_v30 = vadd.f32 %v1787_v37, %v1786_v47  ;;  %v683_v43 = vld [vmem:[%s3214_s2 + $0x40] sm:$0xff]  ;;  %v2092_v47 = vld [vmem:[%s3215_s3 + $0x38] sm:$0xff]  }
 0x1c3   : > { %1911 = vmatprep.subr.bf16.mxu1 %v2092_v47 }
 0x1c4   : > { %v662_v62 = vmul.f32 %v1788_v30, %v597_v49  ;;  %v2703_v50 = vadd.f32 %v677_v21, %v661_v28  ;;  %v627_v28 = vpop.permute.xlu1 %626  ;;  %v684_v30 = vld [vmem:[%s3214_s2 + $0x48] sm:$0xff]  ;;  %1912 = vmatpush3.bf16.msra.mxu1 %v2092_v47 }
 0x1c6   : > { %v1789_v54 = vpop.f32.mrb[8].mxu0  ;;  %711 = vmax.xlane.f32.xlu0 %v2703_v50  ;;  %v2709_v57 = vadd.f32 %v678_v34, %v662_v62 }
 0x1c7   : > { %v1790_v35 = vpop.f32.mrb[9].mxu0  ;;  %1914 = vmatmul.mubr.bf16.vlgmr.msra.gmra.mrb[0].mxu1 %v2361_v1 }
 0x1c8   : > { %v1791_v2 = vadd.f32 %v1790_v35, %v1789_v54  ;;  %v1792_v3 = vpop.f32.mrb[10].mxu0  ;;  %1917 = vmatprep.mubr.bf16.mxu1 %v2373_v5  ;;  %v688_v5 = vld [vmem:[%s3214_s2 + $0x68] sm:$0xff] }
 0x1c9   : > { %v1793_v4 = vpop.f32.mrb[11].mxu0 }
 0x1ca   : > { %v663_v7 = vmul.f32 %v1791_v2, %v602_v61  ;;  %v1794_v14 = vadd.f32 %v1793_v4, %v1792_v3  ;;  %713 = vmax.xlane.f32.xlu0 %v2709_v57  ;;  %v632_v61 = vpop.permute.xlu0 %631 }
 0x1cc   : > { %v664_v12 = vmul.f32 %v1794_v14, %v607_v42  ;;  %v2721_v45 = vadd.f32 %v679_v6, %v663_v7  ;;  %v685_v6 = vld [vmem:[%s3214_s2 + $0x50] sm:$0xff]  ;;  %v637_v14 = vpop.permute.xlu1 %636 }
 0x1ce   : > { %v1795_v27 = vpop.f32.mrb[12].mxu0  ;;  %715 = vmax.xlane.f32.xlu0 %v2721_v45  ;;  %v2727_v48 = vadd.f32 %v680_v9, %v664_v12 }
 0x1cf   : > { %v1796_v15 = vpop.f32.mrb[13].mxu0  ;;  %1918 = vmatmul.mubr.bf16.gmra.mrb[4].mxu1 %v2388_v11 }
 0x1d0   : > { %v1797_v19 = vadd.f32 %v1796_v15, %v1795_v27  ;;  %v1798_v31 = vpop.f32.mrb[14].mxu0  ;;  %717 = vmax.xlane.f32.xlu1 %v2727_v48  ;;  %v647_v22 = vpop.permute.xlu1 %646  ;;  %1921 = vmatprep.mubr.bf16.mxu1 %v2401_v18  ;;  %v690_v18 = vld [vmem:[%s3214_s2 + $0x78] sm:$0xff] }
 0x1d1   : > { %v1799_v52 = vpop.f32.mrb[15].mxu0 }
 0x1d2   : > { %v665_v26 = vmul.f32 %v1797_v19, %v612_v38  ;;  %v1800_v58 = vadd.f32 %v1799_v52, %v1798_v31  ;;  %v642_v19 = vpop.permute.xlu0 %641  ;;  %v687_v38 = vld [vmem:[%s3214_s2 + $0x60] sm:$0xff] }
 0x1d4   : > { %v666_v51 = vmul.f32 %v1800_v58, %v617_v44  ;;  %v2739_v59 = vadd.f32 %v681_v55, %v665_v26 }
 0x1d6   : > { %v1801_v10 = vpop.f32.mrb[16].mxu0  ;;  %719 = vmax.xlane.f32.xlu0 %v2739_v59  ;;  %v2745_v56 = vadd.f32 %v682_v29, %v666_v51 }
 0x1d7   : > { %v1802_v63 = vpop.f32.mrb[17].mxu0  ;;  %1922 = vmatmul.mubr.bf16.gmra.mrb[8].mxu1 %v2414_v25 }
 0x1d8   : > { %v1803_v8 = vadd.f32 %v1802_v63, %v1801_v10  ;;  %v1804_v40 = vpop.f32.mrb[18].mxu0  ;;  %721 = vmax.xlane.f32.xlu1 %v2745_v56  ;;  %v652_v10 = vpop.permute.xlu0 %651  ;;  %1925 = vmatprep.mubr.bf16.mxu1 %v2427_v32 }
 0x1d9   : > { %v1805_v23 = vpop.f32.mrb[19].mxu0 }
 0x1da   : > { %v667_v37 = vmul.f32 %v1803_v8, %v622_v17  ;;  %v1806_v21 = vadd.f32 %v1805_v23, %v1804_v40  ;;  %v689_v8 = vld [vmem:[%s3214_s2 + $0x70] sm:$0xff]  ;;  %v657_v23 = vpop.permute.xlu1 %656 }
 0x1dc   : > { %v668_v49 = vmul.f32 %v1806_v21, %v627_v28  ;;  %v2757_v62 = vadd.f32 %v683_v43, %v667_v37  ;;  %v3227_v37 = vld [vmem:[#allocation5_spill] sm:$0xff]  ;;  %v3228_v21 = vld [vmem:[#allocation6_spill] sm:$0xff]  ;;  %v3229_v28 = vld [vmem:[#allocation7_spill] sm:$0xff] }
 0x1de   : > { %v1807_v34 = vpop.f32.mrb[20].mxu0  ;;  %723 = vmax.xlane.f32.xlu0 %v2757_v62  ;;  %v2760_v54 = vadd.f32 %v684_v30, %v668_v49 }
 0x1df   : > { %v1808_v35 = vpop.f32.mrb[21].mxu0  ;;  %1926 = vmatmul.mubr.bf16.gmra.mrb[12].mxu1 %v2440_v39 }
 0x1e0   : > { %v1809_v2 = vadd.f32 %v1808_v35, %v1807_v34  ;;  %v1810_v3 = vpop.f32.mrb[22].mxu0  ;;  %725 = vmax.xlane.f32.xlu1 %v2760_v54  ;;  %1929 = vmatprep.mubr.bf16.mxu1 %v2453_v46 }
 0x1e1   : > { %v1811_v4 = vpop.f32.mrb[23].mxu0 }
 0x1e2   : > { %v669_v41 = vmul.f32 %v1809_v2, %v632_v61  ;;  %v1812_v7 = vadd.f32 %v1811_v4, %v1810_v3 }
 0x1e4   : > { %v670_v42 = vmul.f32 %v1812_v7, %v637_v14  ;;  %v2771_v9 = vadd.f32 %v685_v6, %v669_v41 }
 0x1e6   : > { %v1813_v1 = vpop.f32.mrb[24].mxu0  ;;  %727 = vmax.xlane.f32.xlu0 %v2771_v9  ;;  %v2774_v12 = vadd.f32 %v686_v0, %v670_v42 }
 0x1e7   : > { %v1814_v20 = vpop.f32.mrb[25].mxu0  ;;  %1930 = vmatmul.mubr.bf16.gmra.mrb[16].mxu1 %v2466_v53 }
 0x1e8   : > { %v1815_v27 = vadd.f32 %v1814_v20, %v1813_v1  ;;  %v1816_v15 = vpop.f32.mrb[26].mxu0  ;;  %729 = vmax.xlane.f32.xlu1 %v2774_v12  ;;  %1933 = vmatprep.mubr.bf16.mxu1 %v2479_v60 }
 0x1e9   : > { %v1817_v31 = vpop.f32.mrb[27].mxu0 }
 0x1ea   : > { %v671_v52 = vmul.f32 %v1815_v27, %v642_v19  ;;  %v1818_v55 = vadd.f32 %v1817_v31, %v1816_v15 }
 0x1ec   : > { %v672_v26 = vmul.f32 %v1818_v55, %v647_v22  ;;  %v2785_v58 = vadd.f32 %v687_v38, %v671_v52 }
 0x1ee   : > { %v1819_v11 = vpop.f32.mrb[28].mxu0  ;;  %731 = vmax.xlane.f32.xlu0 %v2785_v58  ;;  %v2788_v44 = vadd.f32 %v688_v5, %v672_v26 }
 0x1ef   : > { %v1820_v29 = vpop.f32.mrb[29].mxu0  ;;  %1934 = vmatmul.mubr.bf16.gmra.mrb[20].mxu1 %v2492_v13 }
 0x1f0   : > { %v1821_v51 = vadd.f32 %v1820_v29, %v1819_v11  ;;  %v1822_v33 = vpop.f32.mrb[30].mxu0  ;;  %733 = vmax.xlane.f32.xlu1 %v2788_v44  ;;  %1937 = vmatprep.mubr.bf16.mxu1 %v2505_v24 }
 0x1f1   : > { %v1823_v63 = vpop.f32.mrb[31].mxu0 }
 0x1f2   : > { %v673_v40 = vmul.f32 %v1821_v51, %v652_v10  ;;  %v1824_v17 = vadd.f32 %v1823_v63, %v1822_v33 }
 0x1f4   : > { %v674_v43 = vmul.f32 %v1824_v17, %v657_v23  ;;  %v2799_v47 = vadd.f32 %v689_v8, %v673_v40 }
 0x1f6   : > { %735 = vmax.xlane.f32.xlu0 %v2799_v47  ;;  %v2802_v25 = vadd.f32 %v690_v18, %v674_v43 }
 0x1f7   : > { %1938 = vmatmul.mubr.bf16.gmra.mrb[24].mxu1 %v3227_v37 }
 0x1f8   : > { %737 = vmax.xlane.f32.xlu1 %v2802_v25  ;;  %1941 = vmatprep.mubr.bf16.mxu1 %v3228_v21 }
 0x1ff   : > { %1942 = vmatmul.mubr.bf16.gmra.mrb[28].mxu1 %v3229_v28 }
 0x24b   : > { %v708_v32 = vpop.xlane.xlu0 %707 }
 0x24c   : > { %v739_v39 = vsub.f32 %v2694_v36, %v708_v32 }
 0x24d   : > { %v710_v30 = vpop.xlane.xlu1 %709 }
 0x24e   : > { %v755_v49 = vmul.f32 1.442695, %v739_v39  ;;  %v740_v46 = vsub.f32 %v2697_v16, %v710_v30 }
 0x250   : > { %2135 = vpow2.f32 %v755_v49  ;;  %v757_v53 = vmul.f32 1.442695, %v740_v46 }
 0x252   : > { %2137 = vpow2.f32 %v757_v53 }
 0x253   : > { %v712_v60 = vpop.xlane.xlu0 %711 }
 0x254   : > { %v741_v13 = vsub.f32 %v2703_v50, %v712_v60 }
 0x256   : > { %v759_v24 = vmul.f32 1.442695, %v741_v13 }
 0x257   : > { %v714_v34 = vpop.xlane.xlu0 %713 }
 0x258   : > { %2139 = vpow2.f32 %v759_v24  ;;  %v742_v35 = vsub.f32 %v2709_v57, %v714_v34 }
 0x25a   : > { %v2819_v2 = vpop.eup %2135  ;;  %v761_v3 = vmul.f32 1.442695, %v742_v35 }
 0x25b   : > { %787 = vadd.xlane.f32.xlu0 %v2819_v2  ;;  %v716_v36 = vpop.xlane.xlu0 %715 }
 0x25c   : > { %v2822_v61 = vpop.eup %2137  ;;  %2141 = vpow2.f32 %v761_v3  ;;  %v743_v16 = vsub.f32 %v2721_v45, %v716_v36 }
 0x25d   : > { %789 = vadd.xlane.f32.xlu1 %v2822_v61  ;;  %v718_v4 = vpop.xlane.xlu1 %717 }
 0x25e   : > { %v763_v50 = vmul.f32 1.442695, %v743_v16  ;;  %v744_v6 = vsub.f32 %v2727_v48, %v718_v4 }
 0x260   : > { %2143 = vpow2.f32 %v763_v50  ;;  %v765_v41 = vmul.f32 1.442695, %v744_v6 }
 0x262   : > { %v2827_v57 = vpop.eup %2139  ;;  %2145 = vpow2.f32 %v765_v41 }
 0x263   : > { %791 = vadd.xlane.f32.xlu0 %v2827_v57  ;;  %v720_v7 = vpop.xlane.xlu0 %719 }
 0x264   : > { %v745_v14 = vsub.f32 %v2739_v59, %v720_v7 }
 0x265   : > { %v722_v0 = vpop.xlane.xlu1 %721 }
 0x266   : > { %v2831_v42 = vpop.eup %2141  ;;  %v767_v45 = vmul.f32 1.442695, %v745_v14  ;;  %v746_v1 = vsub.f32 %v2745_v56, %v722_v0 }
 0x267   : > { %793 = vadd.xlane.f32.xlu1 %v2831_v42 }
 0x268   : > { %2147 = vpow2.f32 %v767_v45  ;;  %v769_v48 = vmul.f32 1.442695, %v746_v1 }
 0x26a   : > { %v2835_v20 = vpop.eup %2143  ;;  %2149 = vpow2.f32 %v769_v48 }
 0x26b   : > { %795 = vadd.xlane.f32.xlu0 %v2835_v20  ;;  %v724_v27 = vpop.xlane.xlu0 %723 }
 0x26c   : > { %v2838_v15 = vpop.eup %2145  ;;  %v747_v59 = vsub.f32 %v2757_v62, %v724_v27 }
 0x26d   : > { %v726_v19 = vpop.xlane.xlu1 %725  ;;  %797 = vadd.xlane.f32.xlu1 %v2838_v15 }
 0x26e   : > { %v771_v31 = vmul.f32 1.442695, %v747_v59  ;;  %v748_v56 = vsub.f32 %v2760_v54, %v726_v19 }
 0x270   : > { %2151 = vpow2.f32 %v771_v31  ;;  %v773_v38 = vmul.f32 1.442695, %v748_v56 }
 0x272   : > { %v2843_v52 = vpop.eup %2147  ;;  %2153 = vpow2.f32 %v773_v38 }
 0x273   : > { %799 = vadd.xlane.f32.xlu0 %v2843_v52  ;;  %v728_v55 = vpop.xlane.xlu0 %727 }
 0x274   : > { %v2846_v22 = vpop.eup %2149  ;;  %v749_v5 = vsub.f32 %v2771_v9, %v728_v55 }
 0x275   : > { %v730_v26 = vpop.xlane.xlu1 %729  ;;  %801 = vadd.xlane.f32.xlu1 %v2846_v22 }
 0x276   : > { %v775_v62 = vmul.f32 1.442695, %v749_v5  ;;  %v750_v11 = vsub.f32 %v2774_v12, %v730_v26 }
 0x278   : > { %2155 = vpow2.f32 %v775_v62  ;;  %v777_v54 = vmul.f32 1.442695, %v750_v11 }
 0x27a   : > { %v2851_v29 = vpop.eup %2151  ;;  %2157 = vpow2.f32 %v777_v54 }
 0x27b   : > { %803 = vadd.xlane.f32.xlu0 %v2851_v29  ;;  %v732_v51 = vpop.xlane.xlu0 %731 }
 0x27c   : > { %v2854_v33 = vpop.eup %2153  ;;  %v751_v10 = vsub.f32 %v2785_v58, %v732_v51 }
 0x27d   : > { %v734_v63 = vpop.xlane.xlu1 %733  ;;  %805 = vadd.xlane.f32.xlu1 %v2854_v33 }
 0x27e   : > { %v779_v9 = vmul.f32 1.442695, %v751_v10  ;;  %v752_v8 = vsub.f32 %v2788_v44, %v734_v63 }
 0x280   : > { %2159 = vpow2.f32 %v779_v9  ;;  %v781_v12 = vmul.f32 1.442695, %v752_v8 }
 0x282   : > { %v2859_v40 = vpop.eup %2155  ;;  %2161 = vpow2.f32 %v781_v12  ;;  %v2110_v12 = vld [vmem:[%s3216_s4 + $0x8] sm:$0xff]  }
 0x283   : > { %807 = vadd.xlane.f32.xlu0 %v2859_v40  ;;  %v736_v17 = vpop.xlane.xlu0 %735 }
 0x284   : > { %v2862_v23 = vpop.eup %2157  ;;  %v753_v18 = vsub.f32 %v2799_v47, %v736_v17 }
 0x285   : > { %v738_v43 = vpop.xlane.xlu1 %737  ;;  %809 = vadd.xlane.f32.xlu1 %v2862_v23 }
 0x286   : > { %v783_v58 = vmul.f32 1.442695, %v753_v18  ;;  %v754_v37 = vsub.f32 %v2802_v25, %v738_v43 }
 0x288   : > { %2163 = vpow2.f32 %v783_v58  ;;  %v785_v44 = vmul.f32 1.442695, %v754_v37 }
 0x28a   : > { %v2867_v21 = vpop.eup %2159  ;;  %2165 = vpow2.f32 %v785_v44 }
 0x28b   : > { %811 = vadd.xlane.f32.xlu0 %v2867_v21 }
 0x28c   : > { %v2870_v28 = vpop.eup %2161 }
 0x28d   : > { %813 = vadd.xlane.f32.xlu1 %v2870_v28 }
 0x292   : > { %v2873_v32 = vpop.eup %2163 }
 0x293   : > { %815 = vadd.xlane.f32.xlu0 %v2873_v32 }
 0x294   : > { %v2876_v47 = vpop.eup %2165 }
 0x295   : > { %817 = vadd.xlane.f32.xlu1 %v2876_v47 }
 0x29a   : > { %v2879_v25 = vpop.f32.mrb[0].mxu1 }
 0x29b   : > { %v1053_v39 = vpop.f32.mrb[1].mxu1 }
 0x29c   : > { %v2881_v30 = vpop.f32.mrb[2].mxu1 }
 0x29d   : > { %v1181_v49 = vpack.c.bf16 %v2881_v30, %v2879_v25  ;;  %v1056_v46 = vpop.f32.mrb[3].mxu1 }
 0x29e   : > { %v1180_v53 = vpack.c.bf16 %v1056_v46, %v1053_v39 }
 0x2a0   : > { %1961 = vmatprep.mubr.bf16.mxu0 %v1180_v53 }
 0x2a2   : > { %v2885_v60 = vpop.f32.mrb[4].mxu1 }
 0x2a3   : > { %v2887_v13 = vpop.f32.mrb[5].mxu1 }
 0x2a4   : > { %v2889_v24 = vpop.f32.mrb[6].mxu1 }
 0x2a5   : > { %v1183_v34 = vpack.c.bf16 %v2889_v24, %v2885_v60  ;;  %v2893_v35 = vpop.f32.mrb[7].mxu1 }
 0x2a6   : > { %v1182_v3 = vpack.c.bf16 %v2893_v35, %v2887_v13 }
 0x2aa   : > { %v2897_v36 = vpop.f32.mrb[8].mxu1 }
 0x2ab   : > { %v2899_v16 = vpop.f32.mrb[9].mxu1 }
 0x2ac   : > { %v2901_v4 = vpop.f32.mrb[10].mxu1 }
 0x2ad   : > { %v1185_v50 = vpack.c.bf16 %v2901_v4, %v2897_v36  ;;  %v2905_v6 = vpop.f32.mrb[11].mxu1 }
 0x2ae   : > { %v1184_v41 = vpack.c.bf16 %v2905_v6, %v2899_v16 }
 0x2b2   : > { %v2909_v7 = vpop.f32.mrb[12].mxu1 }
 0x2b3   : > { %v2911_v14 = vpop.f32.mrb[13].mxu1 }
 0x2b4   : > { %v2913_v0 = vpop.f32.mrb[14].mxu1 }
 0x2b5   : > { %v1187_v45 = vpack.c.bf16 %v2913_v0, %v2909_v7  ;;  %v2917_v1 = vpop.f32.mrb[15].mxu1 }
 0x2b6   : > { %v1186_v48 = vpack.c.bf16 %v2917_v1, %v2911_v14 }
 0x2ba   : > { %v2921_v27 = vpop.f32.mrb[16].mxu1 }
 0x2bb   : > { %v2923_v59 = vpop.f32.mrb[17].mxu1 }
 0x2bc   : > { %v2925_v19 = vpop.f32.mrb[18].mxu1 }
 0x2bd   : > { %v2929_v56 = vpop.f32.mrb[19].mxu1 }
 0x2c2   : > { %v2933_v55 = vpop.f32.mrb[20].mxu1 }
 0x2c3   : > { %v2935_v5 = vpop.f32.mrb[21].mxu1 }
 0x2c4   : > { %v2937_v26 = vpop.f32.mrb[22].mxu1 }
 0x2c5   : > { %v2941_v11 = vpop.f32.mrb[23].mxu1 }
 0x2ca   : > { %v2945_v51 = vpop.f32.mrb[24].mxu1 }
 0x2cb   : > { %v2947_v10 = vpop.f32.mrb[25].mxu1 }
 0x2cc   : > { %v2949_v63 = vpop.f32.mrb[26].mxu1 }
 0x2cd   : > { %v2953_v8 = vpop.f32.mrb[27].mxu1  ;;  %v3235_v30 = vpack.c.bf16 %v2949_v63, %v2945_v51 }
 0x2ce   : > { %v3234_v25 = vpack.c.bf16 %v2953_v8, %v2947_v10 }
 0x2d2   : > { %v2957_v43 = vpop.f32.mrb[28].mxu1 }
 0x2d3   : > { %v2959_v58 = vpop.f32.mrb[29].mxu1 }
 0x2d4   : > { %v2961_v37 = vpop.f32.mrb[30].mxu1 }
 0x2d5   : > { %v2965_v39 = vpop.f32.mrb[31].mxu1  ;;  %v3237_v60 = vpack.c.bf16 %v2961_v37, %v2957_v43 }
 0x2e8   : > { %v788_v17 = vpop.xlane.xlu0 %787 }
 0x2e9   : > { %2167 = vrcp.f32 %v788_v17 }
 0x2ea   : > { %v790_v18 = vpop.xlane.xlu1 %789 }
 0x2eb   : > { %2169 = vrcp.f32 %v790_v18  ;;  %v2109_v18 = vld [vmem:[%s3216_s4] sm:$0xff]  }
 0x2ec   : > { %1993 = vmatprep.subr.bf16.mxu1 %v2109_v18 }
 0x2ed   : > { %1994 = vmatpush3.bf16.msra.mxu1 %v2109_v18 }
 0x2ee   : > { %1995 = vmatprep.subr.bf16.mxu1 %v2110_v12 }
 0x2f0   : > { %v792_v53 = vpop.xlane.xlu0 %791 }
 0x2f1   : > { %2171 = vrcp.f32 %v792_v53  ;;  %v2111_v53 = vld [vmem:[%s3216_s4 + $0x10] sm:$0xff]   ;;  %1996 = vmatpush3.bf16.msra.mxu1 %v2110_v12 }
 0x2f2   : > { %1997 = vmatprep.subr.bf16.mxu1 %v2111_v53 }
 0x2f3   : > { %v2168_v9 = vpop.eup %2167 }
 0x2f4   : > { %v794_v17 = vpop.xlane.xlu1 %793  ;;  %v835_v44 = vmul.f32 %v2168_v9, %v2819_v2  ;;  %v2112_v2 = vld [vmem:[%s3216_s4 + $0x18] sm:$0xff]  }
 0x2f5   : > { %v2170_v62 = vpop.eup %2169  ;;  %2173 = vrcp.f32 %v794_v17  ;;  %1998 = vmatpush3.bf16.msra.mxu1 %v2111_v53  ;;  %v2114_v17 = vld [vmem:[%s3216_s4 + $0x28] sm:$0xff]  }
 0x2f6   : > { %v836_v54 = vmul.f32 %v2170_v62, %v2822_v61  ;;  %1999 = vmatprep.subr.bf16.mxu1 %v2112_v2 }
 0x2f8   : > { %v796_v46 = vpop.xlane.xlu0 %795  ;;  %v851_v31 = vpack.c.bf16 %v836_v54, %v835_v44 }
 0x2f9   : > { %2175 = vrcp.f32 %v796_v46  ;;  %2000 = vmatpush3.bf16.msra.mxu1 %v2112_v2  ;;  %v2115_v2 = vld [vmem:[%s3216_s4 + $0x30] sm:$0xff]  }
 0x2fa   : > { %v798_v38 = vpop.xlane.xlu1 %797  ;;  %1945 = vmatprep.subr.bf16.mxu0 %v851_v31 }
 0x2fb   : > { %2177 = vrcp.f32 %v798_v38  ;;  %1946 = vmatpush3.bf16.xpose.msra.mxu0 %v851_v31  ;;  %v2172_v61 = vpop.eup %2171  ;;  %v2113_v38 = vld [vmem:[%s3216_s4 + $0x20] sm:$0xff]  }
 0x2fc   : > { %v837_v9 = vmul.f32 %v2172_v61, %v2827_v57  ;;  %2001 = vmatprep.subr.bf16.mxu1 %v2113_v38 }
 0x2fd   : > { %2002 = vmatpush3.bf16.msra.mxu1 %v2113_v38 }
 0x2fe   : > { %2003 = vmatprep.subr.bf16.mxu1 %v2114_v17 }
 0x2ff   : > { %v2174_v62 = vpop.eup %2173 }
 0x300   : > { %v800_v54 = vpop.xlane.xlu0 %799  ;;  %v838_v44 = vmul.f32 %v2174_v62, %v2831_v42 }
 0x301   : > { %2179 = vrcp.f32 %v800_v54  ;;  %2004 = vmatpush3.bf16.msra.mxu1 %v2114_v17 }
 0x302   : > { %v802_v31 = vpop.xlane.xlu1 %801  ;;  %v852_v12 = vpack.c.bf16 %v838_v44, %v837_v9  ;;  %2005 = vmatprep.subr.bf16.mxu1 %v2115_v2 }
 0x303   : > { %v2176_v46 = vpop.eup %2175  ;;  %2181 = vrcp.f32 %v802_v31 }
 0x304   : > { %1947 = vmatprep.subr.bf16.mxu0 %v852_v12  ;;  %v839_v42 = vmul.f32 %v2176_v46, %v2835_v20  ;;  %v2116_v20 = vld [vmem:[%s3216_s4 + $0x38] sm:$0xff]  }
 0x305   : > { %v2178_v57 = vpop.eup %2177  ;;  %1948 = vmatpush3.bf16.xpose.msra.mxu0 %v852_v12  ;;  %2006 = vmatpush3.bf16.msra.mxu1 %v2115_v2 }
 0x306   : > { %v840_v18 = vmul.f32 %v2178_v57, %v2838_v15  ;;  %2007 = vmatprep.subr.bf16.mxu1 %v2116_v20 }
 0x308   : > { %v804_v53 = vpop.xlane.xlu0 %803  ;;  %v853_v61 = vpack.c.bf16 %v840_v18, %v839_v42 }
 0x309   : > { %2183 = vrcp.f32 %v804_v53  ;;  %2008 = vmatpush3.bf16.msra.mxu1 %v2116_v20 }
 0x30a   : > { %v806_v62 = vpop.xlane.xlu1 %805  ;;  %1949 = vmatprep.subr.bf16.mxu0 %v853_v61 }
 0x30b   : > { %v2180_v54 = vpop.eup %2179  ;;  %2185 = vrcp.f32 %v806_v62 }
 0x30c   : > { %v841_v9 = vmul.f32 %v2180_v54, %v2843_v52 }
 0x30d   : > { %v2182_v15 = vpop.eup %2181  ;;  %1950 = vmatpush3.bf16.xpose.msra.mxu0 %v853_v61 }
 0x30e   : > { %v842_v44 = vmul.f32 %v2182_v15, %v2846_v22 }
 0x310   : > { %v808_v38 = vpop.xlane.xlu0 %807  ;;  %v854_v31 = vpack.c.bf16 %v842_v44, %v841_v9 }
 0x311   : > { %2187 = vrcp.f32 %v808_v38 }
 0x312   : > { %v810_v12 = vpop.xlane.xlu1 %809  ;;  %1951 = vmatprep.subr.bf16.mxu0 %v854_v31 }
 0x313   : > { %v2184_v46 = vpop.eup %2183  ;;  %2189 = vrcp.f32 %v810_v12 }
 0x314   : > { %v843_v57 = vmul.f32 %v2184_v46, %v2851_v29 }
 0x315   : > { %v2186_v17 = vpop.eup %2185  ;;  %1952 = vmatpush3.bf16.xpose.msra.mxu0 %v854_v31 }
 0x316   : > { %v844_v42 = vmul.f32 %v2186_v17, %v2854_v33 }
 0x318   : > { %v812_v18 = vpop.xlane.xlu0 %811  ;;  %v855_v52 = vpack.c.bf16 %v844_v42, %v843_v57 }
 0x319   : > { %2191 = vrcp.f32 %v812_v18 }
 0x31a   : > { %v814_v22 = vpop.xlane.xlu1 %813  ;;  %1953 = vmatprep.subr.bf16.mxu0 %v855_v52 }
 0x31b   : > { %v2188_v53 = vpop.eup %2187  ;;  %2193 = vrcp.f32 %v814_v22 }
 0x31c   : > { %v845_v2 = vmul.f32 %v2188_v53, %v2859_v40 }
 0x31d   : > { %v2190_v61 = vpop.eup %2189  ;;  %1954 = vmatpush3.bf16.xpose.msra.mxu0 %v855_v52 }
 0x31e   : > { %v846_v62 = vmul.f32 %v2190_v61, %v2862_v23 }
 0x320   : > { %v816_v54 = vpop.xlane.xlu0 %815  ;;  %v856_v20 = vpack.c.bf16 %v846_v62, %v845_v2 }
 0x321   : > { %2195 = vrcp.f32 %v816_v54 }
 0x322   : > { %v818_v15 = vpop.xlane.xlu1 %817  ;;  %1955 = vmatprep.subr.bf16.mxu0 %v856_v20 }
 0x323   : > { %v2192_v29 = vpop.eup %2191  ;;  %2197 = vrcp.f32 %v818_v15 }
 0x324   : > { %v847_v9 = vmul.f32 %v2192_v29, %v2867_v21  ;;  %v3230_v21 = vpack.c.bf16 %v2929_v56, %v2923_v59 }
 0x325   : > { %v2194_v33 = vpop.eup %2193  ;;  %1956 = vmatpush3.bf16.xpose.msra.mxu0 %v856_v20 }
 0x326   : > { %v848_v44 = vmul.f32 %v2194_v33, %v2870_v28  ;;  %v3231_v28 = vpack.c.bf16 %v2925_v19, %v2921_v27 }
 0x328   : > { %v857_v38 = vpack.c.bf16 %v848_v44, %v847_v9  ;;  %v3060_v9 = vld [vmem:[%s3217_s5] ss:$0 sm:$0xff] }
 0x32a   : > { %1957 = vmatprep.subr.bf16.mxu0 %v857_v38 }
 0x32b   : > { %v2196_v31 = vpop.eup %2195 }
 0x32c   : > { %v849_v40 = vmul.f32 %v2196_v31, %v2873_v32  ;;  %v3232_v32 = vpack.c.bf16 %v2941_v11, %v2935_v5 }
 0x32d   : > { %v2198_v12 = vpop.eup %2197  ;;  %1958 = vmatpush3.bf16.xpose.msra.mxu0 %v857_v38 }
 0x32e   : > { %v850_v23 = vmul.f32 %v2198_v12, %v2876_v47  ;;  %v3233_v47 = vpack.c.bf16 %v2937_v26, %v2933_v55 }
 0x330   : > { %v858_v46 = vpack.c.bf16 %v850_v23, %v849_v40 }
 0x332   : > { %1959 = vmatprep.subr.bf16.mxu0 %v858_v46 }
 0x335   : > { %1960 = vmatpush3.bf16.xpose.msra.mxu0 %v858_v46 }
 0x33c   : > { %1962 = vmatmul.mubr.bf16.vlgmr.msra.gmra.mrb[32].mxu0 %v1181_v49  ;;  %v3236_v49 = vpack.c.bf16 %v2965_v39, %v2959_v58 }
 0x33d   : > { %1965 = vmatprep.mubr.bf16.mxu0 %v1182_v3 }
 0x344   : > { %1966 = vmatmul.mubr.bf16.gmra.mrb[36].mxu0 %v1183_v34 }
 0x345   : > { %1969 = vmatprep.mubr.bf16.mxu0 %v1184_v41 }
 0x34c   : > { %1970 = vmatmul.mubr.bf16.gmra.mrb[40].mxu0 %v1185_v50 }
 0x34d   : > { %1973 = vmatprep.mubr.bf16.mxu0 %v1186_v48 }
 0x354   : > { %1974 = vmatmul.mubr.bf16.gmra.mrb[44].mxu0 %v1187_v45 }
 0x355   : > { %1977 = vmatprep.mubr.bf16.mxu0 %v3230_v21 }
 0x35c   : > { %1978 = vmatmul.mubr.bf16.gmra.mrb[48].mxu0 %v3231_v28 }
 0x35d   : > { %1981 = vmatprep.mubr.bf16.mxu0 %v3232_v32 }
 0x364   : > { %1982 = vmatmul.mubr.bf16.gmra.mrb[52].mxu0 %v3233_v47 }
 0x365   : > { %1985 = vmatprep.mubr.bf16.mxu0 %v3234_v25 }
 0x36c   : > { %1986 = vmatmul.mubr.bf16.gmra.mrb[56].mxu0 %v3235_v30 }
 0x36d   : > { %1989 = vmatprep.mubr.bf16.mxu0 %v3236_v49 }
 0x374   : > { %1990 = vmatmul.mubr.bf16.gmra.mrb[60].mxu0 %v3237_v60 }
 0x40f   : > { %v1963_v13 = vpop.f32.mrb[32].mxu0 }
 0x410   : > { %v1230_v24 = vpop.f32.mrb[33].mxu0 }
 0x411   : > { %v1964_v34 = vpop.f32.mrb[34].mxu0 }
 0x412   : > { %v1358_v35 = vpack.c.bf16 %v1964_v34, %v1963_v13  ;;  %v1233_v3 = vpop.f32.mrb[35].mxu0 }
 0x413   : > { %v1357_v36 = vpack.c.bf16 %v1233_v3, %v1230_v24 }
 0x415   : > { %2009 = vmatprep.mubr.bf16.mxu1 %v1357_v36 }
 0x416   : > { %2010 = vmatmul.mubr.bf16.vlgmr.msra.gmra.mrb[32].mxu1 %v1358_v35 }
 0x417   : > { %v1967_v16 = vpop.f32.mrb[36].mxu0 }
 0x418   : > { %v1246_v4 = vpop.f32.mrb[37].mxu0 }
 0x419   : > { %v1968_v50 = vpop.f32.mrb[38].mxu0 }
 0x41a   : > { %v1360_v6 = vpack.c.bf16 %v1968_v50, %v1967_v16  ;;  %v1249_v41 = vpop.f32.mrb[39].mxu0 }
 0x41b   : > { %v1359_v7 = vpack.c.bf16 %v1249_v41, %v1246_v4 }
 0x41d   : > { %2013 = vmatprep.mubr.bf16.mxu1 %v1359_v7 }
 0x41e   : > { %2014 = vmatmul.mubr.bf16.gmra.mrb[36].mxu1 %v1360_v6 }
 0x41f   : > { %v1971_v14 = vpop.f32.mrb[40].mxu0 }
 0x420   : > { %v1262_v0 = vpop.f32.mrb[41].mxu0 }
 0x421   : > { %v1972_v45 = vpop.f32.mrb[42].mxu0 }
 0x422   : > { %v1362_v1 = vpack.c.bf16 %v1972_v45, %v1971_v14  ;;  %v1265_v48 = vpop.f32.mrb[43].mxu0 }
 0x423   : > { %v1361_v27 = vpack.c.bf16 %v1265_v48, %v1262_v0 }
 0x425   : > { %2017 = vmatprep.mubr.bf16.mxu1 %v1361_v27 }
 0x426   : > { %2018 = vmatmul.mubr.bf16.gmra.mrb[40].mxu1 %v1362_v1 }
 0x427   : > { %v1975_v59 = vpop.f32.mrb[44].mxu0 }
 0x428   : > { %v1278_v19 = vpop.f32.mrb[45].mxu0 }
 0x429   : > { %v1976_v56 = vpop.f32.mrb[46].mxu0 }
 0x42a   : > { %v1364_v55 = vpack.c.bf16 %v1976_v56, %v1975_v59  ;;  %v1281_v5 = vpop.f32.mrb[47].mxu0 }
 0x42b   : > { %v1363_v26 = vpack.c.bf16 %v1281_v5, %v1278_v19 }
 0x42d   : > { %2021 = vmatprep.mubr.bf16.mxu1 %v1363_v26 }
 0x42e   : > { %2022 = vmatmul.mubr.bf16.gmra.mrb[44].mxu1 %v1364_v55 }
 0x42f   : > { %v1979_v11 = vpop.f32.mrb[48].mxu0 }
 0x430   : > { %v1294_v51 = vpop.f32.mrb[49].mxu0 }
 0x431   : > { %v1980_v10 = vpop.f32.mrb[50].mxu0 }
 0x432   : > { %v1366_v63 = vpack.c.bf16 %v1980_v10, %v1979_v11  ;;  %v1297_v8 = vpop.f32.mrb[51].mxu0 }
 0x433   : > { %v1365_v43 = vpack.c.bf16 %v1297_v8, %v1294_v51 }
 0x435   : > { %2025 = vmatprep.mubr.bf16.mxu1 %v1365_v43 }
 0x436   : > { %2026 = vmatmul.mubr.bf16.gmra.mrb[48].mxu1 %v1366_v63 }
 0x437   : > { %v1983_v58 = vpop.f32.mrb[52].mxu0 }
 0x438   : > { %v1310_v37 = vpop.f32.mrb[53].mxu0 }
 0x439   : > { %v1984_v39 = vpop.f32.mrb[54].mxu0 }
 0x43a   : > { %v1368_v17 = vpack.c.bf16 %v1984_v39, %v1983_v58  ;;  %v1313_v57 = vpop.f32.mrb[55].mxu0 }
 0x43b   : > { %v1367_v42 = vpack.c.bf16 %v1313_v57, %v1310_v37 }
 0x43d   : > { %2029 = vmatprep.mubr.bf16.mxu1 %v1367_v42 }
 0x43e   : > { %2030 = vmatmul.mubr.bf16.gmra.mrb[52].mxu1 %v1368_v17 }
 0x43f   : > { %v1987_v18 = vpop.f32.mrb[56].mxu0 }
 0x440   : > { %v1326_v52 = vpop.f32.mrb[57].mxu0 }
 0x441   : > { %v1988_v22 = vpop.f32.mrb[58].mxu0 }
 0x442   : > { %v1370_v53 = vpack.c.bf16 %v1988_v22, %v1987_v18  ;;  %v1329_v61 = vpop.f32.mrb[59].mxu0 }
 0x443   : > { %v1369_v2 = vpack.c.bf16 %v1329_v61, %v1326_v52 }
 0x445   : > { %2033 = vmatprep.mubr.bf16.mxu1 %v1369_v2 }
 0x446   : > { %2034 = vmatmul.mubr.bf16.gmra.mrb[56].mxu1 %v1370_v53 }
 0x447   : > { %v1991_v62 = vpop.f32.mrb[60].mxu0 }
 0x448   : > { %v1342_v54 = vpop.f32.mrb[61].mxu0 }
 0x449   : > { %v1992_v20 = vpop.f32.mrb[62].mxu0 }
 0x44a   : > { %v1372_v15 = vpack.c.bf16 %v1992_v20, %v1991_v62  ;;  %v1345_v29 = vpop.f32.mrb[63].mxu0 }
 0x44b   : > { %v1371_v33 = vpack.c.bf16 %v1345_v29, %v1342_v54 }
 0x44d   : > { %2037 = vmatprep.mubr.bf16.mxu1 %v1371_v33 }
 0x44e   : > { %2038 = vmatmul.mubr.bf16.gmra.mrb[60].mxu1 %v1372_v15 }
 0x4e9   : > { %v2011_v44 = vpop.f32.mrb[32].mxu1 }
 0x4ea   : > { %v1487_v38 = vadd.f32 %v2011_v44, %v3060_v9  ;;  %v1478_v31 = vpop.f32.mrb[33].mxu1 }
 0x4eb   : > { %v1479_v12 = vadd.f32 %v3060_v9, %v1478_v31  ;;  %v2012_v40 = vpop.f32.mrb[34].mxu1 }
 0x4ec   : > { %1608 = vst.msk [vmem:[%s3064_s9 + $0x10] sm:$0xff] %vm1605_vm0, %v1487_v38  ;;  %v1490_v23 = vadd.f32 %v2012_v40, %v3060_v9  ;;  %v1481_v46 = vpop.f32.mrb[35].mxu1 }
 0x4ed   : > { %1606 = vst.msk [vmem:[%s3064_s9] sm:$0xff] %vm1605_vm0, %v1479_v12  ;;  %v1482_v21 = vadd.f32 %v3060_v9, %v1481_v46 }
 0x4ee   : > { %1609 = vst.msk [vmem:[%s3064_s9 + $0x18] sm:$0xff] %vm1605_vm0, %v1490_v23 }
 0x4ef   : > { %1607 = vst.msk [vmem:[%s3064_s9 + $0x8] sm:$0xff] %vm1605_vm0, %v1482_v21 }
 0x4f1   : > { %v2015_v28 = vpop.f32.mrb[36].mxu1 }
 0x4f2   : > { %v1503_v32 = vadd.f32 %v2015_v28, %v3060_v9  ;;  %v1494_v47 = vpop.f32.mrb[37].mxu1 }
 0x4f3   : > { %v1495_v25 = vadd.f32 %v3060_v9, %v1494_v47  ;;  %v2016_v30 = vpop.f32.mrb[38].mxu1 }
 0x4f4   : > { %1612 = vst.msk [vmem:[%s3064_s9 + $0x30] sm:$0xff] %vm1605_vm0, %v1503_v32  ;;  %v1506_v49 = vadd.f32 %v2016_v30, %v3060_v9  ;;  %v1497_v60 = vpop.f32.mrb[39].mxu1 }
 0x4f5   : > { %1610 = vst.msk [vmem:[%s3064_s9 + $0x20] sm:$0xff] %vm1605_vm0, %v1495_v25  ;;  %v1498_v13 = vadd.f32 %v3060_v9, %v1497_v60 }
 0x4f6   : > { %1613 = vst.msk [vmem:[%s3064_s9 + $0x38] sm:$0xff] %vm1605_vm0, %v1506_v49 }
 0x4f7   : > { %1611 = vst.msk [vmem:[%s3064_s9 + $0x28] sm:$0xff] %vm1605_vm0, %v1498_v13 }
 0x4f9   : > { %v2019_v24 = vpop.f32.mrb[40].mxu1 }
 0x4fa   : > { %v1519_v34 = vadd.f32 %v2019_v24, %v3060_v9  ;;  %v1510_v35 = vpop.f32.mrb[41].mxu1 }
 0x4fb   : > { %v1511_v3 = vadd.f32 %v3060_v9, %v1510_v35  ;;  %v2020_v36 = vpop.f32.mrb[42].mxu1 }
 0x4fc   : > { %1616 = vst.msk [vmem:[%s3064_s9 + $0x50] sm:$0xff] %vm1605_vm0, %v1519_v34  ;;  %v1522_v16 = vadd.f32 %v2020_v36, %v3060_v9  ;;  %v1513_v4 = vpop.f32.mrb[43].mxu1 }
 0x4fd   : > { %1614 = vst.msk [vmem:[%s3064_s9 + $0x40] sm:$0xff] %vm1605_vm0, %v1511_v3  ;;  %v1514_v50 = vadd.f32 %v3060_v9, %v1513_v4 }
 0x4fe   : > { %1617 = vst.msk [vmem:[%s3064_s9 + $0x58] sm:$0xff] %vm1605_vm0, %v1522_v16 }
 0x4ff   : > { %1615 = vst.msk [vmem:[%s3064_s9 + $0x48] sm:$0xff] %vm1605_vm0, %v1514_v50 }
 0x501   : > { %v2023_v6 = vpop.f32.mrb[44].mxu1 }
 0x502   : > { %v1535_v41 = vadd.f32 %v2023_v6, %v3060_v9  ;;  %v1526_v7 = vpop.f32.mrb[45].mxu1 }
 0x503   : > { %v1527_v14 = vadd.f32 %v3060_v9, %v1526_v7  ;;  %v2024_v0 = vpop.f32.mrb[46].mxu1 }
 0x504   : > { %1620 = vst.msk [vmem:[%s3064_s9 + $0x70] sm:$0xff] %vm1605_vm0, %v1535_v41  ;;  %v1538_v45 = vadd.f32 %v2024_v0, %v3060_v9  ;;  %v1529_v1 = vpop.f32.mrb[47].mxu1 }
 0x505   : > { %1618 = vst.msk [vmem:[%s3064_s9 + $0x60] sm:$0xff] %vm1605_vm0, %v1527_v14  ;;  %v1530_v48 = vadd.f32 %v3060_v9, %v1529_v1 }
 0x506   : > { %1621 = vst.msk [vmem:[%s3064_s9 + $0x78] sm:$0xff] %vm1605_vm0, %v1538_v45 }
 0x507   : > { %1619 = vst.msk [vmem:[%s3064_s9 + $0x68] sm:$0xff] %vm1605_vm0, %v1530_v48 }
 0x509   : > { %v2027_v27 = vpop.f32.mrb[48].mxu1 }
 0x50a   : > { %v1551_v59 = vadd.f32 %v2027_v27, %v3060_v9  ;;  %v1542_v19 = vpop.f32.mrb[49].mxu1 }
 0x50b   : > { %v1543_v56 = vadd.f32 %v3060_v9, %v1542_v19  ;;  %v2028_v55 = vpop.f32.mrb[50].mxu1 }
 0x50c   : > { %1624 = vst.msk [vmem:[%s3064_s9 + $0x90] sm:$0xff] %vm1605_vm0, %v1551_v59  ;;  %v1554_v5 = vadd.f32 %v2028_v55, %v3060_v9  ;;  %v1545_v26 = vpop.f32.mrb[51].mxu1 }
 0x50d   : > { %1622 = vst.msk [vmem:[%s3064_s9 + $0x80] sm:$0xff] %vm1605_vm0, %v1543_v56  ;;  %v1546_v11 = vadd.f32 %v3060_v9, %v1545_v26 }
 0x50e   : > { %1625 = vst.msk [vmem:[%s3064_s9 + $0x98] sm:$0xff] %vm1605_vm0, %v1554_v5 }
 0x50f   : > { %1623 = vst.msk [vmem:[%s3064_s9 + $0x88] sm:$0xff] %vm1605_vm0, %v1546_v11 }
 0x511   : > { %v2031_v51 = vpop.f32.mrb[52].mxu1 }
 0x512   : > { %v1567_v10 = vadd.f32 %v2031_v51, %v3060_v9  ;;  %v1558_v63 = vpop.f32.mrb[53].mxu1 }
 0x513   : > { %v1559_v8 = vadd.f32 %v3060_v9, %v1558_v63  ;;  %v2032_v43 = vpop.f32.mrb[54].mxu1 }
 0x514   : > { %1628 = vst.msk [vmem:[%s3064_s9 + $0xb0] sm:$0xff] %vm1605_vm0, %v1567_v10  ;;  %v1570_v58 = vadd.f32 %v2032_v43, %v3060_v9  ;;  %v1561_v37 = vpop.f32.mrb[55].mxu1 }
 0x515   : > { %1626 = vst.msk [vmem:[%s3064_s9 + $0xa0] sm:$0xff] %vm1605_vm0, %v1559_v8  ;;  %v1562_v39 = vadd.f32 %v3060_v9, %v1561_v37 }
 0x516   : > { %1629 = vst.msk [vmem:[%s3064_s9 + $0xb8] sm:$0xff] %vm1605_vm0, %v1570_v58 }
 0x517   : > { %1627 = vst.msk [vmem:[%s3064_s9 + $0xa8] sm:$0xff] %vm1605_vm0, %v1562_v39 }
 0x519   : > { %v2035_v17 = vpop.f32.mrb[56].mxu1 }
 0x51a   : > { %v1583_v57 = vadd.f32 %v2035_v17, %v3060_v9  ;;  %v1574_v42 = vpop.f32.mrb[57].mxu1 }
 0x51b   : > { %v1575_v18 = vadd.f32 %v3060_v9, %v1574_v42  ;;  %v2036_v52 = vpop.f32.mrb[58].mxu1 }
 0x51c   : > { %1632 = vst.msk [vmem:[%s3064_s9 + $0xd0] sm:$0xff] %vm1605_vm0, %v1583_v57  ;;  %v1586_v22 = vadd.f32 %v2036_v52, %v3060_v9  ;;  %v1577_v53 = vpop.f32.mrb[59].mxu1 }
 0x51d   : > { %1630 = vst.msk [vmem:[%s3064_s9 + $0xc0] sm:$0xff] %vm1605_vm0, %v1575_v18  ;;  %v1578_v61 = vadd.f32 %v3060_v9, %v1577_v53 }
 0x51e   : > { %1633 = vst.msk [vmem:[%s3064_s9 + $0xd8] sm:$0xff] %vm1605_vm0, %v1586_v22 }
 0x51f   : > { %1631 = vst.msk [vmem:[%s3064_s9 + $0xc8] sm:$0xff] %vm1605_vm0, %v1578_v61 }
 0x521   : > { %v2039_v2 = vpop.f32.mrb[60].mxu1 }
 0x522   : > { %v1599_v62 = vadd.f32 %v2039_v2, %v3060_v9  ;;  %v1590_v54 = vpop.f32.mrb[61].mxu1 }
 0x523   : > { %v1591_v20 = vadd.f32 %v3060_v9, %v1590_v54  ;;  %v2040_v15 = vpop.f32.mrb[62].mxu1 }
 0x524   : > { %1636 = vst.msk [vmem:[%s3064_s9 + $0xf0] sm:$0xff] %vm1605_vm0, %v1599_v62  ;;  %v1602_v29 = vadd.f32 %v2040_v15, %v3060_v9  ;;  %v1593_v33 = vpop.f32.mrb[63].mxu1 }
 0x525   : > { %1634 = vst.msk [vmem:[%s3064_s9 + $0xe0] sm:$0xff] %vm1605_vm0, %v1591_v20  ;;  %v1594_v44 = vadd.f32 %v3060_v9, %v1593_v33 }
 0x526   : > { %1637 = vst.msk [vmem:[%s3064_s9 + $0xf8] sm:$0xff] %vm1605_vm0, %v1602_v29 }
 0x527   : > { %1635 = vst.msk [vmem:[%s3064_s9 + $0xe8] sm:$0xff] %vm1605_vm0, %v1594_v44 }
 0x528   : > { %2212 = shalt.err (!%p2209_p3)
}
 0x529   : > { %s2213_s19 = scalar_lea.hbm %s3158_s14, 4096  ;;  %s2217_s28 = scalar_lea.hbm %s3218_s6, 8192 }
 0x52a   : > { %p2214_p4 = scmp.ne.s32.totalorder %s3158_s14, %s2213_s19  ;;  %p2218_p9 = scmp.lt.u32.totalorder %s3158_s14, %s3218_s6 }
 0x52b   : > { %p2219_p10 = scmp.lt.u32.totalorder %s2217_s28, %s2213_s19  ;;  %p2221_p12 = scmp.lt.u32.totalorder %s2213_s19, %s3158_s14 }
 0x52c   : > { %p2215_p7 = pnand %p2214_p4, %p2340_p5 }
 0x52d   : > { %p2220_p11 = por %p2219_p10, %p2218_p9 }
 0x52e   : > { %p2216_p8 = pneg %p2215_p7 }
 0x52f   : > { %p2222_p13 = por %p2221_p12, %p2220_p11 }
 0x531   : > { %p2223_p0 = pnand %p2222_p13, %p2216_p8 }
 0x533   : > { %2226 = shalt.err (!%p2223_p0)
}
 0x534   : > { %s2265_s10 = smov 128   ;;  %s2266_s12 = smov 8  }
 0x535   : > { %2041 = dma.vmem_to_hbm [thread:$0]  (%p2340_p5), %s3160_s11, 4096, %s3158_s14, %s3171_s25, %s2265_s10, %s2265_s10, %s2266_s12  }
 0x536 PF: > { %p2047_p1 = scmp.ge.s32.totalorder %s2261_s24, 2  ;;  %s1667_s13 = sand.u32 1, %s2249_s21  }
 0x537   : > { %s1668_s15 = scalar_lea.sflag [#allocation3], %s1667_s13 }
 0x538   : > { %p2044_p2 = pnand %p2047_p1, %p2344_p6 }
 0x53a   : > { %2244 = dma.done.wait (!%p2044_p2), %s1668_s15, 4096  }
 0x53b   : > { %2246 = vsyncadd (!%p2044_p2), %s1668_s15, 4294963200  ;;  %p16_p3 = scmp.ge.s32.totalorder %s2327_s27, 4   ;;  %s3238_s21 = smov %s2253_s22 }
 0x53c   : > { %s3239_s22 = smov %s2257_s23  ;;  %s3240_s23 = smov %s2338_s30 }
 0x53d   : > { %s3241_s24 = smov %s2327_s27  ;;  %18 = sbr.rel (!%p16_p3) target bundleno = 3 (0x3), region = 79 }
 0x544   :  { %1673 = vsyncpa [#allocation3], 1 }
 0x545   :  { %1675 = vsyncpa [#allocation3 + $0x1], 1 }

// kernel: attention_forward.4
= control target key start
LH: loop header
LB: loop body
LE: loop exit
PB: predicated region body
PF: predicated region fallthrough
CT: control target
= control target key end

     0   :  { %s5863_s15 = smov 0   ;;  %s7838_s0 = inlined_call_operand.vmem [shape: bf16[2,18,18,128], index: 0, kind: input, shape index: {}]   ;;  %s7839_s1 = inlined_call_operand.vmem [shape: bf16[9,128,128], index: 1, kind: input, shape index: {}]   ;;  %s7840_s2 = inlined_call_operand.vmem [shape: f32[2,9,128], index: 2, kind: input, shape index: {}]   ;;  %s7841_s3 = inlined_call_operand.vmem [shape: f32[2,1,128], index: 3, kind: input, shape index: {}]   ;;  %s7842_s4 = inlined_call_operand.vmem [shape: bf16[2,256,128], index: 4, kind: output, shape index: {}]  }
   0x1 LB: > { %s4401_s16 = sadd.s32 4294967295, %s5836_s15   ;;  %p4405_p0 = scmp.ge.s32.totalorder %s5836_s15, 1  ;;  %s5836_s15 = sphi %s5863_s15, %s14_s15  }
   0x2   : > { %p180_p1 = scmp.lt.s32.totalorder %s5836_s15, 3 }
   0x4   : > { %p181_p2 = pnand %p4405_p0, %p180_p1 }
   0x6   : > { %184 = sbr.rel (%p181_p2) target bundleno = 549 (0x225), region = 36 }
   0xd   : > { %v5749_v0 = vld [vmem:[%s7839_s1 + $0xc0] sm:$0xff]   ;;  %p214_p3 = scmp.lt.s32.totalorder %s4401_s16, 1  ;;  %v5751_v2 = vld [vmem:[%s7839_s1 + $0xc8] sm:$0xff]   ;;  %v5753_v4 = vld [vmem:[%s7839_s1 + $0xd0] sm:$0xff]   ;;  %v343_v6 = vlaneseq  ;;  %vm1308_vm0 = vcmask 1046528   ;;  %vm2767_vm1 = vcmask 1045504  }
   0xe   : > { %v5750_v1 = vld [vmem:[%s7839_s1 + $0x100] sm:$0xff]   ;;  %5036 = vmatprep.subr.bf16.mxu1 %v5749_v0  ;;  %v5752_v3 = vld [vmem:[%s7839_s1 + $0x108] sm:$0xff]   ;;  %v5754_v5 = vld [vmem:[%s7839_s1 + $0x110] sm:$0xff]  }
   0xf   : > { %5228 = vmatprep.subr.bf16.mxu0 %v5750_v1  ;;  %5037 = vmatpush3.bf16.msra.mxu1 %v5749_v0  ;;  %s8143_s16 = smov (!%p214_p3, %s4401_s16), 1  ;;  %v5755_v7 = vld [vmem:[%s7839_s1 + $0xd8] sm:$0xff]   ;;  %v5899_v9 = vshrl.u32 %v343_v6, 7  ;;  %v5757_v10 = vld [vmem:[%s7839_s1 + $0xe0] sm:$0xff]   ;;  %v5759_v14 = vld [vmem:[%s7839_s1 + $0xe8] sm:$0xff]  }
  0x10   : > { %5229 = vmatpush3.bf16.msra.mxu0 %v5750_v1  ;;  %5038 = vmatprep.subr.bf16.mxu1 %v5751_v2  ;;  %v5756_v8 = vld [vmem:[%s7839_s1 + $0x118] sm:$0xff]   ;;  %s5740_s7 = smul.u32 216, %s8143_s16  ;;  %s4647_s8 = sshll.u32 %s8143_s16, 4  ;;  %v5758_v11 = vld [vmem:[%s7839_s1 + $0x120] sm:$0xff]   ;;  %v5760_v15 = vld [vmem:[%s7839_s1 + $0x128] sm:$0xff]  }
  0x11   : > { %5230 = vmatprep.subr.bf16.mxu0 %v5752_v3  ;;  %s5915_s20 = scalar_lea.vmem %s7840_s2, %s4647_s8  ;;  %v413_v12 = vsub.s32 3, %v5899_v9  ;;  %v1697_v13 = vsub.s32 4, %v5899_v9  ;;  %v2183_v24 = vsub.s32 7, %v5899_v9  ;;  %v5761_v30 = vld [vmem:[%s7839_s1 + $0xf0] sm:$0xff]   ;;  %v5763_v46 = vld [vmem:[%s7839_s1 + $0xf8] sm:$0xff]   ;;  %s226_s26 = scalar_lea.vmem %s7841_s3, %s8143_s16 }
  0x12   : > { %s5910_s17 = scalar_lea.vmem %s7838_s0, %s5740_s7  ;;  %v5927_v17 = vld [vmem:[%s5915_s20] sm:$0xff]  ;;  %v5762_v35 = vld [vmem:[%s7839_s1 + $0x130] sm:$0xff]   ;;  %v5764_v56 = vld [vmem:[%s7839_s1 + $0x138] sm:$0xff]   ;;  %s4648_s27 = sshll.u32 %s8143_s16, 7 }
  0x13   : > { %5039 = vmatpush3.bf16.msra.mxu1 %v5751_v2  ;;  %v236_v16 = vld [vmem:[%s5910_s17 + $0xc] sm:$0xff]   ;;  %v5934_v20 = vrot.slane %v5927_v17, %v413_v12  ;;  %v238_v21 = vld [vmem:[%s5910_s17 + $0x14] sm:$0x1]  ;;  %v4797_v22 = vld [vmem:[%s5910_s17 + $0x18] sm:$0xff]   ;;  %v5939_v23 = vrot.slane %v5927_v17, %v1697_v13  ;;  %v5989_v51 = vrot.slane %v5927_v17, %v2183_v24  ;;  %s7788_s30 = scalar_lea.vmem %s7842_s4, %s4648_s27 }
  0x14   : > { %5231 = vmatpush3.bf16.msra.mxu0 %v5752_v3  ;;  %5040 = vmatprep.subr.bf16.mxu1 %v5753_v4  ;;  %v5929_v18 = vunpack.c.l.bf16 %v236_v16  ;;  %v5931_v19 = vunpack.c.h.bf16 %v236_v16  ;;  %v241_v25 = vld [vmem:[%s5910_s17 + $0x20] sm:$0x1]  ;;  %v5947_v28 = vunpack.c.l.bf16 %v238_v21  ;;  %v5949_v29 = vunpack.c.l.bf16 %v4797_v22  ;;  %v242_v40 = vld [vmem:[%s5910_s17 + $0x24] sm:$0xff]   ;;  %v244_v41 = vld [vmem:[%s5910_s17 + $0x2c] sm:$0x1] }
  0x15   : > { %5232 = vmatprep.subr.bf16.mxu0 %v5754_v5  ;;  %7956 = vst [vmem:[#allocation4_spill] sm:$0xff] %v5939_v23  ;;  %v5958_v33 = vunpack.c.h.bf16 %v4797_v22  ;;  %v5960_v34 = vunpack.c.l.bf16 %v241_v25  ;;  %v5986_v50 = vunpack.c.l.bf16 %v242_v40  ;;  %v5992_v54 = vunpack.c.h.bf16 %v242_v40  ;;  %v4798_v55 = vld [vmem:[%s5910_s17 + $0x30] sm:$0xff]   ;;  %v247_v1 = vld [vmem:[%s5910_s17 + $0x38] sm:$0x1]  ;;  %v5765_v2 = vld [vmem:[%s7839_s1] sm:$0xff]  }
  0x16   : > { %7954 = vst [vmem:[#allocation2_spill] sm:$0xff] %v5929_v18  ;;  %7955 = vst [vmem:[#allocation3_spill] sm:$0xff] %v5931_v19  ;;  %v415_v26 = vmul.f32 %v5934_v20, %v5929_v18  ;;  %v416_v27 = vmul.f32 %v5934_v20, %v5931_v19  ;;  %v1699_v31 = vmul.f32 %v5939_v23, %v5929_v18  ;;  %v6001_v60 = vunpack.c.l.bf16 %v244_v41 }
  0x17   : > { %5041 = vmatpush3.bf16.msra.mxu1 %v5753_v4  ;;  %7957 = vst [vmem:[#allocation5_spill] sm:$0xff] %v5947_v28  ;;  %7958 = vst [vmem:[#allocation6_spill] sm:$0xff] %v5949_v29  ;;  %v1700_v32 = vmul.f32 %v5939_v23, %v5931_v19  ;;  %v1701_v37 = vmul.f32 %v5939_v23, %v5947_v28  ;;  %v5969_v38 = vmul.f32 %v5949_v29, %v5934_v20 }
  0x18   : > { %5233 = vmatpush3.bf16.msra.mxu0 %v5754_v5  ;;  %5042 = vmatprep.subr.bf16.mxu1 %v5755_v7  ;;  %7959 = vst [vmem:[#allocation7_spill] sm:$0xff] %v5958_v33  ;;  %7960 = vst [vmem:[#allocation8_spill] sm:$0xff] %v5960_v34  ;;  %v447_v36 = vpack.c.bf16 %v416_v27, %v415_v26  ;;  %v1702_v39 = vmul.f32 %v5949_v29, %v5939_v23  ;;  %v1795_v42 = vrot.slane %v1699_v31, 1  ;;  %v250_v27 = vld [vmem:[%s5910_s17 + $0x44] sm:$0x1] }
  0x19   : > { %5234 = vmatprep.subr.bf16.mxu0 %v5756_v8  ;;  %v1796_v43 = vrot.slane %v1700_v32, 1  ;;  %v5977_v44 = vmul.f32 %v5958_v33, %v5934_v20  ;;  %v1703_v45 = vmul.f32 %v5958_v33, %v5939_v23  ;;  %v1798_v47 = vrot.slane %v1701_v37, 1  ;;  %7961 = vst [vmem:[#allocation9_spill] sm:$0xff] %v5986_v50  ;;  %7962 = vst [vmem:[#allocation10_spill] sm:$0xff] %v5992_v54  ;;  %v5767_v37 = vld [vmem:[%s7839_s1 + $0x1c8] sm:$0xff]  }
  0x1a   : > { %5052 = vmatprep.mubr.bf16.mxu1 %v447_v36  ;;  %v1704_v48 = vmul.f32 %v5939_v23, %v5960_v34  ;;  %v1800_v49 = vrot.slane %v1702_v39, 1  ;;  %7963 = vst [vmem:[#allocation11_spill] sm:$0xff] %v6001_v60  ;;  %v419_v63 = vmul.f32 %v5934_v20, %v5986_v50  ;;  %v1705_v0 = vmul.f32 %v5939_v23, %v5986_v50  ;;  %v4799_v36 = vld [vmem:[%s5910_s17 + $0x48] sm:$0xff]  }
  0x1b   : > { %5043 = vmatpush3.bf16.msra.mxu1 %v5755_v7  ;;  %v1797_v52 = vsel %vm1308_vm0, %v1795_v42, %v1796_v43  ;;  %v1801_v53 = vrot.slane %v1703_v45, 1  ;;  %v1799_v57 = vsel %vm1308_vm0, %v1796_v43, %v1798_v47  ;;  %v448_v58 = vpack.c.bf16 %v5977_v44, %v5969_v38  ;;  %v248_v7 = vld [vmem:[%s5910_s17 + $0x3c] sm:$0xff]   ;;  %v5768_v42 = vld [vmem:[%s7839_s1 + $0x8] sm:$0xff]  }
  0x1c   : > { %5235 = vmatpush3.bf16.msra.mxu0 %v5756_v8  ;;  %5044 = vmatprep.subr.bf16.mxu1 %v5757_v10  ;;  %v1803_v59 = vrot.slane %v1704_v48, 1  ;;  %v1907_v61 = vpack.c.bf16 %v1799_v57, %v1797_v52  ;;  %v1706_v4 = vmul.f32 %v5939_v23, %v5992_v54  ;;  %v1707_v5 = vmul.f32 %v5939_v23, %v6001_v60 }
  0x1d   : > { %5236 = vmatprep.subr.bf16.mxu0 %v5758_v11  ;;  %v1802_v62 = vsel %vm1308_vm0, %v1800_v49, %v1801_v53  ;;  %v6017_v6 = vunpack.c.l.bf16 %v4798_v55  ;;  %v1805_v12 = vrot.slane %v1705_v0, 1  ;;  %v6025_v13 = vunpack.c.h.bf16 %v4798_v55 }
  0x1e   : > { %v1804_v3 = vsel %vm1308_vm0, %v1801_v53, %v1803_v59  ;;  %5244 = vmatprep.mubr.bf16.mxu0 %v1907_v61  ;;  %v6031_v21 = vunpack.c.l.bf16 %v247_v1  ;;  %v6041_v26 = vunpack.c.l.bf16 %v248_v7  ;;  %v6069_v52 = vunpack.c.l.bf16 %v4799_v36  ;;  %v253_v53 = vld [vmem:[%s5910_s17 + $0x50] sm:$0x1]  ;;  %v254_v59 = vld [vmem:[%s5910_s17 + $0x54] sm:$0xff]  }
  0x1f   : > { %5045 = vmatpush3.bf16.msra.mxu1 %v5757_v10  ;;  %7964 = vst [vmem:[#allocation12_spill] sm:$0xff] %v6017_v6  ;;  %v1908_v8 = vpack.c.bf16 %v1804_v3, %v1802_v62  ;;  %v5766_v10 = vld [vmem:[%s7839_s1 + $0x1c0] sm:$0xff]   ;;  %7965 = vst [vmem:[#allocation13_spill] sm:$0xff] %v6025_v13  ;;  %v6029_v16 = vmul.f32 %v6017_v6, %v5934_v20  ;;  %v6035_v22 = vmul.f32 %v6025_v13, %v5934_v20  ;;  %v5771_v1 = vld [vmem:[%s7839_s1 + $0x10] sm:$0xff]  }
  0x20   : > { %5237 = vmatpush3.bf16.msra.mxu0 %v5758_v11  ;;  %5046 = vmatprep.subr.bf16.mxu1 %v5759_v14  ;;  %v420_v11 = vmul.f32 %v5934_v20, %v5992_v54  ;;  %7966 = vst [vmem:[#allocation14_spill] sm:$0xff] %v6031_v21  ;;  %v1708_v24 = vmul.f32 %v6017_v6, %v5939_v23  ;;  %7968 = vst [vmem:[#allocation16_spill] sm:$0xff] %v6069_v52 }
  0x21   : > { %5238 = vmatprep.subr.bf16.mxu0 %v5760_v15  ;;  %v1709_v25 = vmul.f32 %v6025_v13, %v5939_v23  ;;  %v1710_v32 = vmul.f32 %v5939_v23, %v6031_v21  ;;  %v423_v44 = vmul.f32 %v5934_v20, %v6041_v26  ;;  %v450_v47 = vpack.c.bf16 %v6035_v22, %v6029_v16 }
  0x22   : > { %v449_v38 = vpack.c.bf16 %v420_v11, %v419_v63  ;;  %v1810_v40 = vrot.slane %v1708_v24, 1  ;;  %v1711_v48 = vmul.f32 %v5939_v23, %v6041_v26  ;;  %v6081_v0 = vmul.f32 %v6069_v52, %v5934_v20 }
  0x23   : > { %5047 = vmatpush3.bf16.msra.mxu1 %v5759_v14  ;;  %v1806_v14 = vrot.slane %v1706_v4, 1  ;;  %v1811_v41 = vrot.slane %v1709_v25, 1  ;;  %v1813_v43 = vrot.slane %v1710_v32, 1  ;;  %v6100_v11 = vunpack.c.l.bf16 %v254_v59  ;;  %v4800_v25 = vld [vmem:[%s5910_s17 + $0x60] sm:$0xff]  }
  0x24   : > { %5239 = vmatpush3.bf16.msra.mxu0 %v5760_v15  ;;  %5048 = vmatprep.subr.bf16.mxu1 %v5761_v30  ;;  %v1808_v15 = vrot.slane %v1707_v5, 1  ;;  %v1815_v62 = vrot.slane %v1711_v48, 1  ;;  %v6093_v5 = vunpack.c.l.bf16 %v253_v53  ;;  %v5774_v48 = vld [vmem:[%s7839_s1 + $0x18] sm:$0xff]  }
  0x25   : > { %5240 = vmatprep.subr.bf16.mxu0 %v5762_v35  ;;  %v1812_v55 = vsel %vm1308_vm0, %v1810_v40, %v1811_v41  ;;  %7971 = vst [vmem:[#allocation19_spill] sm:$0xff] %v6100_v11 }
  0x26   : > { %v1809_v31 = vsel %vm1308_vm0, %v1806_v14, %v1808_v15  ;;  %7970 = vst [vmem:[#allocation18_spill] sm:$0xff] %v6093_v5  ;;  %v1716_v22 = vmul.f32 %v5939_v23, %v6093_v5 }
  0x27   : > { %5049 = vmatpush3.bf16.msra.mxu1 %v5761_v30  ;;  %v1807_v30 = vsel %vm1308_vm0, %v1805_v12, %v1806_v14  ;;  %v6102_v12 = vunpack.c.h.bf16 %v254_v59  ;;  %v256_v14 = vld [vmem:[%s5910_s17 + $0x5c] sm:$0x1] }
  0x28   : > { %5241 = vmatpush3.bf16.msra.mxu0 %v5762_v35  ;;  %5050 = vmatprep.subr.bf16.mxu1 %v5763_v46  ;;  %v6048_v35 = vunpack.c.h.bf16 %v248_v7  ;;  %v1909_v39 = vpack.c.bf16 %v1809_v31, %v1807_v30  ;;  %v1714_v7 = vmul.f32 %v6069_v52, %v5939_v23  ;;  %v6111_v31 = vmul.f32 %v5934_v20, %v6100_v11 }
  0x29   : > { %5242 = vmatprep.subr.bf16.mxu0 %v5764_v56  ;;  %7972 = vst [vmem:[#allocation20_spill] sm:$0xff] %v6102_v12  ;;  %v428_v32 = vmul.f32 %v5934_v20, %v6102_v12  ;;  %v6119_v40 = vunpack.c.l.bf16 %v256_v14  ;;  %v5777_v14 = vld [vmem:[%s7839_s1 + $0x20] sm:$0xff]  }
  0x2a   : > { %v424_v45 = vmul.f32 %v5934_v20, %v6048_v35  ;;  %v1712_v49 = vmul.f32 %v5939_v23, %v6048_v35  ;;  %v1820_v24 = vrot.slane %v1714_v7, 1 }
  0x2b   : > { %5051 = vmatpush3.bf16.msra.mxu1 %v5763_v46  ;;  %v6061_v46 = vunpack.c.l.bf16 %v250_v27  ;;  %7973 = vst [vmem:[#allocation21_spill] sm:$0xff] %v6119_v40  ;;  %v453_v59 = vpack.c.bf16 %v428_v32, %v6111_v31  ;;  %v5773_v32 = vld [vmem:[%s7839_s1 + $0x1e8] sm:$0xff]  }
  0x2c   : > { %5243 = vmatpush3.bf16.msra.mxu0 %v5764_v56  ;;  %5084 = vmatprep.subr.bf16.mxu1 %v5765_v2  ;;  %v1814_v56 = vsel %vm1308_vm0, %v1811_v41, %v1813_v43  ;;  %v451_v61 = vpack.c.bf16 %v424_v45, %v423_v44  ;;  %v1816_v63 = vrot.slane %v1712_v49, 1  ;;  %v1718_v41 = vmul.f32 %v5939_v23, %v6102_v12 }
  0x2d   : > { %5276 = vmatprep.subr.bf16.mxu0 %v5766_v10  ;;  %7967 = vst [vmem:[#allocation15_spill] sm:$0xff] %v6061_v46  ;;  %v1713_v57 = vmul.f32 %v5939_v23, %v6061_v46  ;;  %v1910_v15 = vpack.c.bf16 %v1814_v56, %v1812_v55  ;;  %v6128_v44 = vunpack.c.l.bf16 %v4800_v25  ;;  %v6130_v45 = vunpack.c.h.bf16 %v4800_v25  ;;  %v260_v56 = vld [vmem:[%s5910_s17 + $0x6c] sm:$0xff]  }
  0x2e   : > { %5053 = vmatmul.mubr.bf16.vlgmr.msra.gmra.mrb[0].mxu1 %v448_v58  ;;  %v6076_v58 = vunpack.c.h.bf16 %v4799_v36  ;;  %v259_v36 = vld [vmem:[%s5910_s17 + $0x68] sm:$0x1]  ;;  %v1826_v55 = vrot.slane %v1718_v41, 1 }
  0x2f   : > { %5245 = vmatmul.mubr.bf16.vlgmr.msra.gmra.mrb[0].mxu0 %v1908_v8  ;;  %5085 = vmatpush3.bf16.msra.mxu1 %v5765_v2  ;;  %v5769_v2 = vld [vmem:[%s7839_s1 + $0x1d0] sm:$0xff]   ;;  %v1818_v3 = vrot.slane %v1713_v57, 1  ;;  %v1817_v8 = vsel %vm1308_vm0, %v1815_v62, %v1816_v63  ;;  %7974 = vst [vmem:[#allocation22_spill] sm:$0xff] %v6128_v44  ;;  %7975 = vst [vmem:[#allocation23_spill] sm:$0xff] %v6130_v45  ;;  %v6142_v62 = vmul.f32 %v6128_v44, %v5934_v20 }
  0x30   : > { %7969 = vst [vmem:[#allocation17_spill] sm:$0xff] %v6076_v58  ;;  %5277 = vmatpush3.bf16.msra.mxu0 %v5766_v10  ;;  %5056 = vmatprep.mubr.bf16.mxu1 %v449_v38  ;;  %v6091_v4 = vmul.f32 %v6076_v58, %v5934_v20  ;;  %v1715_v10 = vmul.f32 %v6076_v58, %v5939_v23  ;;  %v5770_v38 = vld [vmem:[%s7839_s1 + $0x1d8] sm:$0xff]  }
  0x31   : > { %5278 = vmatprep.subr.bf16.mxu0 %v5767_v37  ;;  %5248 = vmatprep.mubr.bf16.mxu0 %v1909_v39  ;;  %v1819_v16 = vsel %vm1308_vm0, %v1816_v63, %v1818_v3  ;;  %v1823_v39 = vrot.slane %v1716_v22, 1  ;;  %v6144_v63 = vunpack.c.l.bf16 %v259_v36  ;;  %v6156_v7 = vmul.f32 %v6130_v45, %v5934_v20 }
  0x32   : > { %5086 = vmatprep.subr.bf16.mxu1 %v5768_v42  ;;  %v1911_v27 = vpack.c.bf16 %v1819_v16, %v1817_v8  ;;  %v1821_v30 = vrot.slane %v1715_v10, 1  ;;  %v6160_v10 = vunpack.c.l.bf16 %v260_v56  ;;  %v2186_v36 = vmul.f32 %v5958_v33, %v5989_v51 }
  0x33   : > { %5087 = vmatpush3.bf16.msra.mxu1 %v5768_v42  ;;  %v452_v42 = vpack.c.bf16 %v6091_v4, %v6081_v0  ;;  %7976 = vst [vmem:[#allocation24_spill] sm:$0xff] %v6144_v63  ;;  %v1721_v4 = vmul.f32 %v6130_v45, %v5939_v23  ;;  %v1722_v8 = vmul.f32 %v5939_v23, %v6144_v63 }
  0x34   : > { %5279 = vmatpush3.bf16.msra.mxu0 %v5767_v37  ;;  %5088 = vmatprep.subr.bf16.mxu1 %v5771_v1  ;;  %v1717_v37 = vmul.f32 %v5939_v23, %v6100_v11  ;;  %v1822_v43 = vsel %vm1308_vm0, %v1820_v24, %v1821_v30  ;;  %v1824_v49 = vsel %vm1308_vm0, %v1821_v30, %v1823_v39 }
  0x35   : > { %5280 = vmatprep.subr.bf16.mxu0 %v5769_v2  ;;  %v1912_v57 = vpack.c.bf16 %v1824_v49, %v1822_v43  ;;  %7977 = vst [vmem:[#allocation25_spill] sm:$0xff] %v6160_v10  ;;  %v1831_v22 = vrot.slane %v1721_v4, 1  ;;  %v2185_v24 = vmul.f32 %v5949_v29, %v5989_v51  ;;  %v6172_v30 = vmul.f32 %v5934_v20, %v6160_v10 }
  0x36   : > { %5057 = vmatmul.mubr.bf16.gmra.mrb[4].mxu1 %v450_v47  ;;  %v1719_v47 = vmul.f32 %v5939_v23, %v6119_v40  ;;  %v1825_v53 = vrot.slane %v1717_v37, 1  ;;  %v4801_v37 = vld [vmem:[%s5910_s17 + $0x78] sm:$0xff]   ;;  %v454_v41 = vpack.c.bf16 %v6156_v7, %v6142_v62 }
  0x37   : > { %5249 = vmatmul.mubr.bf16.gmra.mrb[4].mxu0 %v1910_v15  ;;  %5060 = vmatprep.mubr.bf16.mxu1 %v451_v61  ;;  %v5772_v61 = vld [vmem:[%s7839_s1 + $0x1e0] sm:$0xff]   ;;  %v2281_v39 = vrot.slane %v2185_v24, 1  ;;  %v6198_v62 = vunpack.c.l.bf16 %v4801_v37 }
  0x38   : > { %5281 = vmatpush3.bf16.msra.mxu0 %v5769_v2  ;;  %5252 = vmatprep.mubr.bf16.mxu0 %v1911_v27  ;;  %v1827_v0 = vsel %vm1308_vm0, %v1825_v53, %v1826_v55  ;;  %v1828_v3 = vrot.slane %v1719_v47, 1  ;;  %v1720_v2 = vmul.f32 %v6128_v44, %v5939_v23  ;;  %v1833_v27 = vrot.slane %v1722_v8, 1 }
  0x39   : > { %5282 = vmatprep.subr.bf16.mxu0 %v5770_v38  ;;  %5089 = vmatpush3.bf16.msra.mxu1 %v5771_v1  ;;  %v6162_v1 = vunpack.c.h.bf16 %v260_v56  ;;  %v2282_v47 = vrot.slane %v2186_v36, 1  ;;  %7979 = vst [vmem:[#allocation27_spill] sm:$0xff] %v6198_v62  ;;  %v2199_v23 = vmul.f32 %v5989_v51, %v6093_v5 }
  0x3a   : > { %5090 = vmatprep.subr.bf16.mxu1 %v5774_v48  ;;  %v1829_v15 = vsel %vm1308_vm0, %v1826_v55, %v1828_v3  ;;  %v1830_v16 = vrot.slane %v1720_v2, 1  ;;  %v1834_v49 = vsel %vm1308_vm0, %v1831_v22, %v1833_v27  ;;  %v2188_v55 = vmul.f32 %v5989_v51, %v5986_v50 }
  0x3b   : > { %7978 = vst [vmem:[#allocation26_spill] sm:$0xff] %v6162_v1  ;;  %v1913_v25 = vpack.c.bf16 %v1829_v15, %v1827_v0  ;;  %v6176_v31 = vmul.f32 %v5934_v20, %v6162_v1  ;;  %v6200_v0 = vunpack.c.h.bf16 %v4801_v37  ;;  %v2283_v3 = vsel %vm1308_vm0, %v2281_v39, %v2282_v47  ;;  %v272_v39 = vld [vmem:[%s5910_s17 + $0x9c] sm:$0xff]  }
  0x3c   : > { %5283 = vmatpush3.bf16.msra.mxu0 %v5770_v38  ;;  %v2187_v38 = vmul.f32 %v5989_v51, %v5960_v34  ;;  %v1832_v43 = vsel %vm1308_vm0, %v1830_v16, %v1831_v22  ;;  %v2190_v2 = vmul.f32 %v5989_v51, %v6001_v60  ;;  %v2286_v4 = vrot.slane %v2188_v55, 1  ;;  %v4802_v16 = vld [vmem:[%s5910_s17 + $0x90] sm:$0xff]   ;;  %v5776_v37 = vld [vmem:[%s7839_s1 + $0x1f8] sm:$0xff]  }
  0x3d   : > { %5284 = vmatprep.subr.bf16.mxu0 %v5772_v61  ;;  %5091 = vmatpush3.bf16.msra.mxu1 %v5774_v48  ;;  %v5779_v48 = vld [vmem:[%s7839_s1 + $0x28] sm:$0xff]   ;;  %v455_v56 = vpack.c.bf16 %v6176_v31, %v6172_v30  ;;  %7980 = vst [vmem:[#allocation28_spill] sm:$0xff] %v6200_v0  ;;  %v5781_v22 = vld [vmem:[%s7839_s1 + $0x30] sm:$0xff]   ;;  %v1914_v24 = vpack.c.bf16 %v1834_v49, %v1832_v43 }
  0x3e   : > { %5061 = vmatmul.mubr.bf16.gmra.mrb[8].mxu1 %v452_v42  ;;  %5092 = vmatprep.subr.bf16.mxu1 %v5777_v14  ;;  %v2284_v53 = vrot.slane %v2187_v38, 1  ;;  %v266_v42 = vld [vmem:[%s5910_s17 + $0x84] sm:$0xff]   ;;  %v2191_v27 = vmul.f32 %v6017_v6, %v5989_v51  ;;  %v433_v31 = vmul.f32 %v6198_v62, %v5934_v20  ;;  %v434_v36 = vmul.f32 %v6200_v0, %v5934_v20 }
  0x3f   : > { %5253 = vmatmul.mubr.bf16.gmra.mrb[8].mxu0 %v1912_v57  ;;  %5064 = vmatprep.mubr.bf16.mxu1 %v453_v59  ;;  %v2189_v57 = vmul.f32 %v5989_v51, %v5992_v54  ;;  %v5775_v59 = vld [vmem:[%s7839_s1 + $0x1f0] sm:$0xff]   ;;  %v6211_v8 = vunpack.c.l.bf16 %v266_v42  ;;  %v6213_v15 = vunpack.c.h.bf16 %v266_v42  ;;  %v2193_v38 = vmul.f32 %v5989_v51, %v6031_v21 }
  0x40   : > { %5285 = vmatpush3.bf16.msra.mxu0 %v5772_v61  ;;  %5256 = vmatprep.mubr.bf16.mxu0 %v1913_v25  ;;  %v2285_v61 = vsel %vm1308_vm0, %v2282_v47, %v2284_v53  ;;  %v2289_v25 = vrot.slane %v2190_v2, 1  ;;  %v2291_v43 = vrot.slane %v2191_v27, 1  ;;  %v6233_v47 = vunpack.c.l.bf16 %v4802_v16 }
  0x41   : > { %5286 = vmatprep.subr.bf16.mxu0 %v5773_v32  ;;  %5093 = vmatpush3.bf16.msra.mxu1 %v5777_v14  ;;  %v2287_v7 = vrot.slane %v2189_v57, 1  ;;  %7981 = vst [vmem:[#allocation29_spill] sm:$0xff] %v6211_v8  ;;  %7982 = vst [vmem:[#allocation30_spill] sm:$0xff] %v6213_v15  ;;  %v2192_v14 = vmul.f32 %v6025_v13, %v5989_v51  ;;  %v2393_v30 = vpack.c.bf16 %v2285_v61, %v2283_v3  ;;  %v5783_v3 = vld [vmem:[%s7839_s1 + $0x38] sm:$0xff]  }
  0x42   : > { %5094 = vmatprep.subr.bf16.mxu1 %v5779_v48  ;;  %7983 = vst [vmem:[#allocation31_spill] sm:$0xff] %v6233_v47  ;;  %v435_v55 = vmul.f32 %v5934_v20, %v6211_v8  ;;  %v436_v42 = vmul.f32 %v5934_v20, %v6213_v15  ;;  %v2294_v57 = vrot.slane %v2193_v38, 1  ;;  %v6249_v2 = vunpack.c.l.bf16 %v272_v39 }
  0x43   : > { %v2292_v49 = vrot.slane %v2192_v14, 1  ;;  %v2288_v53 = vsel %vm1308_vm0, %v2286_v4, %v2287_v7  ;;  %v2290_v61 = vsel %vm1308_vm0, %v2287_v7, %v2289_v25  ;;  %v6256_v7 = vunpack.c.h.bf16 %v272_v39  ;;  %v5778_v25 = vld [vmem:[%s7839_s1 + $0x80] sm:$0xff]  }
  0x44   : > { %5287 = vmatpush3.bf16.msra.mxu0 %v5773_v32  ;;  %v6235_v32 = vunpack.c.h.bf16 %v4802_v16  ;;  %7985 = vst [vmem:[#allocation33_spill] sm:$0xff] %v6249_v2  ;;  %v2195_v16 = vmul.f32 %v5989_v51, %v6048_v35  ;;  %v2394_v14 = vpack.c.bf16 %v2290_v61, %v2288_v53  ;;  %v2197_v39 = vmul.f32 %v6069_v52, %v5989_v51 }
  0x45   : > { %5288 = vmatprep.subr.bf16.mxu0 %v5775_v59  ;;  %5095 = vmatpush3.bf16.msra.mxu1 %v5779_v48  ;;  %v2194_v48 = vmul.f32 %v5989_v51, %v6041_v26  ;;  %v2295_v4 = vsel %vm1308_vm0, %v2292_v49, %v2294_v57  ;;  %7986 = vst [vmem:[#allocation34_spill] sm:$0xff] %v6256_v7 }
  0x46   : > { %7984 = vst [vmem:[#allocation32_spill] sm:$0xff] %v6235_v32  ;;  %5065 = vmatmul.mubr.bf16.gmra.mrb[12].mxu1 %v454_v41  ;;  %5096 = vmatprep.subr.bf16.mxu1 %v5781_v22  ;;  %v2293_v41 = vsel %vm1308_vm0, %v2291_v43, %v2292_v49  ;;  %v6267_v27 = vmul.f32 %v6235_v32, %v5934_v20  ;;  %v2297_v38 = vrot.slane %v2195_v16, 1  ;;  %v2301_v61 = vrot.slane %v2197_v39, 1 }
  0x47   : > { %5257 = vmatmul.mubr.bf16.gmra.mrb[12].mxu0 %v1914_v24  ;;  %5068 = vmatprep.mubr.bf16.mxu1 %v455_v56  ;;  %v2196_v56 = vmul.f32 %v5989_v51, %v6061_v46  ;;  %v456_v24 = vpack.c.bf16 %v434_v36, %v433_v31  ;;  %v4803_v31 = vld [vmem:[%s5910_s17 + $0xa8] sm:$0xff]   ;;  %v278_v36 = vld [vmem:[%s5910_s17 + $0xb4] sm:$0xff]   ;;  %v457_v43 = vpack.c.bf16 %v436_v42, %v435_v55 }
  0x48   : > { %5289 = vmatpush3.bf16.msra.mxu0 %v5775_v59  ;;  %5292 = vmatprep.mubr.bf16.mxu0 %v2393_v30  ;;  %v6263_v59 = vmul.f32 %v6233_v47, %v5934_v20  ;;  %v2296_v30 = vrot.slane %v2194_v48, 1  ;;  %v2395_v49 = vpack.c.bf16 %v2295_v4, %v2293_v41  ;;  %v2198_v57 = vmul.f32 %v6076_v58, %v5989_v51  ;;  %v5780_v42 = vld [vmem:[%s7839_s1 + $0x88] sm:$0xff]  }
  0x49   : > { %5290 = vmatprep.subr.bf16.mxu0 %v5776_v37  ;;  %5097 = vmatpush3.bf16.msra.mxu1 %v5781_v22  ;;  %v2299_v46 = vrot.slane %v2196_v56, 1  ;;  %v439_v22 = vmul.f32 %v5934_v20, %v6249_v2  ;;  %v440_v53 = vmul.f32 %v5934_v20, %v6256_v7  ;;  %v2304_v48 = vrot.slane %v2199_v23, 1 }
  0x4a   : > { %5098 = vmatprep.subr.bf16.mxu1 %v5783_v3  ;;  %v458_v55 = vpack.c.bf16 %v6267_v27, %v6263_v59  ;;  %v2302_v41 = vrot.slane %v2198_v57, 1  ;;  %v6291_v4 = vunpack.c.l.bf16 %v4803_v31  ;;  %v6293_v16 = vunpack.c.h.bf16 %v4803_v31 }
  0x4b   : > { %v2200_v56 = vmul.f32 %v5989_v51, %v6100_v11  ;;  %v2201_v59 = vmul.f32 %v5989_v51, %v6102_v12  ;;  %v2298_v23 = vsel %vm1308_vm0, %v2296_v30, %v2297_v38  ;;  %v6302_v27 = vunpack.c.l.bf16 %v278_v36  ;;  %v262_v30 = vld [vmem:[%s5910_s17 + $0x74] sm:$0x1] }
  0x4c   : > { %5291 = vmatpush3.bf16.msra.mxu0 %v5776_v37  ;;  %v6289_v37 = vld [vmem:[%s7839_s1 + $0x180] sm:$0xff]   ;;  %7987 = vst [vmem:[#allocation35_spill] sm:$0xff] %v6291_v4  ;;  %7988 = vst [vmem:[#allocation36_spill] sm:$0xff] %v6293_v16  ;;  %v2300_v39 = vsel %vm1308_vm0, %v2297_v38, %v2299_v46  ;;  %v459_v31 = vpack.c.bf16 %v440_v53, %v439_v22  ;;  %v2303_v57 = vsel %vm1308_vm0, %v2301_v61, %v2302_v41 }
  0x4d   : > { %5324 = vmatprep.subr.bf16.mxu0 %v5778_v25  ;;  %5099 = vmatpush3.bf16.msra.mxu1 %v5783_v3  ;;  %v2202_v3 = vmul.f32 %v5989_v51, %v6119_v40  ;;  %7989 = vst [vmem:[#allocation37_spill] sm:$0xff] %v6302_v27  ;;  %v2306_v40 = vrot.slane %v2200_v56, 1  ;;  %v441_v46 = vmul.f32 %v6291_v4, %v5934_v20  ;;  %v4804_v56 = vld [vmem:[%s5910_s17 + $0xc0] sm:$0xff]  }
  0x4e   : > { %5069 = vmatmul.mubr.bf16.gmra.mrb[16].mxu1 %v456_v24  ;;  %v6304_v24 = vunpack.c.h.bf16 %v278_v36  ;;  %v2307_v36 = vrot.slane %v2201_v59, 1  ;;  %5132 = vmatprep.subr.bf16.mxu1 %v6289_v37  ;;  %v442_v38 = vmul.f32 %v6293_v16, %v5934_v20  ;;  %v2205_v22 = vmul.f32 %v5989_v51, %v6144_v63  ;;  %v265_v59 = vld [vmem:[%s5910_s17 + $0x80] sm:$0x1]  ;;  %v5784_v63 = vld [vmem:[%s7839_s1 + $0x98] sm:$0xff]  }
  0x4f   : > { %5293 = vmatmul.mubr.bf16.vlgmr.msra.gmra.mrb[0].mxu0 %v2394_v14  ;;  %5072 = vmatprep.mubr.bf16.mxu1 %v457_v43  ;;  %v5782_v14 = vld [vmem:[%s7839_s1 + $0x90] sm:$0xff]   ;;  %v2305_v43 = vsel %vm1308_vm0, %v2302_v41, %v2304_v48  ;;  %v2396_v53 = vpack.c.bf16 %v2300_v39, %v2298_v23  ;;  %v2309_v61 = vrot.slane %v2202_v3, 1  ;;  %v443_v41 = vmul.f32 %v5934_v20, %v6302_v27 }
  0x50   : > { %7990 = vst [vmem:[#allocation38_spill] sm:$0xff] %v6304_v24  ;;  %5325 = vmatpush3.bf16.msra.mxu0 %v5778_v25  ;;  %5296 = vmatprep.mubr.bf16.mxu0 %v2395_v49  ;;  %v2203_v25 = vmul.f32 %v6128_v44, %v5989_v51  ;;  %v2204_v49 = vmul.f32 %v6130_v45, %v5989_v51  ;;  %v2314_v34 = vrot.slane %v2205_v22, 1  ;;  %v6333_v23 = vunpack.c.l.bf16 %v262_v30 }
  0x51   : > { %5326 = vmatprep.subr.bf16.mxu0 %v5780_v42  ;;  %v444_v48 = vmul.f32 %v5934_v20, %v6304_v24  ;;  %v2397_v5 = vpack.c.bf16 %v2305_v43, %v2303_v57  ;;  %v2206_v3 = vmul.f32 %v5989_v51, %v6160_v10  ;;  %v2207_v39 = vmul.f32 %v5989_v51, %v6162_v1  ;;  %v268_v1 = vld [vmem:[%s5910_s17 + $0x8c] sm:$0x1] }
  0x52   : > { %v2311_v21 = vrot.slane %v2203_v25, 1  ;;  %v2312_v60 = vrot.slane %v2204_v49, 1  ;;  %7991 = vst [vmem:[#allocation39_spill] sm:$0xff] %v6333_v23  ;;  %v2308_v57 = vsel %vm1308_vm0, %v2306_v40, %v2307_v36  ;;  %v6340_v43 = vunpack.c.l.bf16 %v4804_v56  ;;  %v4682_v25 = vld [vmem:[%s5910_s17] sm:$0xff]  }
  0x53   : > { %v345_v49 = vsub.s32 0, %v5899_v9  ;;  %v2310_v30 = vsel %vm1308_vm0, %v2307_v36, %v2309_v61  ;;  %v461_v22 = vpack.c.bf16 %v444_v48, %v443_v41  ;;  %v6345_v28 = vunpack.c.h.bf16 %v4804_v56  ;;  %v5786_v36 = vld [vmem:[%s7839_s1 + $0xa0] sm:$0xff]   ;;  %v271_v56 = vld [vmem:[%s5910_s17 + $0x98] sm:$0x1] }
  0x54   : > { %5327 = vmatpush3.bf16.msra.mxu0 %v5780_v42  ;;  %v460_v42 = vpack.c.bf16 %v442_v38, %v441_v46  ;;  %7992 = vst [vmem:[#allocation40_spill] sm:$0xff] %v6340_v43  ;;  %v2208_v10 = vmul.f32 %v5989_v51, %v6333_v23  ;;  %v2313_v40 = vsel %vm1308_vm0, %v2311_v21, %v2312_v60  ;;  %v6351_v46 = vunpack.c.l.bf16 %v265_v59 }
  0x55   : > { %5328 = vmatprep.subr.bf16.mxu0 %v5782_v14  ;;  %7993 = vst [vmem:[#allocation41_spill] sm:$0xff] %v6345_v28  ;;  %v2315_v38 = vsel %vm1308_vm0, %v2312_v60, %v2314_v34  ;;  %v6363_v21 = vunpack.c.h.bf16 %v4682_v25  ;;  %v6366_v41 = vrot.slane %v5927_v17, %v345_v49  ;;  %v2398_v59 = vpack.c.bf16 %v2310_v30, %v2308_v57  ;;  %v5788_v57 = vld [vmem:[%s7839_s1 + $0xa8] sm:$0xff]  }
  0x56   : > { %5073 = vmatmul.mubr.bf16.gmra.mrb[20].mxu1 %v458_v55  ;;  %v2316_v55 = vrot.slane %v2206_v3, 1  ;;  %7994 = vst [vmem:[#allocation42_spill] sm:$0xff] %v6351_v46  ;;  %v2319_v61 = vrot.slane %v2208_v10, 1  ;;  %v2211_v48 = vmul.f32 %v5989_v51, %v6351_v46  ;;  %v6371_v60 = vunpack.c.l.bf16 %v268_v1 }
  0x57   : > { %5297 = vmatmul.mubr.bf16.gmra.mrb[4].mxu0 %v2396_v53  ;;  %5076 = vmatprep.mubr.bf16.mxu1 %v459_v31  ;;  %v2209_v31 = vmul.f32 %v6198_v62, %v5989_v51  ;;  %v2317_v53 = vrot.slane %v2207_v39, 1  ;;  %7996 = vst [vmem:[#allocation44_spill] sm:$0xff] %v6363_v21  ;;  %v2399_v10 = vpack.c.bf16 %v2315_v38, %v2313_v40 }
  0x58   : > { %5300 = vmatprep.mubr.bf16.mxu0 %v2397_v5  ;;  %5329 = vmatpush3.bf16.msra.mxu0 %v5782_v14  ;;  %v2210_v5 = vmul.f32 %v6200_v0, %v5989_v51  ;;  %v6361_v14 = vunpack.c.l.bf16 %v4682_v25  ;;  %7997 = vst [vmem:[#allocation45_spill] sm:$0xff] %v6371_v60  ;;  %v2324_v39 = vrot.slane %v2211_v48, 1  ;;  %v445_v23 = vmul.f32 %v6340_v43, %v5934_v20 }
  0x59   : > { %5330 = vmatprep.subr.bf16.mxu0 %v5784_v63  ;;  %v2321_v3 = vrot.slane %v2209_v31, 1  ;;  %v446_v17 = vmul.f32 %v6345_v28, %v5934_v20  ;;  %v2212_v25 = vmul.f32 %v5989_v51, %v6211_v8  ;;  %v2318_v1 = vsel %vm1308_vm0, %v2316_v55, %v2317_v53  ;;  %v274_v55 = vld [vmem:[%s5910_s17 + $0xa4] sm:$0x1] }
  0x5a   : > { %7995 = vst [vmem:[#allocation43_spill] sm:$0xff] %v6361_v14  ;;  %v2322_v34 = vrot.slane %v2210_v5, 1  ;;  %v347_v49 = vmul.f32 %v6361_v14, %v6366_v41  ;;  %v348_v30 = vmul.f32 %v6363_v21, %v6366_v41  ;;  %v2213_v40 = vmul.f32 %v5989_v51, %v6213_v15  ;;  %v5790_v5 = vld [vmem:[%s7839_s1 + $0xb0] sm:$0xff]  }
  0x5b   : > { %v6393_v31 = vunpack.c.l.bf16 %v271_v56  ;;  %v462_v48 = vpack.c.bf16 %v446_v17, %v445_v23  ;;  %v5792_v23 = vld [vmem:[%s7839_s1 + $0xb8] sm:$0xff]   ;;  %v350_v17 = vmul.f32 %v6366_v41, %v5931_v19 }
  0x5c   : > { %5331 = vmatpush3.bf16.msra.mxu0 %v5784_v63  ;;  %v2320_v63 = vsel %vm1308_vm0, %v2317_v53, %v2319_v61  ;;  %v2323_v20 = vsel %vm1308_vm0, %v2321_v3, %v2322_v34  ;;  %v2325_v38 = vsel %vm1308_vm0, %v2322_v34, %v2324_v39  ;;  %v2215_v53 = vmul.f32 %v6233_v47, %v5989_v51 }
  0x5d   : > { %5332 = vmatprep.subr.bf16.mxu0 %v5786_v36  ;;  %7998 = vst [vmem:[#allocation46_spill] sm:$0xff] %v6393_v31  ;;  %v2217_v61 = vmul.f32 %v5989_v51, %v6393_v31  ;;  %v2400_v56 = vpack.c.bf16 %v2320_v63, %v2318_v1  ;;  %v2401_v3 = vpack.c.bf16 %v2325_v38, %v2323_v20  ;;  %v2326_v34 = vrot.slane %v2212_v25, 1 }
  0x5e   : > { %5077 = vmatmul.mubr.bf16.gmra.mrb[24].mxu1 %v460_v42  ;;  %v2214_v42 = vmul.f32 %v5989_v51, %v6371_v60  ;;  %v2327_v39 = vrot.slane %v2213_v40, 1  ;;  %v2331_v46 = vrot.slane %v2215_v53, 1  ;;  %v349_v31 = vmul.f32 %v6366_v41, %v5929_v18 }
  0x5f   : > { %5301 = vmatmul.mubr.bf16.gmra.mrb[8].mxu0 %v2398_v59  ;;  %5080 = vmatprep.mubr.bf16.mxu1 %v461_v22  ;;  %v2216_v22 = vmul.f32 %v6235_v32, %v5989_v51  ;;  %v379_v59 = vpack.c.bf16 %v348_v30, %v347_v49  ;;  %v2334_v47 = vrot.slane %v2217_v61, 1  ;;  %v351_v25 = vmul.f32 %v5949_v29, %v6366_v41  ;;  %v280_v61 = vld [vmem:[%s5910_s17 + $0xbc] sm:$0x1] }
  0x60   : > { %5304 = vmatprep.mubr.bf16.mxu0 %v2399_v10  ;;  %5333 = vmatpush3.bf16.msra.mxu0 %v5786_v36  ;;  %v6406_v36 = vunpack.c.l.bf16 %v274_v55  ;;  %v277_v10 = vld [vmem:[%s5910_s17 + $0xb0] sm:$0x1]  ;;  %v2329_v60 = vrot.slane %v2214_v42, 1  ;;  %v352_v1 = vmul.f32 %v5958_v33, %v6366_v41  ;;  %v2218_v63 = vmul.f32 %v5989_v51, %v6249_v2 }
  0x61   : > { %5334 = vmatprep.subr.bf16.mxu0 %v5788_v57  ;;  %v2332_v32 = vrot.slane %v2216_v22, 1  ;;  %v2219_v49 = vmul.f32 %v5989_v51, %v6256_v7  ;;  %v2328_v20 = vsel %vm1308_vm0, %v2326_v34, %v2327_v39  ;;  %v2221_v38 = vmul.f32 %v6291_v4, %v5989_v51 }
  0x62   : > { %7999 = vst [vmem:[#allocation47_spill] sm:$0xff] %v6406_v36  ;;  %v2220_v30 = vmul.f32 %v5989_v51, %v6406_v36  ;;  %v2330_v40 = vsel %vm1308_vm0, %v2327_v39, %v2329_v60  ;;  %v2222_v53 = vmul.f32 %v6293_v16, %v5989_v51  ;;  %v6442_v60 = vld [vmem:[%s7839_s1 + $0x140] sm:$0xff]   ;;  %v353_v34 = vmul.f32 %v6366_v41, %v5986_v50  ;;  %v5787_v39 = vld [vmem:[%s7839_s1 + $0x188] sm:$0xff]  }
  0x63   : > { %v2333_v42 = vsel %vm1308_vm0, %v2331_v46, %v2332_v32  ;;  %v2335_v55 = vsel %vm1308_vm0, %v2332_v32, %v2334_v47  ;;  %v380_v46 = vpack.c.bf16 %v350_v17, %v349_v31  ;;  %v2336_v47 = vrot.slane %v2218_v63, 1 }
  0x64   : > { %5335 = vmatpush3.bf16.msra.mxu0 %v5788_v57  ;;  %v6420_v57 = vunpack.c.l.bf16 %v277_v10  ;;  %v2337_v32 = vrot.slane %v2219_v49, 1  ;;  %v6447_v10 = vunpack.c.l.bf16 %v280_v61  ;;  %v2342_v36 = vrot.slane %v2222_v53, 1  ;;  %v6479_v53 = vld [vmem:[%s5910_s17 + $0xd4] sm:$0x1] }
  0x65   : > { %5336 = vmatprep.subr.bf16.mxu0 %v5790_v5  ;;  %v2224_v63 = vmul.f32 %v5989_v51, %v6302_v27  ;;  %8003 = vst [vmem:[#allocation51_spill] sm:$0xff] %v6479_v53 }
  0x66   : > { %5081 = vmatmul.mubr.bf16.gmra.mrb[28].mxu1 %v462_v48  ;;  %8000 = vst [vmem:[#allocation48_spill] sm:$0xff] %v6420_v57  ;;  %v2223_v22 = vmul.f32 %v5989_v51, %v6420_v57  ;;  %v2402_v48 = vpack.c.bf16 %v2330_v40, %v2328_v20  ;;  %8001 = vst [vmem:[#allocation49_spill] sm:$0xff] %v6447_v10  ;;  %v2341_v57 = vrot.slane %v2221_v38, 1  ;;  %v5789_v40 = vld [vmem:[%s7839_s1 + $0x190] sm:$0xff]  }
  0x67   : > { %5305 = vmatmul.mubr.bf16.gmra.mrb[12].mxu0 %v2400_v56  ;;  %5100 = vmatprep.mubr.bf16.mxu1 %v379_v59  ;;  %v2339_v56 = vrot.slane %v2220_v30, 1  ;;  %v381_v59 = vpack.c.bf16 %v352_v1, %v351_v25  ;;  %v354_v25 = vmul.f32 %v6366_v41, %v5992_v54  ;;  %v356_v1 = vmul.f32 %v6025_v13, %v6366_v41  ;;  %v284_v38 = vld [vmem:[%s5910_s17 + $0xcc] sm:$0xff]  }
  0x68   : > { %5308 = vmatprep.mubr.bf16.mxu0 %v2401_v3  ;;  %5337 = vmatpush3.bf16.msra.mxu0 %v5790_v5  ;;  %v283_v5 = vld [vmem:[%s5910_s17 + $0xc8] sm:$0x1]  ;;  %v2403_v3 = vpack.c.bf16 %v2335_v55, %v2333_v42  ;;  %v2344_v31 = vrot.slane %v2223_v22, 1  ;;  %v2338_v49 = vsel %vm1308_vm0, %v2336_v47, %v2337_v32  ;;  %v2225_v20 = vmul.f32 %v5989_v51, %v6304_v24  ;;  %v6495_v24 = vld [vmem:[%s5915_s20] sm:$0xff] }
  0x69   : > { %5338 = vmatprep.subr.bf16.mxu0 %v5792_v23  ;;  %v6452_v17 = vunpack.c.l.bf16 %v283_v5  ;;  %v2340_v30 = vsel %vm1308_vm0, %v2337_v32, %v2339_v56  ;;  %v2226_v42 = vmul.f32 %v5989_v51, %v6447_v10  ;;  %v2228_v55 = vmul.f32 %v6345_v28, %v5989_v51 }
  0x6a   : > { %v2669_v22 = vsub.s32 2, %v5899_v9  ;;  %v2343_v61 = vsel %vm1308_vm0, %v2341_v57, %v2342_v36  ;;  %v2404_v47 = vpack.c.bf16 %v2340_v30, %v2338_v49  ;;  %v2346_v56 = vrot.slane %v2224_v63, 1 }
  0x6b   : > { %8002 = vst [vmem:[#allocation50_spill] sm:$0xff] %v6452_v17  ;;  %v2229_v5 = vmul.f32 %v5989_v51, %v6452_v17  ;;  %v6489_v28 = vunpack.c.l.bf16 %v284_v38  ;;  %v7891_v57 = vunpack.c.l.bf16 %v6479_v53  ;;  %v2352_v17 = vrot.slane %v2228_v55, 1 }
  0x6c   : > { %5339 = vmatpush3.bf16.msra.mxu0 %v5792_v23  ;;  %v355_v23 = vmul.f32 %v6017_v6, %v6366_v41  ;;  %v358_v63 = vmul.f32 %v6366_v41, %v6048_v35  ;;  %v359_v49 = vmul.f32 %v6069_v52, %v6366_v41  ;;  %v360_v30 = vmul.f32 %v6076_v58, %v6366_v41 }
  0x6d   : > { %5372 = vmatprep.subr.bf16.mxu0 %v6442_v60  ;;  %8005 = vst [vmem:[#allocation53_spill] sm:$0xff] %v6489_v28 }
  0x6e   : > { %5101 = vmatmul.mubr.bf16.vlgmr.msra.gmra.mrb[0].mxu1 %v380_v46  ;;  %v2345_v46 = vsel %vm1308_vm0, %v2342_v36, %v2344_v31  ;;  %v383_v32 = vpack.c.bf16 %v356_v1, %v355_v23  ;;  %v2349_v36 = vrot.slane %v2226_v42, 1  ;;  %v357_v1 = vmul.f32 %v6366_v41, %v6041_v26 }
  0x6f   : > { %5309 = vmatmul.mubr.bf16.gmra.mrb[16].mxu0 %v2402_v48  ;;  %5133 = vmatpush3.bf16.msra.mxu1 %v6289_v37  ;;  %v2227_v37 = vmul.f32 %v6340_v43, %v5989_v51  ;;  %v382_v48 = vpack.c.bf16 %v354_v25, %v353_v34  ;;  %v6491_v43 = vunpack.c.h.bf16 %v284_v38  ;;  %v2405_v10 = vpack.c.bf16 %v2345_v46, %v2343_v61 }
  0x70   : > { %5104 = vmatprep.mubr.bf16.mxu1 %v381_v59  ;;  %5312 = vmatprep.mubr.bf16.mxu0 %v2403_v3  ;;  %v6487_v59 = vld [vmem:[%s5910_s17 + $0x8] sm:$0x1]  ;;  %v2347_v3 = vrot.slane %v2225_v20, 1  ;;  %v6498_v34 = vrot.slane %v6495_v24, %v2669_v22  ;;  %v2354_v25 = vrot.slane %v2229_v5, 1  ;;  %v2230_v20 = vmul.f32 %v5989_v51, %v6489_v28 }
  0x71   : > { %5134 = vmatprep.subr.bf16.mxu1 %v5787_v39  ;;  %8004 = vst [vmem:[#allocation52_spill] sm:$0xff] %v6487_v59  ;;  %8006 = vst [vmem:[#allocation54_spill] sm:$0xff] %v6491_v43  ;;  %v2351_v31 = vrot.slane %v2227_v37, 1  ;;  %v7892_v23 = vunpack.c.l.bf16 %v6487_v59  ;;  %v2231_v42 = vmul.f32 %v5989_v51, %v6491_v43  ;;  %v2232_v37 = vmul.f32 %v5989_v51, %v7891_v57  ;;  %v5796_v59 = vld [vmem:[%s7839_s1 + $0x148] sm:$0xff]  }
  0x72   : > { %v2348_v55 = vsel %vm1308_vm0, %v2346_v56, %v2347_v3  ;;  %v2350_v38 = vsel %vm1308_vm0, %v2347_v3, %v2349_v36  ;;  %v2355_v61 = vsel %vm1308_vm0, %v2352_v17, %v2354_v25  ;;  %v2671_v46 = vmul.f32 %v6361_v14, %v6498_v34 }
  0x73   : > { %5135 = vmatpush3.bf16.msra.mxu1 %v5787_v39  ;;  %v5791_v39 = vld [vmem:[%s7839_s1 + $0x198] sm:$0xff]   ;;  %v2353_v22 = vsel %vm1308_vm0, %v2351_v31, %v2352_v17  ;;  %v2672_v5 = vmul.f32 %v6363_v21, %v6498_v34  ;;  %v2673_v51 = vmul.f32 %v6498_v34, %v7892_v23  ;;  %v2357_v17 = vrot.slane %v2231_v42, 1  ;;  %v5795_v23 = vld [vmem:[%s7839_s1 + $0x1a8] sm:$0xff]  }
  0x74   : > { %5136 = vmatprep.subr.bf16.mxu1 %v5789_v40  ;;  %v2359_v56 = vrot.slane %v2232_v37, 1  ;;  %v2407_v3 = vpack.c.bf16 %v2355_v61, %v2353_v22  ;;  %v361_v36 = vmul.f32 %v6366_v41, %v6100_v11  ;;  %v2768_v31 = vrot.slane %v2671_v46, 2  ;;  %v8007_v37 = vld [vmem:[#allocation5_spill] sm:$0xff]  ;;  %v8013_v21 = vld [vmem:[#allocation31_spill] sm:$0xff] }
  0x75   : > { %v2769_v25 = vrot.slane %v2672_v5, 2  ;;  %v2771_v57 = vrot.slane %v2673_v51, 2  ;;  %v2675_v42 = vmul.f32 %v6498_v34, %v5931_v19  ;;  %v2678_v22 = vmul.f32 %v5958_v33, %v6498_v34  ;;  %v8008_v5 = vld [vmem:[#allocation8_spill] sm:$0xff] }
  0x76   : > { %5105 = vmatmul.mubr.bf16.gmra.mrb[4].mxu1 %v382_v48  ;;  %v385_v48 = vpack.c.bf16 %v360_v30, %v359_v49  ;;  %v2674_v49 = vmul.f32 %v6498_v34, %v5929_v18  ;;  %v2679_v51 = vmul.f32 %v6498_v34, %v8008_v5 }
  0x77   : > { %5313 = vmatmul.mubr.bf16.gmra.mrb[20].mxu0 %v2404_v47  ;;  %5108 = vmatprep.mubr.bf16.mxu1 %v383_v32  ;;  %v2406_v47 = vpack.c.bf16 %v2350_v38, %v2348_v55  ;;  %v2356_v32 = vrot.slane %v2230_v20, 1  ;;  %v2360_v20 = vsel %vm1308_vm0, %v2357_v17, %v2359_v56  ;;  %v2676_v55 = vmul.f32 %v6498_v34, %v8007_v37 }
  0x78   : > { %5316 = vmatprep.mubr.bf16.mxu0 %v2405_v10  ;;  %5137 = vmatpush3.bf16.msra.mxu1 %v5789_v40  ;;  %v5793_v10 = vld [vmem:[%s7839_s1 + $0x1a0] sm:$0xff]   ;;  %v384_v40 = vpack.c.bf16 %v358_v63, %v357_v1  ;;  %v362_v1 = vmul.f32 %v6366_v41, %v6102_v12  ;;  %v363_v63 = vmul.f32 %v6128_v44, %v6366_v41  ;;  %v2779_v43 = vrot.slane %v2678_v22, 2 }
  0x79   : > { %5138 = vmatprep.subr.bf16.mxu1 %v5791_v39  ;;  %v2358_v30 = vsel %vm1308_vm0, %v2356_v32, %v2357_v17  ;;  %v2677_v38 = vmul.f32 %v5949_v29, %v6498_v34  ;;  %v2770_v61 = vsel %vm2767_vm1, %v2768_v31, %v2769_v25  ;;  %v2772_v46 = vsel %vm2767_vm1, %v2769_v25, %v2771_v57  ;;  %v5799_v57 = vld [vmem:[%s7839_s1 + $0x1b8] sm:$0xff]  }
  0x7a   : > { %v2773_v32 = vrot.slane %v2674_v49, 2  ;;  %v2774_v17 = vrot.slane %v2675_v42, 2  ;;  %v2880_v56 = vpack.c.bf16 %v2772_v46, %v2770_v61  ;;  %v2781_v31 = vrot.slane %v2679_v51, 2  ;;  %v8009_v25 = vld [vmem:[#allocation25_spill] sm:$0xff]  ;;  %v8012_v51 = vld [vmem:[#allocation14_spill] sm:$0xff] }
  0x7b   : > { %v2778_v53 = vrot.slane %v2677_v38, 2  ;;  %v365_v28 = vmul.f32 %v6366_v41, %v8009_v25  ;;  %v367_v49 = vmul.f32 %v6198_v62, %v6366_v41  ;;  %v2683_v61 = vmul.f32 %v6017_v6, %v6498_v34 }
  0x7c   : > { %5139 = vmatpush3.bf16.msra.mxu1 %v5791_v39  ;;  %v364_v39 = vmul.f32 %v6130_v45, %v6366_v41  ;;  %v2782_v22 = vsel %vm2767_vm1, %v2779_v43, %v2781_v31  ;;  %v2684_v46 = vmul.f32 %v6025_v13, %v6498_v34 }
  0x7d   : > { %5140 = vmatprep.subr.bf16.mxu1 %v5793_v10  ;;  %v2780_v42 = vsel %vm2767_vm1, %v2778_v53, %v2779_v43  ;;  %v6593_v53 = vld [vmem:[%s7839_s1 + $0x40] sm:$0xff]  }
  0x7e   : > { %5109 = vmatmul.mubr.bf16.gmra.mrb[8].mxu1 %v384_v40  ;;  %v5797_v40 = vld [vmem:[%s7839_s1 + $0x1b0] sm:$0xff]  }
  0x7f   : > { %5317 = vmatmul.mubr.bf16.gmra.mrb[24].mxu0 %v2406_v47  ;;  %5112 = vmatprep.mubr.bf16.mxu1 %v385_v48  ;;  %v386_v48 = vpack.c.bf16 %v362_v1, %v361_v36  ;;  %v387_v47 = vpack.c.bf16 %v364_v39, %v363_v63  ;;  %v8010_v36 = vld [vmem:[#allocation26_spill] sm:$0xff]  ;;  %v2680_v63 = vmul.f32 %v6498_v34, %v5986_v50 }
  0x80   : > { %5320 = vmatprep.mubr.bf16.mxu0 %v2407_v3  ;;  %5141 = vmatpush3.bf16.msra.mxu1 %v5793_v10  ;;  %v2408_v10 = vpack.c.bf16 %v2360_v20, %v2358_v30  ;;  %v2776_v3 = vrot.slane %v2676_v55, 2  ;;  %v366_v1 = vmul.f32 %v6366_v41, %v8010_v36  ;;  %v2681_v39 = vmul.f32 %v6498_v34, %v5992_v54  ;;  %v8011_v55 = vld [vmem:[#allocation11_spill] sm:$0xff] }
  0x81   : > { %5142 = vmatprep.subr.bf16.mxu1 %v5795_v23  ;;  %v368_v30 = vmul.f32 %v6200_v0, %v6366_v41  ;;  %v2682_v38 = vmul.f32 %v6498_v34, %v8011_v55 }
  0x82   : > { %v2777_v20 = vsel %vm2767_vm1, %v2774_v17, %v2776_v3  ;;  %v370_v3 = vmul.f32 %v6366_v41, %v6213_v15 }
  0x83   : > { %v389_v43 = vpack.c.bf16 %v368_v30, %v367_v49  ;;  %v2786_v31 = vrot.slane %v2682_v38, 2  ;;  %v8014_v49 = vld [vmem:[#allocation32_spill] sm:$0xff] }
  0x84   : > { %5143 = vmatpush3.bf16.msra.mxu1 %v5795_v23  ;;  %v2775_v23 = vsel %vm2767_vm1, %v2773_v32, %v2774_v17  ;;  %v2882_v17 = vpack.c.bf16 %v2782_v22, %v2780_v42  ;;  %v372_v30 = vmul.f32 %v8014_v49, %v6366_v41  ;;  %v8015_v42 = vld [vmem:[#allocation15_spill] sm:$0xff]  ;;  %v2689_v22 = vmul.f32 %v6069_v52, %v6498_v34 }
  0x85   : > { %5144 = vmatprep.subr.bf16.mxu1 %v5797_v40  ;;  %v2881_v32 = vpack.c.bf16 %v2777_v20, %v2775_v23  ;;  %v2687_v20 = vmul.f32 %v6498_v34, %v6048_v35  ;;  %v2688_v38 = vmul.f32 %v6498_v34, %v8015_v42 }
  0x86   : > { %5113 = vmatmul.mubr.bf16.gmra.mrb[12].mxu1 %v386_v48  ;;  %v2685_v48 = vmul.f32 %v6498_v34, %v8012_v51  ;;  %v2798_v37 = vrot.slane %v2689_v22, 2 }
  0x87   : > { %5321 = vmatmul.mubr.bf16.gmra.mrb[28].mxu0 %v2408_v10  ;;  %5116 = vmatprep.mubr.bf16.mxu1 %v387_v47  ;;  %v388_v10 = vpack.c.bf16 %v366_v1, %v365_v28  ;;  %v2783_v47 = vrot.slane %v2680_v63, 2  ;;  %v371_v28 = vmul.f32 %v8013_v21, %v6366_v41  ;;  %v2788_v1 = vrot.slane %v2683_v61, 2 }
  0x88   : > { %5340 = vmatprep.mubr.bf16.mxu0 %v2880_v56  ;;  %5145 = vmatpush3.bf16.msra.mxu1 %v5797_v40  ;;  %v2784_v40 = vrot.slane %v2681_v39, 2  ;;  %v369_v56 = vmul.f32 %v6366_v41, %v6211_v8  ;;  %v2789_v63 = vrot.slane %v2684_v46, 2  ;;  %v2791_v39 = vrot.slane %v2685_v48, 2 }
  0x89   : > { %5146 = vmatprep.subr.bf16.mxu1 %v5799_v57  ;;  %v2690_v61 = vmul.f32 %v6076_v58, %v6498_v34  ;;  %v6622_v48 = vmul.f32 %v6366_v41, %v6249_v2  ;;  %v391_v14 = vpack.c.bf16 %v372_v30, %v371_v28  ;;  %v2794_v51 = vrot.slane %v2687_v20, 2  ;;  %v8017_v28 = vld [vmem:[#allocation21_spill] sm:$0xff] }
  0x8a   : > { %v2785_v23 = vsel %vm2767_vm1, %v2783_v47, %v2784_v40  ;;  %v2787_v46 = vsel %vm2767_vm1, %v2784_v40, %v2786_v31  ;;  %v2790_v47 = vsel %vm2767_vm1, %v2788_v1, %v2789_v63  ;;  %v390_v31 = vpack.c.bf16 %v370_v3, %v369_v56 }
  0x8b   : > { %v2883_v55 = vpack.c.bf16 %v2787_v46, %v2785_v23  ;;  %v2796_v5 = vrot.slane %v2688_v38, 2  ;;  %v2799_v19 = vrot.slane %v2690_v61, 2  ;;  %v2692_v56 = vmul.f32 %v6498_v34, %v6100_v11  ;;  %v8018_v46 = vld [vmem:[#allocation38_spill] sm:$0xff] }
  0x8c   : > { %5147 = vmatpush3.bf16.msra.mxu1 %v5799_v57  ;;  %v2686_v57 = vmul.f32 %v6498_v34, %v6041_v26  ;;  %v2693_v3 = vmul.f32 %v6498_v34, %v6102_v12  ;;  %v2694_v23 = vmul.f32 %v6498_v34, %v8017_v28  ;;  %v6654_v20 = vmul.f32 %v6366_v41, %v6302_v27 }
  0x8d   : > { %5180 = vmatprep.subr.bf16.mxu1 %v6593_v53  ;;  %v2797_v22 = vsel %vm2767_vm1, %v2794_v51, %v2796_v5  ;;  %v2800_v61 = vsel %vm2767_vm1, %v2798_v37, %v2799_v19  ;;  %v2803_v5 = vrot.slane %v2692_v56, 2 }
  0x8e   : > { %5117 = vmatmul.mubr.bf16.gmra.mrb[16].mxu1 %v388_v10  ;;  %v6626_v10 = vmul.f32 %v6366_v41, %v6256_v7  ;;  %v2793_v42 = vrot.slane %v2686_v57, 2  ;;  %v376_v57 = vmul.f32 %v6293_v16, %v6366_v41  ;;  %v2806_v37 = vrot.slane %v2694_v23, 2 }
  0x8f   : > { %5341 = vmatmul.mubr.bf16.vlgmr.msra.gmra.mrb[0].mxu0 %v2881_v32  ;;  %5120 = vmatprep.mubr.bf16.mxu1 %v389_v43  ;;  %v2792_v32 = vsel %vm2767_vm1, %v2789_v63, %v2791_v39  ;;  %v8016_v43 = vld [vmem:[#allocation18_spill] sm:$0xff]  ;;  %v375_v39 = vmul.f32 %v6291_v4, %v6366_v41 }
  0x90   : > { %5373 = vmatpush3.bf16.msra.mxu0 %v6442_v60  ;;  %5344 = vmatprep.mubr.bf16.mxu0 %v2882_v17  ;;  %v5798_v60 = vld [vmem:[%s7839_s1 + $0x150] sm:$0xff]   ;;  %v2691_v40 = vmul.f32 %v6498_v34, %v8016_v43  ;;  %v900_v17 = vsub.s32 6, %v5899_v9  ;;  %v2884_v1 = vpack.c.bf16 %v2792_v32, %v2790_v47  ;;  %v392_v63 = vpack.c.bf16 %v6626_v10, %v6622_v48 }
  0x91   : > { %5374 = vmatprep.subr.bf16.mxu0 %v5796_v59  ;;  %v2795_v30 = vsel %vm2767_vm1, %v2793_v42, %v2794_v51  ;;  %v6663_v48 = vmul.f32 %v6366_v41, %v8018_v46  ;;  %v2695_v42 = vmul.f32 %v6128_v44, %v6498_v34  ;;  %v2696_v10 = vmul.f32 %v6130_v45, %v6498_v34  ;;  %v8019_v47 = vld [vmem:[#allocation24_spill] sm:$0xff]  ;;  %v5802_v41 = vld [vmem:[%s7839_s1 + $0x160] sm:$0xff]  }
  0x92   : > { %v2801_v43 = vrot.slane %v2691_v40, 2  ;;  %v6657_v38 = vrot.slane %v6495_v24, %v900_v17  ;;  %v2804_v51 = vrot.slane %v2693_v3, 2  ;;  %v2698_v40 = vmul.f32 %v6498_v34, %v8009_v25 }
  0x93   : > { %v2885_v17 = vpack.c.bf16 %v2797_v22, %v2795_v30  ;;  %v2808_v23 = vrot.slane %v2695_v42, 2  ;;  %v8021_v42 = vld [vmem:[#allocation42_spill] sm:$0xff] }
  0x94   : > { %5375 = vmatpush3.bf16.msra.mxu0 %v5796_v59  ;;  %v5800_v59 = vld [vmem:[%s7839_s1 + $0x158] sm:$0xff]   ;;  %v6677_v32 = vmul.f32 %v5949_v29, %v6657_v38  ;;  %v2805_v29 = vsel %vm2767_vm1, %v2803_v5, %v2804_v51  ;;  %v2807_v18 = vsel %vm2767_vm1, %v2804_v51, %v2806_v37  ;;  %v6705_v30 = vmul.f32 %v6657_v38, %v5992_v54 }
  0x95   : > { %5376 = vmatprep.subr.bf16.mxu0 %v5798_v60  ;;  %v6718_v51 = vmul.f32 %v6017_v6, %v6657_v38  ;;  %v2704_v37 = vmul.f32 %v6498_v34, %v6211_v8 }
  0x96   : > { %5121 = vmatmul.mubr.bf16.gmra.mrb[20].mxu1 %v390_v31  ;;  %v393_v31 = vpack.c.bf16 %v376_v57, %v375_v39  ;;  %v5804_v39 = vld [vmem:[%s7839_s1 + $0x168] sm:$0xff]   ;;  %v2813_v57 = vrot.slane %v2698_v40, 2 }
  0x97   : > { %5345 = vmatmul.mubr.bf16.gmra.mrb[4].mxu0 %v2883_v55  ;;  %5124 = vmatprep.mubr.bf16.mxu1 %v391_v14  ;;  %v2697_v55 = vmul.f32 %v6498_v34, %v8019_v47  ;;  %v2802_v14 = vsel %vm2767_vm1, %v2799_v19, %v2801_v43  ;;  %v2699_v19 = vmul.f32 %v6498_v34, %v8010_v36  ;;  %v1210_v43 = vsub.s32 1, %v5899_v9 }
  0x98   : > { %5348 = vmatprep.mubr.bf16.mxu0 %v2884_v1  ;;  %5377 = vmatpush3.bf16.msra.mxu0 %v5798_v60  ;;  %v6681_v60 = vmul.f32 %v5958_v33, %v6657_v38  ;;  %v8020_v1 = vld [vmem:[#allocation39_spill] sm:$0xff]  ;;  %v2886_v3 = vpack.c.bf16 %v2802_v14, %v2800_v61  ;;  %v2809_v47 = vrot.slane %v2696_v10, 2  ;;  %v394_v33 = vpack.c.bf16 %v6663_v48, %v6654_v20 }
  0x99   : > { %5378 = vmatprep.subr.bf16.mxu0 %v5800_v59  ;;  %v2700_v56 = vmul.f32 %v6498_v34, %v8020_v1  ;;  %v2811_v28 = vrot.slane %v2697_v55, 2  ;;  %v6696_v36 = vmul.f32 %v6657_v38, %v5986_v50  ;;  %v2814_v20 = vrot.slane %v2699_v19, 2 }
  0x9a   : > { %v2701_v61 = vmul.f32 %v6198_v62, %v6498_v34  ;;  %v2702_v48 = vmul.f32 %v6200_v0, %v6498_v34  ;;  %v3156_v10 = vsub.s32 5, %v5899_v9  ;;  %v2887_v55 = vpack.c.bf16 %v2807_v18, %v2805_v29  ;;  %v5806_v18 = vld [vmem:[%s7839_s1 + $0x170] sm:$0xff]  }
  0x9b   : > { %v2816_v22 = vrot.slane %v2700_v56, 2  ;;  %v2810_v14 = vsel %vm2767_vm1, %v2808_v23, %v2809_v47  ;;  %v2812_v5 = vsel %vm2767_vm1, %v2809_v47, %v2811_v28  ;;  %v6730_v29 = vsel %vm2767_vm1, %v2813_v57, %v2814_v20 }
  0x9c   : > { %5379 = vmatpush3.bf16.msra.mxu0 %v5800_v59  ;;  %v934_v59 = vpack.c.bf16 %v6681_v60, %v6677_v32  ;;  %v2705_v32 = vmul.f32 %v6498_v34, %v6213_v15  ;;  %v8022_v60 = vld [vmem:[#allocation45_spill] sm:$0xff]  ;;  %v6734_v28 = vmul.f32 %v6025_v13, %v6657_v38  ;;  %v6738_v47 = vmul.f32 %v6657_v38, %v6041_v26 }
  0x9d   : > { %5380 = vmatprep.subr.bf16.mxu0 %v5802_v41  ;;  %v2706_v9 = vmul.f32 %v6498_v34, %v8022_v60  ;;  %v2817_v40 = vsel %vm2767_vm1, %v2814_v20, %v2816_v22  ;;  %v2818_v19 = vrot.slane %v2701_v61, 2  ;;  %v6746_v56 = vrot.slane %v6495_v24, %v1210_v43  ;;  %v5808_v43 = vld [vmem:[%s7839_s1 + $0x178] sm:$0xff]  }
  0x9e   : > { %5125 = vmatmul.mubr.bf16.gmra.mrb[24].mxu1 %v392_v63  ;;  %v2703_v63 = vmul.f32 %v6498_v34, %v8021_v42  ;;  %v2888_v23 = vpack.c.bf16 %v2812_v5, %v2810_v14  ;;  %v935_v57 = vpack.c.bf16 %v6705_v30, %v6696_v36  ;;  %v2823_v60 = vrot.slane %v2704_v37, 2  ;;  %v8026_v36 = vld [vmem:[#allocation49_spill] sm:$0xff] }
  0x9f   : > { %5349 = vmatmul.mubr.bf16.gmra.mrb[8].mxu0 %v2885_v17  ;;  %5128 = vmatprep.mubr.bf16.mxu1 %v393_v31  ;;  %v2819_v17 = vrot.slane %v2702_v48, 2  ;;  %v2824_v42 = vrot.slane %v2705_v32, 2  ;;  %v2826_v1 = vrot.slane %v2706_v9, 2  ;;  %v2707_v20 = vmul.f32 %v8013_v21, %v6498_v34  ;;  %v8023_v48 = vld [vmem:[#allocation46_spill] sm:$0xff] }
  0xa0   : > { %5352 = vmatprep.mubr.bf16.mxu0 %v2886_v3  ;;  %5381 = vmatpush3.bf16.msra.mxu0 %v5802_v41  ;;  %v6742_v41 = vmul.f32 %v6657_v38, %v6048_v35  ;;  %v2821_v31 = vrot.slane %v2703_v63, 2  ;;  %v6749_v3 = vrot.slane %v6495_v24, %v3156_v10  ;;  %v2889_v24 = vpack.c.bf16 %v2817_v40, %v6730_v29  ;;  %v6788_v32 = vld [vmem:[%s7839_s1 + $0x200] sm:$0xff]   ;;  %v8025_v29 = vld [vmem:[#allocation48_spill] sm:$0xff] }
  0xa1   : > { %5382 = vmatprep.subr.bf16.mxu0 %v5804_v39  ;;  %v936_v22 = vpack.c.bf16 %v6734_v28, %v6718_v51  ;;  %v2820_v30 = vsel %vm2767_vm1, %v2818_v19, %v2819_v17  ;;  %v6771_v63 = vmul.f32 %v6069_v52, %v6657_v38  ;;  %v2710_v10 = vmul.f32 %v6498_v34, %v6249_v2  ;;  %v8024_v51 = vld [vmem:[#allocation47_spill] sm:$0xff] }
  0xa2   : > { %v2822_v61 = vsel %vm2767_vm1, %v2819_v17, %v2821_v31  ;;  %v2711_v14 = vmul.f32 %v6498_v34, %v6256_v7  ;;  %v2828_v5 = vrot.slane %v2707_v20, 2  ;;  %v2712_v37 = vmul.f32 %v6498_v34, %v8024_v51 }
  0xa3   : > { %v911_v28 = vmul.f32 %v6076_v58, %v6657_v38  ;;  %v6800_v19 = vmul.f32 %v6657_v38, %v6100_v11  ;;  %v6806_v31 = vmul.f32 %v6657_v38, %v6102_v12 }
  0xa4   : > { %5383 = vmatpush3.bf16.msra.mxu0 %v5804_v39  ;;  %v2708_v39 = vmul.f32 %v8014_v49, %v6498_v34  ;;  %v2834_v20 = vrot.slane %v2711_v14, 2 }
  0xa5   : > { %5384 = vmatprep.subr.bf16.mxu0 %v5806_v18 }
  0xa6   : > { %5129 = vmatmul.mubr.bf16.gmra.mrb[28].mxu1 %v394_v33  ;;  %v2709_v33 = vmul.f32 %v6498_v34, %v8023_v48  ;;  %v2829_v9 = vrot.slane %v2708_v39, 2  ;;  %v5803_v39 = vld [vmem:[%s7839_s1 + $0x48] sm:$0xff]  }
  0xa7   : > { %5353 = vmatmul.mubr.bf16.gmra.mrb[12].mxu0 %v2887_v55  ;;  %5148 = vmatprep.mubr.bf16.mxu1 %v934_v59  ;;  %v6778_v59 = vsel %vm2767_vm1, %v2823_v60, %v2824_v42  ;;  %v6781_v55 = vsel %vm2767_vm1, %v2824_v42, %v2826_v1  ;;  %v2714_v60 = vmul.f32 %v6293_v16, %v6498_v34 }
  0xa8   : > { %5356 = vmatprep.mubr.bf16.mxu0 %v2888_v23  ;;  %5385 = vmatpush3.bf16.msra.mxu0 %v5806_v18  ;;  %v2713_v18 = vmul.f32 %v6291_v4, %v6498_v34  ;;  %v2715_v1 = vmul.f32 %v6498_v34, %v8025_v29  ;;  %v2890_v42 = vpack.c.bf16 %v2822_v61, %v2820_v30  ;;  %v2831_v40 = vrot.slane %v2709_v33, 2 }
  0xa9   : > { %5386 = vmatprep.subr.bf16.mxu0 %v5808_v43  ;;  %v2891_v17 = vpack.c.bf16 %v6781_v55, %v6778_v59  ;;  %v2833_v23 = vrot.slane %v2710_v10, 2  ;;  %v2836_v30 = vrot.slane %v2712_v37, 2  ;;  %v2716_v61 = vmul.f32 %v6498_v34, %v6302_v27 }
  0xaa   : > { %v2717_v33 = vmul.f32 %v6498_v34, %v8018_v46  ;;  %v2718_v59 = vmul.f32 %v6498_v34, %v8026_v36  ;;  %v2830_v10 = vsel %vm2767_vm1, %v2828_v5, %v2829_v9  ;;  %v2839_v14 = vrot.slane %v2714_v60, 2  ;;  %v8027_v5 = vld [vmem:[#allocation26_spill] sm:$0xff] }
  0xab   : > { %v2841_v55 = vrot.slane %v2715_v1, 2  ;;  %v2832_v37 = vsel %vm2767_vm1, %v2829_v9, %v2831_v40  ;;  %v6823_v29 = vmul.f32 %v6128_v44, %v6657_v38  ;;  %v6827_v34 = vmul.f32 %v6130_v45, %v6657_v38  ;;  %v8028_v36 = vld [vmem:[#allocation2_spill] sm:$0xff] }
  0xac   : > { %5387 = vmatpush3.bf16.msra.mxu0 %v5808_v43  ;;  %v2838_v43 = vrot.slane %v2713_v18, 2  ;;  %v6841_v9 = vmul.f32 %v6657_v38, %v8027_v5  ;;  %v6844_v18 = vsel %vm2767_vm1, %v2834_v20, %v2836_v30  ;;  %v2844_v60 = vrot.slane %v2717_v33, 2  ;;  %v8029_v30 = vld [vmem:[#allocation3_spill] sm:$0xff]  ;;  %v8030_v33 = vld [vmem:[#allocation5_spill] sm:$0xff] }
  0xad   : > { %5420 = vmatprep.subr.bf16.mxu0 %v6788_v32  ;;  %v2846_v1 = vrot.slane %v2718_v59, 2  ;;  %v3158_v51 = vmul.f32 %v6749_v3, %v8028_v36  ;;  %v2892_v48 = vpack.c.bf16 %v2832_v37, %v2830_v10  ;;  %v940_v59 = vpack.c.bf16 %v6827_v34, %v6823_v29  ;;  %v8032_v34 = vld [vmem:[#allocation6_spill] sm:$0xff] }
  0xae   : > { %5149 = vmatmul.mubr.bf16.vlgmr.msra.gmra.mrb[0].mxu1 %v935_v57  ;;  %v5805_v57 = vld [vmem:[%s7839_s1 + $0x50] sm:$0xff]   ;;  %v6848_v40 = vsel %vm2767_vm1, %v2838_v43, %v2839_v14  ;;  %v6869_v10 = vmul.f32 %v6198_v62, %v6657_v38  ;;  %v6884_v29 = vmul.f32 %v6200_v0, %v6657_v38 }
  0xaf   : > { %5357 = vmatmul.mubr.bf16.gmra.mrb[16].mxu0 %v2889_v24  ;;  %5181 = vmatpush3.bf16.msra.mxu1 %v6593_v53  ;;  %v6833_v24 = vsel %vm2767_vm1, %v2833_v23, %v2834_v20  ;;  %v6837_v53 = vmul.f32 %v6657_v38, %v8009_v25  ;;  %v6851_v23 = vsel %vm2767_vm1, %v2839_v14, %v2841_v55  ;;  %v3254_v37 = vrot.slane %v3158_v51, 2 }
  0xb0   : > { %5152 = vmatprep.mubr.bf16.mxu1 %v936_v22  ;;  %5360 = vmatprep.mubr.bf16.mxu0 %v2890_v42  ;;  %v2843_v22 = vrot.slane %v2716_v61, 2  ;;  %v938_v42 = vpack.c.bf16 %v911_v28, %v6771_v63  ;;  %v939_v20 = vpack.c.bf16 %v6806_v31, %v6800_v19  ;;  %v3159_v61 = vmul.f32 %v6749_v3, %v8029_v30  ;;  %v5807_v31 = vld [vmem:[%s7839_s1 + $0x58] sm:$0xff]  }
  0xb1   : > { %5182 = vmatprep.subr.bf16.mxu1 %v5803_v39  ;;  %v3160_v63 = vmul.f32 %v6749_v3, %v8030_v33  ;;  %v2893_v28 = vpack.c.bf16 %v6844_v18, %v6833_v24  ;;  %v2894_v19 = vpack.c.bf16 %v6851_v23, %v6848_v40  ;;  %v6880_v14 = vsel %vm2767_vm1, %v2844_v60, %v2846_v1  ;;  %v8033_v18 = vld [vmem:[#allocation7_spill] sm:$0xff] }
  0xb2   : > { %v6877_v43 = vsel %vm2767_vm1, %v2843_v22, %v2844_v60  ;;  %v8031_v55 = vpack.c.bf16 %v6742_v41, %v6738_v47  ;;  %v3161_v24 = vmul.f32 %v8032_v34, %v6749_v3  ;;  %v3162_v40 = vmul.f32 %v8033_v18, %v6749_v3  ;;  %v8034_v22 = vld [vmem:[#allocation8_spill] sm:$0xff]  ;;  %v8035_v41 = vld [vmem:[#allocation11_spill] sm:$0xff] }
  0xb3   : > { %5183 = vmatpush3.bf16.msra.mxu1 %v5803_v39  ;;  %v3163_v23 = vmul.f32 %v6749_v3, %v8034_v22  ;;  %v3255_v60 = vrot.slane %v3159_v61, 2  ;;  %v3257_v1 = vrot.slane %v3160_v63, 2  ;;  %v3164_v39 = vmul.f32 %v6749_v3, %v5986_v50  ;;  %v8036_v63 = vld [vmem:[#allocation14_spill] sm:$0xff] }
  0xb4   : > { %5184 = vmatprep.subr.bf16.mxu1 %v5805_v57  ;;  %v3165_v47 = vmul.f32 %v6749_v3, %v5992_v54  ;;  %v3166_v51 = vmul.f32 %v6749_v3, %v8035_v41  ;;  %v3259_v41 = vrot.slane %v3161_v24, 2  ;;  %v6930_v18 = vmul.f32 %v8013_v21, %v6657_v38 }
  0xb5   : > { %v3262_v54 = vrot.slane %v3163_v23, 2  ;;  %v6923_v61 = vsel %vm2767_vm1, %v3254_v37, %v3255_v60  ;;  %v6926_v50 = vsel %vm2767_vm1, %v3255_v60, %v3257_v1  ;;  %v6934_v24 = vmul.f32 %v8014_v49, %v6657_v38  ;;  %v5811_v37 = vld [vmem:[%s7839_s1 + $0x68] sm:$0xff]  }
  0xb6   : > { %5153 = vmatmul.mubr.bf16.gmra.mrb[4].mxu1 %v8031_v55  ;;  %v3167_v55 = vmul.f32 %v6017_v6, %v6749_v3  ;;  %v3169_v6 = vmul.f32 %v6749_v3, %v8036_v63  ;;  %v3265_v22 = vrot.slane %v3165_v47, 2  ;;  %v3267_v63 = vrot.slane %v3166_v51, 2 }
  0xb7   : > { %5361 = vmatmul.mubr.bf16.gmra.mrb[20].mxu0 %v2891_v17  ;;  %5156 = vmatprep.mubr.bf16.mxu1 %v938_v42  ;;  %v3168_v17 = vmul.f32 %v6025_v13, %v6749_v3  ;;  %v6920_v13 = vmul.f32 %v6657_v38, %v6213_v15  ;;  %v3260_v42 = vrot.slane %v3162_v40, 2  ;;  %v6953_v1 = vmul.f32 %v6657_v38, %v6249_v2 }
  0xb8   : > { %5364 = vmatprep.mubr.bf16.mxu0 %v2892_v48  ;;  %5185 = vmatpush3.bf16.msra.mxu1 %v5805_v57  ;;  %v6911_v48 = vmul.f32 %v6657_v38, %v6211_v8  ;;  %v5809_v57 = vld [vmem:[%s7839_s1 + $0x60] sm:$0xff]   ;;  %v3264_v8 = vrot.slane %v3164_v39, 2  ;;  %v3269_v34 = vrot.slane %v3167_v55, 2  ;;  %v3272_v40 = vrot.slane %v3169_v6, 2 }
  0xb9   : > { %5186 = vmatprep.subr.bf16.mxu1 %v5807_v31  ;;  %v3270_v15 = vrot.slane %v3168_v17, 2  ;;  %v3170_v39 = vmul.f32 %v6749_v3, %v6041_v26  ;;  %v6946_v23 = vsel %vm2767_vm1, %v3259_v41, %v3260_v42  ;;  %v6949_v60 = vsel %vm2767_vm1, %v3260_v42, %v3262_v54  ;;  %v8039_v42 = vld [vmem:[#allocation40_spill] sm:$0xff] }
  0xba   : > { %v6957_v6 = vmul.f32 %v6657_v38, %v6256_v7  ;;  %v6960_v47 = vsel %vm2767_vm1, %v3264_v8, %v3265_v22  ;;  %v6968_v54 = vmul.f32 %v6293_v16, %v6657_v38  ;;  %v6971_v41 = vsel %vm2767_vm1, %v3265_v22, %v3267_v63 }
  0xbb   : > { %v6974_v51 = vsel %vm2767_vm1, %v3269_v34, %v3270_v15  ;;  %v6978_v8 = vmul.f32 %v6657_v38, %v6302_v27  ;;  %v5813_v34 = vld [vmem:[%s7839_s1 + $0x70] sm:$0xff]   ;;  %v3366_v22 = vpack.c.bf16 %v6926_v50, %v6923_v61  ;;  %v943_v17 = vpack.c.bf16 %v6920_v13, %v6911_v48 }
  0xbc   : > { %5187 = vmatpush3.bf16.msra.mxu1 %v5807_v31  ;;  %v6943_v31 = vmul.f32 %v6749_v3, %v6048_v35  ;;  %v3173_v61 = vmul.f32 %v6069_v52, %v6749_v3  ;;  %v3174_v48 = vmul.f32 %v6076_v58, %v6749_v3  ;;  %v7022_v13 = vmul.f32 %v8039_v42, %v6657_v38 }
  0xbd   : > { %5188 = vmatprep.subr.bf16.mxu1 %v5809_v57  ;;  %v3179_v42 = vmul.f32 %v6128_v44, %v6749_v3  ;;  %v8046_v44 = vld [vmem:[#allocation44_spill] sm:$0xff] }
  0xbe   : > { %5157 = vmatmul.mubr.bf16.gmra.mrb[8].mxu1 %v939_v20  ;;  %v6964_v20 = vmul.f32 %v6291_v4, %v6657_v38  ;;  %v3275_v55 = vrot.slane %v6943_v31, 2  ;;  %v8038_v31 = vld [vmem:[#allocation18_spill] sm:$0xff]  ;;  %v1213_v52 = vmul.f32 %v8046_v44, %v6746_v56  ;;  %v3280_v16 = vrot.slane %v3174_v48, 2 }
  0xbf   : > { %5365 = vmatmul.mubr.bf16.gmra.mrb[24].mxu0 %v2893_v28  ;;  %5160 = vmatprep.mubr.bf16.mxu1 %v940_v59  ;;  %v6981_v28 = vsel %vm2767_vm1, %v3270_v15, %v3272_v40  ;;  %v3274_v59 = vrot.slane %v3170_v39, 2  ;;  %v8037_v39 = vld [vmem:[#allocation15_spill] sm:$0xff]  ;;  %v5815_v15 = vld [vmem:[%s7839_s1 + $0x78] sm:$0xff]   ;;  %v3289_v48 = vrot.slane %v3179_v42, 2  ;;  %v8052_v42 = vld [vmem:[#allocation54_spill] sm:$0xff] }
  0xc0   : > { %5368 = vmatprep.mubr.bf16.mxu0 %v2894_v19  ;;  %5189 = vmatpush3.bf16.msra.mxu1 %v5809_v57  ;;  %v6986_v19 = vmul.f32 %v6657_v38, %v8018_v46  ;;  %v3172_v50 = vmul.f32 %v6749_v3, %v8037_v39  ;;  %v3175_v57 = vmul.f32 %v6749_v3, %v8038_v31  ;;  %v8041_v40 = vld [vmem:[#allocation21_spill] sm:$0xff] }
  0xc1   : > { %5190 = vmatprep.subr.bf16.mxu1 %v5811_v37  ;;  %v7016_v63 = vsel %vm2767_vm1, %v3274_v59, %v3275_v55  ;;  %v8040_v46 = vpack.c.bf16 %v6841_v9, %v6837_v53  ;;  %v3177_v59 = vmul.f32 %v6749_v3, %v6102_v12  ;;  %v3178_v27 = vmul.f32 %v6749_v3, %v8041_v40  ;;  %v8044_v9 = vld [vmem:[#allocation24_spill] sm:$0xff]  ;;  %v8045_v40 = vld [vmem:[#allocation43_spill] sm:$0xff] }
  0xc2   : > { %v8042_v31 = vpack.c.bf16 %v6880_v14, %v6877_v43  ;;  %v8043_v53 = vpack.c.bf16 %v6884_v29, %v6869_v10  ;;  %v3181_v12 = vmul.f32 %v6749_v3, %v8044_v9  ;;  %v1212_v58 = vmul.f32 %v8045_v40, %v6746_v56  ;;  %v8047_v43 = vld [vmem:[#allocation52_spill] sm:$0xff] }
  0xc3   : > { %v3282_v4 = vrot.slane %v3175_v57, 2  ;;  %v8048_v14 = vunpack.c.l.bf16 %v8047_v43  ;;  %v3183_v40 = vmul.f32 %v6749_v3, %v8027_v5  ;;  %v8050_v5 = vld [vmem:[#allocation41_spill] sm:$0xff] }
  0xc4   : > { %5191 = vmatpush3.bf16.msra.mxu1 %v5811_v37  ;;  %v3176_v37 = vmul.f32 %v6749_v3, %v6100_v11  ;;  %v3180_v11 = vmul.f32 %v6130_v45, %v6749_v3  ;;  %v3279_v45 = vrot.slane %v3173_v61, 2  ;;  %v3287_v61 = vrot.slane %v3178_v27, 2 }
  0xc5   : > { %5192 = vmatprep.subr.bf16.mxu1 %v5813_v34  ;;  %v1214_v10 = vmul.f32 %v6746_v56, %v8048_v14  ;;  %v1309_v43 = vrot.slane %v1212_v58, 1  ;;  %v7072_v9 = vmul.f32 %v8050_v5, %v6657_v38 }
  0xc6   : > { %5161 = vmatmul.mubr.bf16.gmra.mrb[12].mxu1 %v8040_v46  ;;  %v3277_v46 = vrot.slane %v3172_v50, 2  ;;  %v3284_v29 = vrot.slane %v3176_v37, 2  ;;  %v3182_v50 = vmul.f32 %v6749_v3, %v8009_v25  ;;  %v3290_v57 = vrot.slane %v3180_v11, 2  ;;  %v5812_v11 = vld [vmem:[%s7839_s1 + $0x208] sm:$0xff]  }
  0xc7   : > { %5369 = vmatmul.mubr.bf16.gmra.mrb[28].mxu0 %v8042_v31  ;;  %5164 = vmatprep.mubr.bf16.mxu1 %v8043_v53  ;;  %v8049_v31 = vld [vmem:[#allocation39_spill] sm:$0xff]  ;;  %v3292_v53 = vrot.slane %v3181_v12, 2  ;;  %v1310_v37 = vrot.slane %v1213_v52, 1  ;;  %v7065_v14 = vsel %vm2767_vm1, %v3279_v45, %v3280_v16  ;;  %v7068_v25 = vsel %vm2767_vm1, %v3280_v16, %v3282_v4  ;;  %v7084_v4 = vld [vmem:[%s7839_s1 + $0x100] sm:$0xff]  }
  0xc8   : > { %5388 = vmatprep.mubr.bf16.mxu0 %v3366_v22  ;;  %5193 = vmatpush3.bf16.msra.mxu1 %v5813_v34  ;;  %v3184_v44 = vmul.f32 %v6749_v3, %v8049_v31  ;;  %v3285_v22 = vrot.slane %v3177_v59, 2  ;;  %v7062_v34 = vsel %vm2767_vm1, %v3275_v55, %v3277_v46  ;;  %v1312_v27 = vrot.slane %v1214_v10, 1  ;;  %v8051_v55 = vld [vmem:[#allocation53_spill] sm:$0xff] }
  0xc9   : > { %5194 = vmatprep.subr.bf16.mxu1 %v5815_v15  ;;  %v7079_v58 = vmul.f32 %v6657_v38, %v8051_v55  ;;  %v3294_v52 = vrot.slane %v3182_v50, 2  ;;  %v3295_v12 = vrot.slane %v3183_v40, 2  ;;  %v7095_v59 = vmul.f32 %v6657_v38, %v8052_v42  ;;  %v8068_v42 = vld [vmem:[#allocation11_spill] sm:$0xff] }
  0xca   : > { %v3297_v45 = vrot.slane %v3184_v44, 2  ;;  %v7088_v16 = vsel %vm2767_vm1, %v3284_v29, %v3285_v22  ;;  %v7098_v46 = vsel %vm2767_vm1, %v3289_v48, %v3290_v57  ;;  %v8053_v10 = vpack.c.bf16 %v6949_v60, %v6946_v23 }
  0xcb   : > { %v7107_v29 = vsel %vm2767_vm1, %v3290_v57, %v3292_v53  ;;  %v7110_v50 = vsel %vm1308_vm0, %v1309_v43, %v1310_v37  ;;  %v1215_v38 = vmul.f32 %v6746_v56, %v8028_v36  ;;  %v8055_v40 = vpack.c.bf16 %v6971_v41, %v6960_v47  ;;  %v5814_v36 = vld [vmem:[%s7839_s1 + $0x210] sm:$0xff]  }
  0xcc   : > { %5195 = vmatpush3.bf16.msra.mxu1 %v5815_v15  ;;  %v7091_v15 = vsel %vm2767_vm1, %v3285_v22, %v3287_v61  ;;  %v7119_v23 = vsel %vm1308_vm0, %v1310_v37, %v1312_v27  ;;  %v3370_v60 = vpack.c.bf16 %v7062_v34, %v7016_v63  ;;  %v7134_v47 = vsel %vm2767_vm1, %v3295_v12, %v3297_v45  ;;  %v8056_v37 = vld [vmem:[#allocation42_spill] sm:$0xff]  ;;  %v8061_v34 = vld [vmem:[#allocation29_spill] sm:$0xff] }
  0xcd   : > { %5468 = vmatprep.subr.bf16.mxu1 %v7084_v4  ;;  %v3186_v44 = vmul.f32 %v6200_v0, %v6749_v3  ;;  %v1314_v57 = vrot.slane %v1215_v38, 1  ;;  %v3187_v27 = vmul.f32 %v6749_v3, %v8056_v37  ;;  %v8057_v45 = vld [vmem:[#allocation6_spill] sm:$0xff]  ;;  %v8059_v38 = vld [vmem:[#allocation8_spill] sm:$0xff]  ;;  %v3188_v48 = vmul.f32 %v6749_v3, %v8061_v34  ;;  %v8063_v63 = vld [vmem:[#allocation45_spill] sm:$0xff] }
  0xce   : > { %5165 = vmatmul.mubr.bf16.gmra.mrb[16].mxu1 %v943_v17  ;;  %v8054_v17 = vpack.c.bf16 %v6934_v24, %v6930_v18  ;;  %v1216_v18 = vmul.f32 %v6746_v56, %v8029_v30  ;;  %v1217_v24 = vmul.f32 %v6746_v56, %v8030_v33  ;;  %v3185_v30 = vmul.f32 %v6198_v62, %v6749_v3  ;;  %v8062_v61 = vld [vmem:[#allocation30_spill] sm:$0xff] }
  0xcf   : > { %5389 = vmatmul.mubr.bf16.vlgmr.msra.gmra.mrb[0].mxu0 %v8053_v10  ;;  %v1218_v10 = vmul.f32 %v8057_v45, %v6746_v56  ;;  %v3190_v22 = vmul.f32 %v6749_v3, %v8063_v63  ;;  %v8064_v41 = vpack.c.bf16 %v6981_v28, %v6974_v51  ;;  %v8065_v33 = vpack.c.bf16 %v6968_v54, %v6964_v20  ;;  %v8069_v28 = vld [vmem:[#allocation46_spill] sm:$0xff] }
  0xd0   : > { %5168 = vmatprep.mubr.bf16.mxu1 %v8054_v17  ;;  %5421 = vmatpush3.bf16.msra.mxu0 %v6788_v32  ;;  %v7131_v32 = vsel %vm2767_vm1, %v3294_v52, %v3295_v12  ;;  %v1315_v53 = vrot.slane %v1216_v18, 1  ;;  %v1317_v43 = vrot.slane %v1217_v24, 1  ;;  %v5816_v52 = vld [vmem:[%s7839_s1 + $0x218] sm:$0xff]   ;;  %v3299_v12 = vrot.slane %v3185_v30, 2  ;;  %v8058_v17 = vld [vmem:[#allocation7_spill] sm:$0xff] }
  0xd1   : > { %5392 = vmatprep.mubr.bf16.mxu0 %v8055_v40  ;;  %5422 = vmatprep.subr.bf16.mxu0 %v5812_v11  ;;  %v1220_v40 = vmul.f32 %v6746_v56, %v8059_v38  ;;  %v8060_v18 = vpack.c.bf16 %v6957_v6, %v6953_v1  ;;  %v3300_v24 = vrot.slane %v3186_v44, 2  ;;  %v3189_v30 = vmul.f32 %v6749_v3, %v8062_v61  ;;  %v8066_v1 = vld [vmem:[#allocation9_spill] sm:$0xff]  ;;  %v8067_v44 = vld [vmem:[#allocation10_spill] sm:$0xff] }
  0xd2   : > { %v1221_v6 = vmul.f32 %v6746_v56, %v8066_v1  ;;  %v1223_v55 = vmul.f32 %v6746_v56, %v8068_v42  ;;  %v3191_v63 = vmul.f32 %v8013_v21, %v6749_v3  ;;  %v3192_v51 = vmul.f32 %v8014_v49, %v6749_v3 }
  0xd3   : > { %v3193_v20 = vmul.f32 %v6749_v3, %v8069_v28  ;;  %v3302_v54 = vrot.slane %v3187_v27, 2  ;;  %v1322_v34 = vrot.slane %v1220_v40, 1  ;;  %v7202_v49 = vsel %vm2767_vm1, %v3299_v12, %v3300_v24  ;;  %v8073_v12 = vld [vmem:[#allocation14_spill] sm:$0xff] }
  0xd4   : > { %5423 = vmatpush3.bf16.msra.mxu0 %v5812_v11  ;;  %v1219_v11 = vmul.f32 %v8058_v17, %v6746_v56  ;;  %v3304_v21 = vrot.slane %v3188_v48, 2  ;;  %v3305_v28 = vrot.slane %v3189_v30, 2  ;;  %v3307_v37 = vrot.slane %v3190_v22, 2  ;;  %v5818_v22 = vld [vmem:[%s7839_s1 + $0x228] sm:$0xff]   ;;  %v8070_v48 = vld [vmem:[#allocation12_spill] sm:$0xff] }
  0xd5   : > { %5424 = vmatprep.subr.bf16.mxu0 %v5814_v36  ;;  %v1324_v27 = vrot.slane %v1221_v6, 1  ;;  %v1327_v62 = vrot.slane %v1223_v55, 1  ;;  %v3309_v42 = vrot.slane %v3191_v63, 2  ;;  %v7205_v40 = vsel %vm2767_vm1, %v3300_v24, %v3302_v54  ;;  %v5820_v54 = vld [vmem:[%s7839_s1 + $0x238] sm:$0xff]  }
  0xd6   : > { %5169 = vmatmul.mubr.bf16.gmra.mrb[20].mxu1 %v8060_v18  ;;  %v1222_v18 = vmul.f32 %v6746_v56, %v8067_v44  ;;  %v1320_v61 = vrot.slane %v1219_v11, 1  ;;  %v3312_v11 = vrot.slane %v3193_v20, 2  ;;  %v1224_v55 = vmul.f32 %v8070_v48, %v6746_v56 }
  0xd7   : > { %5393 = vmatmul.mubr.bf16.gmra.mrb[4].mxu0 %v8064_v41  ;;  %5172 = vmatprep.mubr.bf16.mxu1 %v8065_v33  ;;  %v5817_v33 = vld [vmem:[%s7839_s1 + $0x220] sm:$0xff]   ;;  %v1319_v41 = vrot.slane %v1218_v10, 1  ;;  %v3310_v10 = vrot.slane %v3192_v51, 2  ;;  %v8071_v63 = vpack.c.bf16 %v6986_v19, %v6978_v8  ;;  %v1226_v24 = vmul.f32 %v6746_v56, %v8073_v12 }
  0xd8   : > { %5396 = vmatprep.mubr.bf16.mxu0 %v3370_v60  ;;  %5425 = vmatpush3.bf16.msra.mxu0 %v5814_v36  ;;  %v7196_v60 = vsel %vm1308_vm0, %v1314_v57, %v1315_v53  ;;  %v7199_v36 = vsel %vm1308_vm0, %v1315_v53, %v1317_v43  ;;  %v1325_v0 = vrot.slane %v1222_v18, 1  ;;  %v7211_v53 = vsel %vm1308_vm0, %v1320_v61, %v1322_v34  ;;  %v8072_v43 = vld [vmem:[#allocation13_spill] sm:$0xff] }
  0xd9   : > { %5426 = vmatprep.subr.bf16.mxu0 %v5816_v52  ;;  %v7208_v57 = vsel %vm1308_vm0, %v1319_v41, %v1320_v61  ;;  %v3194_v61 = vmul.f32 %v6749_v3, %v6249_v2  ;;  %v7229_v34 = vmul.f32 %v6749_v3, %v6256_v7  ;;  %v8074_v30 = vpack.c.bf16 %v7068_v25, %v7065_v14  ;;  %v8077_v41 = vld [vmem:[#allocation47_spill] sm:$0xff] }
  0xda   : > { %v8075_v8 = vpack.c.bf16 %v7072_v9, %v7022_v13  ;;  %v7238_v19 = vsel %vm2767_vm1, %v3304_v21, %v3305_v28  ;;  %v7241_v6 = vsel %vm2767_vm1, %v3305_v28, %v3307_v37  ;;  %v7244_v18 = vsel %vm1308_vm0, %v1324_v27, %v1325_v0 }
  0xdb   : > { %v8076_v51 = vpack.c.bf16 %v7091_v15, %v7088_v16  ;;  %v7250_v25 = vsel %vm1308_vm0, %v1325_v0, %v1327_v62  ;;  %v7253_v13 = vsel %vm2767_vm1, %v3309_v42, %v3310_v10  ;;  %v7256_v21 = vsel %vm2767_vm1, %v3310_v10, %v3312_v11  ;;  %v5819_v62 = vld [vmem:[%s7839_s1 + $0x230] sm:$0xff]  }
  0xdc   : > { %5427 = vmatpush3.bf16.msra.mxu0 %v5816_v52  ;;  %v1225_v52 = vmul.f32 %v8072_v43, %v6746_v56  ;;  %v1329_v15 = vrot.slane %v1224_v55, 1  ;;  %v1332_v42 = vrot.slane %v1226_v24, 1  ;;  %v3314_v37 = vrot.slane %v3194_v61, 2  ;;  %v8079_v24 = vld [vmem:[#allocation36_spill] sm:$0xff] }
  0xdd   : > { %5428 = vmatprep.subr.bf16.mxu0 %v5817_v33  ;;  %v3315_v28 = vrot.slane %v7229_v34, 2  ;;  %v3196_v27 = vmul.f32 %v6749_v3, %v8077_v41  ;;  %v1227_v10 = vmul.f32 %v6746_v56, %v6041_v26  ;;  %v1228_v11 = vmul.f32 %v6746_v56, %v6048_v35  ;;  %v8080_v34 = vld [vmem:[#allocation48_spill] sm:$0xff] }
  0xde   : > { %5173 = vmatmul.mubr.bf16.gmra.mrb[24].mxu1 %v8071_v63  ;;  %v1330_v0 = vrot.slane %v1225_v52, 1  ;;  %v1229_v55 = vmul.f32 %v6746_v56, %v8037_v39  ;;  %v8078_v63 = vld [vmem:[#allocation35_spill] sm:$0xff]  ;;  %v3198_v61 = vmul.f32 %v8079_v24, %v6749_v3  ;;  %v8083_v20 = vpack.c.bf16 %v7095_v59, %v7079_v58 }
  0xdf   : > { %5397 = vmatmul.mubr.bf16.gmra.mrb[8].mxu0 %v8074_v30  ;;  %5176 = vmatprep.mubr.bf16.mxu1 %v8075_v8  ;;  %v3197_v52 = vmul.f32 %v8078_v63, %v6749_v3  ;;  %v3199_v30 = vmul.f32 %v6749_v3, %v8080_v34  ;;  %v7305_v9 = vsel %vm2767_vm1, %v3314_v37, %v3315_v28  ;;  %v8084_v34 = vld [vmem:[#allocation18_spill] sm:$0xff]  ;;  %v3317_v59 = vrot.slane %v3196_v27, 2  ;;  %v8089_v37 = vld [vmem:[#allocation49_spill] sm:$0xff] }
  0xe0   : > { %5400 = vmatprep.mubr.bf16.mxu0 %v8076_v51  ;;  %5429 = vmatpush3.bf16.msra.mxu0 %v5817_v33  ;;  %v8082_v51 = vld [vmem:[#allocation17_spill] sm:$0xff]  ;;  %v7299_v16 = vsel %vm1308_vm0, %v1329_v15, %v1330_v0  ;;  %v7302_v14 = vsel %vm1308_vm0, %v1330_v0, %v1332_v42  ;;  %v1232_v24 = vmul.f32 %v6746_v56, %v8084_v34  ;;  %v8088_v0 = vld [vmem:[#allocation38_spill] sm:$0xff]  ;;  %v8091_v34 = vld [vmem:[#allocation19_spill] sm:$0xff] }
  0xe1   : > { %5430 = vmatprep.subr.bf16.mxu0 %v5818_v22  ;;  %v1231_v33 = vmul.f32 %v8082_v51, %v6746_v56  ;;  %v8085_v63 = vpack.c.bf16 %v7107_v29, %v7098_v46  ;;  %v8086_v58 = vpack.c.bf16 %v7119_v23, %v7110_v50  ;;  %v8087_v15 = vld [vmem:[#allocation37_spill] sm:$0xff]  ;;  %v3201_v42 = vmul.f32 %v6749_v3, %v8088_v0  ;;  %v8092_v51 = vld [vmem:[#allocation20_spill] sm:$0xff] }
  0xe2   : > { %v3202_v41 = vmul.f32 %v6749_v3, %v8089_v37  ;;  %v8090_v7 = vpack.c.bf16 %v7134_v47, %v7131_v32  ;;  %v1334_v46 = vrot.slane %v1227_v10, 1  ;;  %v1335_v29 = vrot.slane %v1228_v11, 1 }
  0xe3   : > { %v3319_v2 = vrot.slane %v3197_v52, 2  ;;  %v3320_v50 = vrot.slane %v3198_v61, 2  ;;  %v3322_v23 = vrot.slane %v3199_v30, 2  ;;  %v1233_v0 = vmul.f32 %v6746_v56, %v8091_v34 }
  0xe4   : > { %5431 = vmatpush3.bf16.msra.mxu0 %v5818_v22  ;;  %v8081_v22 = vld [vmem:[#allocation16_spill] sm:$0xff]  ;;  %v1234_v37 = vmul.f32 %v6746_v56, %v8092_v51  ;;  %v7331_v32 = vsel %vm2767_vm1, %v3315_v28, %v3317_v59  ;;  %v3327_v10 = vrot.slane %v3202_v41, 2  ;;  %v7334_v11 = vsel %vm1308_vm0, %v1334_v46, %v1335_v29 }
  0xe5   : > { %5432 = vmatprep.subr.bf16.mxu0 %v5819_v62  ;;  %v1230_v8 = vmul.f32 %v8081_v22, %v6746_v56  ;;  %v8093_v22 = vld [vmem:[#allocation21_spill] sm:$0xff]  ;;  %v3204_v52 = vmul.f32 %v8050_v5, %v6749_v3  ;;  %v7346_v30 = vsel %vm2767_vm1, %v3319_v2, %v3320_v50  ;;  %v7349_v41 = vsel %vm2767_vm1, %v3320_v50, %v3322_v23  ;;  %v5823_v23 = vld [vmem:[%s7839_s1 + $0x108] sm:$0xff]  }
  0xe6   : > { %5177 = vmatmul.mubr.bf16.gmra.mrb[28].mxu1 %v8083_v20  ;;  %v3200_v20 = vmul.f32 %v6749_v3, %v8087_v15  ;;  %v1342_v15 = vrot.slane %v1232_v24, 1  ;;  %v8095_v24 = vld [vmem:[#allocation50_spill] sm:$0xff]  ;;  %v8096_v59 = vpack.c.bf16 %v7199_v36, %v7196_v60  ;;  %v8097_v2 = vpack.c.bf16 %v7205_v40, %v7202_v49 }
  0xe7   : > { %5401 = vmatmul.mubr.bf16.gmra.mrb[12].mxu0 %v8085_v63  ;;  %5196 = vmatprep.mubr.bf16.mxu1 %v8086_v58  ;;  %v1337_v63 = vrot.slane %v1229_v55, 1  ;;  %v1339_v27 = vrot.slane %v1230_v8, 1  ;;  %v1340_v58 = vrot.slane %v1231_v33, 1  ;;  %v8094_v33 = vld [vmem:[#allocation40_spill] sm:$0xff]  ;;  %v3205_v61 = vmul.f32 %v6749_v3, %v8095_v24  ;;  %v8098_v60 = vld [vmem:[#allocation22_spill] sm:$0xff] }
  0xe8   : > { %5404 = vmatprep.mubr.bf16.mxu0 %v8090_v7  ;;  %5433 = vmatpush3.bf16.msra.mxu0 %v5819_v62  ;;  %v1235_v7 = vmul.f32 %v6746_v56, %v8093_v22  ;;  %v3324_v47 = vrot.slane %v3200_v20, 2  ;;  %v3325_v62 = vrot.slane %v3201_v42, 2  ;;  %v3203_v55 = vmul.f32 %v8094_v33, %v6749_v3 }
  0xe9   : > { %5434 = vmatprep.subr.bf16.mxu0 %v5820_v54  ;;  %v7343_v28 = vsel %vm1308_vm0, %v1335_v29, %v1337_v63  ;;  %v7352_v8 = vsel %vm1308_vm0, %v1339_v27, %v1340_v58  ;;  %v7358_v3 = vsel %vm1308_vm0, %v1340_v58, %v1342_v15  ;;  %v1345_v20 = vrot.slane %v1234_v37, 1  ;;  %v7373_v15 = vld [vmem:[%s5915_s20 + $0x8] ss:$0 sm:$0xff]  ;;  %v8111_v58 = vld [vmem:[#allocation29_spill] sm:$0xff]  ;;  %v8112_v27 = vld [vmem:[#allocation30_spill] sm:$0xff] }
  0xea   : > { %v1347_v42 = vrot.slane %v1235_v7, 1  ;;  %v7365_v46 = vsel %vm2767_vm1, %v3324_v47, %v3325_v62  ;;  %v7368_v29 = vsel %vm2767_vm1, %v3325_v62, %v3327_v10  ;;  %v1236_v36 = vmul.f32 %v8098_v60, %v6746_v56  ;;  %v8101_v63 = vld [vmem:[#allocation23_spill] sm:$0xff]  ;;  %v5824_v10 = vld [vmem:[%s7839_s1 + $0x110] sm:$0xff]  }
  0xeb   : > { %v8100_v49 = vpack.c.bf16 %v7241_v6, %v7238_v19  ;;  %v3330_v40 = vrot.slane %v3204_v52, 2  ;;  %v3332_v37 = vrot.slane %v3205_v61, 2  ;;  %v7383_v50 = vmul.f32 %v8101_v63, %v6746_v56 }
  0xec   : > { %5435 = vmatpush3.bf16.msra.mxu0 %v5820_v54  ;;  %v1344_v54 = vrot.slane %v1233_v0, 1  ;;  %v8099_v0 = vpack.c.bf16 %v7211_v53, %v7208_v57  ;;  %v1425_v57 = vpack.c.bf16 %v7302_v14, %v7299_v16  ;;  %v3378_v53 = vpack.c.bf16 %v7331_v32, %v7305_v9  ;;  %v8102_v9 = vld [vmem:[#allocation24_spill] sm:$0xff] }
  0xed   : > { %v1426_v19 = vpack.c.bf16 %v7343_v28, %v7334_v11  ;;  %v7404_v14 = vsel %vm1308_vm0, %v1345_v20, %v1347_v42  ;;  %v1238_v16 = vmul.f32 %v6746_v56, %v8102_v9  ;;  %v1349_v32 = vrot.slane %v1236_v36, 1 }
  0xee   : > { %5197 = vmatmul.mubr.bf16.vlgmr.msra.gmra.mrb[0].mxu1 %v8096_v59  ;;  %v7401_v7 = vsel %vm1308_vm0, %v1344_v54, %v1345_v20  ;;  %v3644_v47 = vmul.f32 %v8057_v45, %v7373_v15  ;;  %v3645_v62 = vmul.f32 %v8058_v17, %v7373_v15  ;;  %v1350_v52 = vrot.slane %v7383_v50, 1  ;;  %v8103_v45 = vld [vmem:[#allocation25_spill] sm:$0xff]  ;;  %v8104_v17 = vld [vmem:[#allocation26_spill] sm:$0xff] }
  0xef   : > { %5405 = vmatmul.mubr.bf16.gmra.mrb[16].mxu0 %v8097_v2  ;;  %5476 = vmatpush3.bf16.msra.mxu1 %v7084_v4  ;;  %v3329_v4 = vrot.slane %v3203_v55, 2  ;;  %v7419_v55 = vsel %vm2767_vm1, %v3330_v40, %v3332_v37  ;;  %v3646_v61 = vmul.f32 %v7373_v15, %v8059_v38  ;;  %v1239_v28 = vmul.f32 %v6746_v56, %v8103_v45  ;;  %v8106_v38 = vld [vmem:[#allocation11_spill] sm:$0xff]  ;;  %v8110_v50 = vld [vmem:[#allocation42_spill] sm:$0xff] }
  0xf0   : > { %5200 = vmatprep.mubr.bf16.mxu1 %v8099_v0  ;;  %5408 = vmatprep.mubr.bf16.mxu0 %v8100_v49  ;;  %v1240_v59 = vmul.f32 %v6746_v56, %v8104_v17  ;;  %v1241_v54 = vmul.f32 %v6746_v56, %v8049_v31  ;;  %v3647_v20 = vmul.f32 %v7373_v15, %v8066_v1  ;;  %v8107_v0 = vld [vmem:[#allocation27_spill] sm:$0xff]  ;;  %v1352_v1 = vrot.slane %v1238_v16, 1 }
  0xf1   : > { %5469 = vmatprep.subr.bf16.mxu1 %v5823_v23  ;;  %v7416_v11 = vsel %vm2767_vm1, %v3329_v4, %v3330_v40  ;;  %v8105_v42 = vpack.c.bf16 %v7250_v25, %v7244_v18  ;;  %v3648_v2 = vmul.f32 %v7373_v15, %v8067_v44  ;;  %v3649_v36 = vmul.f32 %v7373_v15, %v8106_v38  ;;  %v8108_v4 = vld [vmem:[#allocation28_spill] sm:$0xff] }
  0xf2   : > { %v1242_v49 = vmul.f32 %v8107_v0, %v6746_v56  ;;  %v1243_v40 = vmul.f32 %v8108_v4, %v6746_v56  ;;  %v8109_v37 = vpack.c.bf16 %v7256_v21, %v7253_v13  ;;  %v3740_v18 = vrot.slane %v3644_v47, 2  ;;  %v5825_v21 = vld [vmem:[%s7839_s1 + $0x118] sm:$0xff]  }
  0xf3   : > { %5477 = vmatpush3.bf16.msra.mxu1 %v5823_v23  ;;  %v3741_v25 = vrot.slane %v3645_v62, 2  ;;  %v1244_v44 = vmul.f32 %v6746_v56, %v8110_v50  ;;  %v3743_v23 = vrot.slane %v3646_v61, 2  ;;  %v3651_v38 = vmul.f32 %v8072_v43, %v7373_v15 }
  0xf4   : > { %5470 = vmatprep.subr.bf16.mxu1 %v5824_v10  ;;  %v3652_v13 = vmul.f32 %v7373_v15, %v8073_v12  ;;  %v1355_v16 = vrot.slane %v1240_v59, 1  ;;  %v1357_v47 = vrot.slane %v1241_v54, 1  ;;  %v3746_v62 = vrot.slane %v3648_v2, 2  ;;  %v8113_v54 = vld [vmem:[#allocation45_spill] sm:$0xff] }
  0xf5   : > { %v1359_v61 = vrot.slane %v1242_v49, 1  ;;  %v1362_v43 = vrot.slane %v1244_v44, 1  ;;  %v1245_v12 = vmul.f32 %v6746_v56, %v8111_v58  ;;  %v1246_v6 = vmul.f32 %v6746_v56, %v8112_v27 }
  0xf6   : > { %5201 = vmatmul.mubr.bf16.gmra.mrb[4].mxu1 %v8105_v42  ;;  %v3650_v42 = vmul.f32 %v8070_v48, %v7373_v15  ;;  %v7458_v48 = vsel %vm1308_vm0, %v1349_v32, %v1350_v52  ;;  %v3753_v59 = vrot.slane %v3652_v13, 2  ;;  %v1353_v2 = vsel %vm1308_vm0, %v1350_v52, %v1352_v1 }
  0xf7   : > { %5409 = vmatmul.mubr.bf16.gmra.mrb[20].mxu0 %v8109_v37  ;;  %5204 = vmatprep.mubr.bf16.mxu1 %v1425_v57  ;;  %v1354_v57 = vrot.slane %v1239_v28, 1  ;;  %v1360_v37 = vrot.slane %v1243_v40, 1  ;;  %v3751_v28 = vrot.slane %v3651_v38, 2  ;;  %v3744_v32 = vsel %vm2767_vm1, %v3741_v25, %v3743_v23  ;;  %v5826_v40 = vld [vmem:[%s7839_s1 + $0x120] sm:$0xff]  }
  0xf8   : > { %5412 = vmatprep.mubr.bf16.mxu0 %v3378_v53  ;;  %5478 = vmatpush3.bf16.msra.mxu1 %v5824_v10  ;;  %v3745_v53 = vrot.slane %v3647_v20, 2  ;;  %v3748_v10 = vrot.slane %v3649_v36, 2  ;;  %v3750_v24 = vrot.slane %v3650_v42, 2  ;;  %v1247_v20 = vmul.f32 %v6746_v56, %v8113_v54 }
  0xf9   : > { %5471 = vmatprep.subr.bf16.mxu1 %v5825_v21  ;;  %v3742_v36 = vsel %vm2767_vm1, %v3740_v18, %v3741_v25  ;;  %v7470_v49 = vsel %vm1308_vm0, %v1354_v57, %v1355_v16  ;;  %v7476_v44 = vsel %vm1308_vm0, %v1355_v16, %v1357_v47  ;;  %v7485_v1 = vsel %vm1308_vm0, %v1359_v61, %v1360_v37  ;;  %v8117_v16 = vld [vmem:[#allocation31_spill] sm:$0xff] }
  0xfa   : > { %v7479_v42 = vsel %vm2767_vm1, %v3745_v53, %v3746_v62  ;;  %v7482_v52 = vsel %vm2767_vm1, %v3746_v62, %v3748_v10  ;;  %v8114_v18 = vpack.c.bf16 %v7349_v41, %v7346_v30  ;;  %v8115_v25 = vpack.c.bf16 %v7358_v3, %v7352_v8  ;;  %v8118_v53 = vld [vmem:[#allocation32_spill] sm:$0xff] }
  0xfb   : > { %v1364_v23 = vrot.slane %v1245_v12, 1  ;;  %v1365_v38 = vrot.slane %v1246_v6, 1  ;;  %v7498_v13 = vmul.f32 %v7373_v15, %v6041_v26  ;;  %v7504_v30 = vsel %vm2767_vm1, %v3750_v24, %v3751_v28  ;;  %v5827_v24 = vld [vmem:[%s7839_s1 + $0x128] sm:$0xff]  }
  0xfc   : > { %5479 = vmatpush3.bf16.msra.mxu1 %v5825_v21  ;;  %v8116_v21 = vpack.c.bf16 %v7368_v29, %v7365_v46  ;;  %v7507_v41 = vsel %vm2767_vm1, %v3751_v28, %v3753_v59  ;;  %v1367_v8 = vrot.slane %v1247_v20, 1  ;;  %v7511_v3 = vmul.f32 %v7373_v15, %v6048_v35  ;;  %v8121_v28 = vld [vmem:[#allocation17_spill] sm:$0xff]  ;;  %v8122_v20 = vld [vmem:[#allocation18_spill] sm:$0xff] }
  0xfd   : > { %5472 = vmatprep.subr.bf16.mxu1 %v5826_v40  ;;  %v1428_v26 = vpack.c.bf16 %v7404_v14, %v7401_v7  ;;  %v3381_v6 = vpack.c.bf16 %v7419_v55, %v7416_v11  ;;  %v1429_v46 = vpack.c.bf16 %v1353_v2, %v7458_v48  ;;  %v3852_v29 = vpack.c.bf16 %v3744_v32, %v3742_v36  ;;  %v8123_v36 = vld [vmem:[#allocation33_spill] sm:$0xff] }
  0xfe   : > { %5205 = vmatmul.mubr.bf16.gmra.mrb[8].mxu1 %v1426_v19  ;;  %v7494_v19 = vsel %vm1308_vm0, %v1360_v37, %v1362_v43  ;;  %v1430_v57 = vpack.c.bf16 %v7476_v44, %v7470_v49  ;;  %v3655_v14 = vmul.f32 %v7373_v15, %v8037_v39  ;;  %v7532_v55 = vsel %vm1308_vm0, %v1364_v23, %v1365_v38  ;;  %v8119_v39 = vld [vmem:[#allocation46_spill] sm:$0xff]  ;;  %v8120_v43 = vld [vmem:[#allocation16_spill] sm:$0xff] }
  0xff   : > { %5413 = vmatmul.mubr.bf16.gmra.mrb[24].mxu0 %v8114_v18  ;;  %5208 = vmatprep.mubr.bf16.mxu1 %v8115_v25  ;;  %v1248_v47 = vmul.f32 %v8117_v16, %v6746_v56  ;;  %v1249_v62 = vmul.f32 %v8118_v53, %v6746_v56  ;;  %v7539_v10 = vsel %vm1308_vm0, %v1365_v38, %v1367_v8  ;;  %v3755_v61 = vrot.slane %v7498_v13, 2  ;;  %v5828_v49 = vld [vmem:[%s7839_s1 + $0x130] sm:$0xff]   ;;  %v8125_v18 = vld [vmem:[#allocation47_spill] sm:$0xff] }
 0x100   : > { %5416 = vmatprep.mubr.bf16.mxu0 %v8116_v21  ;;  %5480 = vmatpush3.bf16.msra.mxu1 %v5826_v40  ;;  %v3756_v37 = vrot.slane %v7511_v3, 2  ;;  %v1250_v48 = vmul.f32 %v6746_v56, %v8119_v39  ;;  %v3656_v12 = vmul.f32 %v8120_v43, %v7373_v15  ;;  %v3657_v59 = vmul.f32 %v8121_v28, %v7373_v15  ;;  %v8124_v40 = vld [vmem:[#allocation34_spill] sm:$0xff]  ;;  %v8127_v28 = vld [vmem:[#allocation36_spill] sm:$0xff] }
 0x101   : > { %5473 = vmatprep.subr.bf16.mxu1 %v5827_v24  ;;  %v3658_v2 = vmul.f32 %v7373_v15, %v8122_v20  ;;  %v1251_v32 = vmul.f32 %v6746_v56, %v8123_v36  ;;  %v1252_v44 = vmul.f32 %v6746_v56, %v8124_v40  ;;  %v1253_v25 = vmul.f32 %v6746_v56, %v8125_v18  ;;  %v8128_v20 = vld [vmem:[#allocation48_spill] sm:$0xff] }
 0x102   : > { %v3659_v23 = vmul.f32 %v7373_v15, %v8091_v34  ;;  %v3660_v38 = vmul.f32 %v7373_v15, %v8092_v51  ;;  %v3758_v13 = vrot.slane %v3655_v14, 2  ;;  %v1369_v21 = vrot.slane %v1248_v47, 1 }
 0x103   : > { %v1370_v8 = vrot.slane %v1249_v62, 1  ;;  %v3661_v3 = vmul.f32 %v7373_v15, %v8093_v22  ;;  %v1255_v34 = vmul.f32 %v8127_v28, %v6746_v56  ;;  %v1256_v51 = vmul.f32 %v6746_v56, %v8128_v20  ;;  %v5829_v22 = vld [vmem:[%s7839_s1 + $0x138] sm:$0xff]  }
 0x104   : > { %5481 = vmatpush3.bf16.msra.mxu1 %v5827_v24  ;;  %v8126_v24 = vld [vmem:[#allocation35_spill] sm:$0xff]  ;;  %v3763_v14 = vrot.slane %v3658_v2, 2  ;;  %v1374_v47 = vrot.slane %v1251_v32, 1  ;;  %v1377_v62 = vrot.slane %v1253_v25, 1  ;;  %v3662_v7 = vmul.f32 %v8098_v60, %v7373_v15 }
 0x105   : > { %5474 = vmatprep.subr.bf16.mxu1 %v5828_v49  ;;  %v1254_v43 = vmul.f32 %v8126_v24, %v6746_v56  ;;  %v3768_v11 = vrot.slane %v3661_v3, 2  ;;  %v3663_v35 = vmul.f32 %v8101_v63, %v7373_v15  ;;  %v1380_v32 = vrot.slane %v1255_v34, 1  ;;  %v8133_v34 = vld [vmem:[#allocation38_spill] sm:$0xff] }
 0x106   : > { %5209 = vmatmul.mubr.bf16.gmra.mrb[12].mxu1 %v1428_v26  ;;  %v1372_v26 = vrot.slane %v1250_v48, 1  ;;  %v3765_v48 = vrot.slane %v3659_v23, 2  ;;  %v1382_v5 = vrot.slane %v1256_v51, 1  ;;  %v1371_v25 = vsel %vm1308_vm0, %v1369_v21, %v1370_v8 }
 0x107   : > { %5417 = vmatmul.mubr.bf16.gmra.mrb[28].mxu0 %v3381_v6  ;;  %5212 = vmatprep.mubr.bf16.mxu1 %v1429_v46  ;;  %v3760_v6 = vrot.slane %v3656_v12, 2  ;;  %v3761_v46 = vrot.slane %v3657_v59, 2  ;;  %v3664_v12 = vmul.f32 %v7373_v15, %v8102_v9  ;;  %v3757_v59 = vsel %vm2767_vm1, %v3755_v61, %v3756_v37 }
 0x108   : > { %5436 = vmatprep.mubr.bf16.mxu0 %v3852_v29  ;;  %5482 = vmatpush3.bf16.msra.mxu1 %v5828_v49  ;;  %v1375_v29 = vrot.slane %v1252_v44, 1  ;;  %v3766_v49 = vrot.slane %v3660_v38, 2  ;;  %v1379_v2 = vrot.slane %v1254_v43, 1  ;;  %v3759_v44 = vsel %vm2767_vm1, %v3756_v37, %v3758_v13 }
 0x109   : > { %5475 = vmatprep.subr.bf16.mxu1 %v5829_v22  ;;  %v1373_v23 = vsel %vm1308_vm0, %v1370_v8, %v1372_v26  ;;  %v3762_v60 = vsel %vm2767_vm1, %v3760_v6, %v3761_v46  ;;  %v3764_v63 = vsel %vm2767_vm1, %v3761_v46, %v3763_v14  ;;  %v8129_v37 = vpack.c.bf16 %v7482_v52, %v7479_v42 }
 0x10a   : > { %v7588_v38 = vsel %vm1308_vm0, %v1374_v47, %v1375_v29  ;;  %v7591_v9 = vsel %vm1308_vm0, %v1375_v29, %v1377_v62  ;;  %v7594_v61 = vsel %vm2767_vm1, %v3765_v48, %v3766_v49  ;;  %v8130_v13 = vpack.c.bf16 %v7494_v19, %v7485_v1  ;;  %v8135_v29 = vld [vmem:[#allocation4_spill] sm:$0xff] }
 0x10b   : > { %v3770_v21 = vrot.slane %v3662_v7, 2  ;;  %v3771_v8 = vrot.slane %v3663_v35, 2  ;;  %v3773_v3 = vrot.slane %v3664_v12, 2  ;;  %v8131_v26 = vpack.c.bf16 %v7507_v41, %v7504_v30  ;;  %v8132_v30 = vld [vmem:[#allocation37_spill] sm:$0xff] }
 0x10c   : > { %5483 = vmatpush3.bf16.msra.mxu1 %v5829_v22  ;;  %v1432_v43 = vpack.c.bf16 %v7539_v10, %v7532_v55  ;;  %v7611_v42 = vsel %vm1308_vm0, %v1379_v2, %v1380_v32  ;;  %v7614_v52 = vsel %vm1308_vm0, %v1380_v32, %v1382_v5  ;;  %v3855_v1 = vpack.c.bf16 %v3759_v44, %v3757_v59  ;;  %v8134_v10 = vld [vmem:[#allocation49_spill] sm:$0xff] }
 0x10d   : > { %v1433_v19 = vpack.c.bf16 %v1373_v23, %v1371_v25  ;;  %v1434_v35 = vpack.c.bf16 %v7591_v9, %v7588_v38  ;;  %v1257_v41 = vmul.f32 %v6746_v56, %v8132_v30  ;;  %v1258_v55 = vmul.f32 %v6746_v56, %v8133_v34 }
 0x10e   : > { %5213 = vmatmul.mubr.bf16.gmra.mrb[16].mxu1 %v1430_v57  ;;  %v7603_v57 = vsel %vm2767_vm1, %v3766_v49, %v3768_v11  ;;  %v3856_v11 = vpack.c.bf16 %v3764_v63, %v3762_v60  ;;  %v1259_v51 = vmul.f32 %v6746_v56, %v8134_v10  ;;  %v1435_v5 = vpack.c.bf16 %v7614_v52, %v7611_v42 }
 0x10f   : > { %5437 = vmatmul.mubr.bf16.vlgmr.msra.gmra.mrb[0].mxu0 %v8129_v37  ;;  %5216 = vmatprep.mubr.bf16.mxu1 %v8130_v13  ;;  %v3857_v7 = vpack.c.bf16 %v7603_v57, %v7594_v61  ;;  %v3772_v6 = vsel %vm2767_vm1, %v3770_v21, %v3771_v8  ;;  %v3774_v46 = vsel %vm2767_vm1, %v3771_v8, %v3773_v3  ;;  %v1384_v2 = vrot.slane %v1257_v41, 1 }
 0x110   : > { %5440 = vmatprep.mubr.bf16.mxu0 %v8131_v26  ;;  %v3665_v14 = vmul.f32 %v7373_v15, %v8103_v45  ;;  %v3666_v47 = vmul.f32 %v7373_v15, %v8104_v17  ;;  %v3667_v22 = vmul.f32 %v7373_v15, %v8049_v31  ;;  %v1723_v62 = vmul.f32 %v8135_v29, %v8103_v45 }
 0x111   : > { %v1724_v56 = vmul.f32 %v8135_v29, %v8104_v17  ;;  %v1725_v48 = vmul.f32 %v8135_v29, %v8049_v31  ;;  %v3668_v49 = vmul.f32 %v8107_v0, %v7373_v15  ;;  %v3669_v12 = vmul.f32 %v8108_v4, %v7373_v15 }
 0x112   : > { %v3670_v59 = vmul.f32 %v7373_v15, %v8110_v50  ;;  %v1726_v45 = vmul.f32 %v8107_v0, %v8135_v29  ;;  %v1727_v17 = vmul.f32 %v8108_v4, %v8135_v29  ;;  %v1728_v31 = vmul.f32 %v8135_v29, %v8110_v50 }
 0x113   : > { %v3858_v32 = vpack.c.bf16 %v3774_v46, %v3772_v6  ;;  %v1385_v44 = vrot.slane %v1258_v55, 1  ;;  %v1387_v25 = vrot.slane %v1259_v51, 1  ;;  %v3775_v23 = vrot.slane %v3665_v14, 2 }
 0x114   : > { %v3776_v60 = vrot.slane %v3666_v47, 2  ;;  %v3778_v63 = vrot.slane %v3667_v22, 2  ;;  %v1835_v38 = vrot.slane %v1723_v62, 1  ;;  %v1836_v9 = vrot.slane %v1724_v56, 1 }
 0x115   : > { %v1838_v61 = vrot.slane %v1725_v48, 1  ;;  %v3780_v37 = vrot.slane %v3668_v49, 2  ;;  %v3781_v0 = vrot.slane %v3669_v12, 2  ;;  %v3783_v13 = vrot.slane %v3670_v59, 2 }
 0x116   : > { %5217 = vmatmul.mubr.bf16.gmra.mrb[20].mxu1 %v1432_v43  ;;  %v1840_v57 = vrot.slane %v1726_v45, 1  ;;  %v1841_v4 = vrot.slane %v1727_v17, 1  ;;  %v1843_v21 = vrot.slane %v1728_v31, 1  ;;  %v3671_v50 = vmul.f32 %v7373_v15, %v8111_v58 }
 0x117   : > { %5441 = vmatmul.mubr.bf16.gmra.mrb[4].mxu0 %v3855_v1  ;;  %5220 = vmatprep.mubr.bf16.mxu1 %v1433_v19  ;;  %v1386_v8 = vsel %vm1308_vm0, %v1384_v2, %v1385_v44  ;;  %v3672_v3 = vmul.f32 %v7373_v15, %v8112_v27  ;;  %v3673_v26 = vmul.f32 %v7373_v15, %v8113_v54 }
 0x118   : > { %5444 = vmatprep.mubr.bf16.mxu0 %v3856_v11  ;;  %v1729_v43 = vmul.f32 %v8135_v29, %v8111_v58  ;;  %v1388_v42 = vsel %vm1308_vm0, %v1385_v44, %v1387_v25  ;;  %v3777_v52 = vsel %vm2767_vm1, %v3775_v23, %v3776_v60  ;;  %v1730_v1 = vmul.f32 %v8135_v29, %v8112_v27 }
 0x119   : > { %v1731_v19 = vmul.f32 %v8135_v29, %v8113_v54  ;;  %v3779_v11 = vsel %vm2767_vm1, %v3776_v60, %v3778_v63  ;;  %v1837_v41 = vsel %vm1308_vm0, %v1835_v38, %v1836_v9  ;;  %v1839_v55 = vsel %vm1308_vm0, %v1836_v9, %v1838_v61 }
 0x11a   : > { %v3782_v51 = vsel %vm2767_vm1, %v3780_v37, %v3781_v0  ;;  %v3784_v58 = vsel %vm2767_vm1, %v3781_v0, %v3783_v13  ;;  %v7675_v6 = vsel %vm1308_vm0, %v1840_v57, %v1841_v4  ;;  %v7678_v46 = vsel %vm1308_vm0, %v1841_v4, %v1843_v21 }
 0x11b   : > { %v3785_v27 = vrot.slane %v3671_v50, 2  ;;  %v3786_v54 = vrot.slane %v3672_v3, 2  ;;  %v3788_v14 = vrot.slane %v3673_v26, 2  ;;  %v1845_v47 = vrot.slane %v1729_v43, 1 }
 0x11c   : > { %v3674_v22 = vmul.f32 %v8117_v16, %v7373_v15  ;;  %v1846_v62 = vrot.slane %v1730_v1, 1  ;;  %v3675_v56 = vmul.f32 %v8118_v53, %v7373_v15  ;;  %v3676_v48 = vmul.f32 %v7373_v15, %v8119_v39 }
 0x11d   : > { %v1436_v49 = vpack.c.bf16 %v1388_v42, %v1386_v8  ;;  %v3859_v12 = vpack.c.bf16 %v3779_v11, %v3777_v52  ;;  %v3860_v59 = vpack.c.bf16 %v3784_v58, %v3782_v51  ;;  %v1733_v2 = vmul.f32 %v8118_v53, %v8135_v29 }
 0x11e   : > { %5221 = vmatmul.mubr.bf16.gmra.mrb[24].mxu1 %v1434_v35  ;;  %v1848_v35 = vrot.slane %v1731_v19, 1  ;;  %v1734_v45 = vmul.f32 %v8135_v29, %v8119_v39  ;;  %v1916_v17 = vpack.c.bf16 %v7678_v46, %v7675_v6  ;;  %v3787_v31 = vsel %vm2767_vm1, %v3785_v27, %v3786_v54 }
 0x11f   : > { %5445 = vmatmul.mubr.bf16.gmra.mrb[8].mxu0 %v3857_v7  ;;  %5224 = vmatprep.mubr.bf16.mxu1 %v1435_v5  ;;  %v1732_v7 = vmul.f32 %v8117_v16, %v8135_v29  ;;  %v1915_v5 = vpack.c.bf16 %v1839_v55, %v1837_v41  ;;  %v3790_v44 = vrot.slane %v3674_v22, 2  ;;  %v1847_v25 = vsel %vm1308_vm0, %v1845_v47, %v1846_v62 }
 0x120   : > { %5448 = vmatprep.mubr.bf16.mxu0 %v3858_v32  ;;  %v3789_v32 = vsel %vm2767_vm1, %v3786_v54, %v3788_v14  ;;  %v1849_v16 = vsel %vm1308_vm0, %v1846_v62, %v1848_v35  ;;  %v3791_v23 = vrot.slane %v3675_v56, 2  ;;  %v3793_v60 = vrot.slane %v3676_v48, 2 }
 0x121   : > { %v1850_v63 = vrot.slane %v1732_v7, 1  ;;  %v3677_v53 = vmul.f32 %v7373_v15, %v8123_v36  ;;  %v3678_v39 = vmul.f32 %v7373_v15, %v8124_v40  ;;  %v3679_v38 = vmul.f32 %v7373_v15, %v8125_v18 }
 0x122   : > { %v1851_v9 = vrot.slane %v1733_v2, 1  ;;  %v1853_v61 = vrot.slane %v1734_v45, 1  ;;  %v1735_v37 = vmul.f32 %v8135_v29, %v8123_v36  ;;  %v1736_v0 = vmul.f32 %v8135_v29, %v8124_v40  ;;  %v8137_v45 = vld [vmem:[#allocation50_spill] sm:$0xff] }
 0x123   : > { %v1737_v13 = vmul.f32 %v8135_v29, %v8125_v18  ;;  %v3680_v57 = vmul.f32 %v8126_v24, %v7373_v15  ;;  %v3681_v4 = vmul.f32 %v8127_v28, %v7373_v15  ;;  %v3861_v21 = vpack.c.bf16 %v3789_v32, %v3787_v31 }
 0x124   : > { %v1917_v50 = vpack.c.bf16 %v1849_v16, %v1847_v25  ;;  %v3792_v8 = vsel %vm2767_vm1, %v3790_v44, %v3791_v23  ;;  %v3682_v36 = vmul.f32 %v7373_v15, %v8128_v20  ;;  %v3794_v40 = vsel %vm2767_vm1, %v3791_v23, %v3793_v60 }
 0x125   : > { %v3795_v3 = vrot.slane %v3677_v53, 2  ;;  %v3796_v26 = vrot.slane %v3678_v39, 2  ;;  %v3798_v43 = vrot.slane %v3679_v38, 2  ;;  %v1852_v18 = vsel %vm1308_vm0, %v1850_v63, %v1851_v9 }
 0x126   : > { %5225 = vmatmul.mubr.bf16.gmra.mrb[28].mxu1 %v1436_v49  ;;  %v1854_v42 = vsel %vm1308_vm0, %v1851_v9, %v1853_v61  ;;  %v1855_v52 = vrot.slane %v1735_v37, 1  ;;  %v1856_v1 = vrot.slane %v1736_v0, 1  ;;  %v1858_v19 = vrot.slane %v1737_v13, 1 }
 0x127   : > { %5449 = vmatmul.mubr.bf16.gmra.mrb[12].mxu0 %v3859_v12  ;;  %5260 = vmatprep.mubr.bf16.mxu1 %v1915_v5  ;;  %v3800_v11 = vrot.slane %v3680_v57, 2  ;;  %v3801_v41 = vrot.slane %v3681_v4, 2  ;;  %v1738_v55 = vmul.f32 %v8126_v24, %v8135_v29  ;;  %v3862_v51 = vpack.c.bf16 %v3794_v40, %v3792_v8 }
 0x128   : > { %5452 = vmatprep.mubr.bf16.mxu0 %v3860_v59  ;;  %v3803_v58 = vrot.slane %v3682_v36, 2  ;;  %v1739_v6 = vmul.f32 %v8127_v28, %v8135_v29  ;;  %v1740_v46 = vmul.f32 %v8135_v29, %v8128_v20  ;;  %v1918_v27 = vpack.c.bf16 %v1854_v42, %v1852_v18  ;;  %v8136_v59 = vld [vmem:[#allocation41_spill] sm:$0xff]  ;;  %v8139_v36 = vld [vmem:[#allocation54_spill] sm:$0xff] }
 0x129   : > { %v3797_v54 = vsel %vm2767_vm1, %v3795_v3, %v3796_v26  ;;  %v3799_v14 = vsel %vm2767_vm1, %v3796_v26, %v3798_v43  ;;  %v3683_v47 = vmul.f32 %v7373_v15, %v8132_v30  ;;  %v3684_v24 = vmul.f32 %v7373_v15, %v8133_v34  ;;  %v8140_v3 = vld [vmem:[#allocation51_spill] sm:$0xff] }
 0x12a   : > { %v3685_v22 = vmul.f32 %v7373_v15, %v8134_v10  ;;  %v1741_v28 = vmul.f32 %v8135_v29, %v8132_v30  ;;  %v1742_v20 = vmul.f32 %v8135_v29, %v8133_v34  ;;  %v1857_v62 = vsel %vm1308_vm0, %v1855_v52, %v1856_v1 }
 0x12b   : > { %v1859_v35 = vsel %vm1308_vm0, %v1856_v1, %v1858_v19  ;;  %v3802_v56 = vsel %vm2767_vm1, %v3800_v11, %v3801_v41  ;;  %v1860_v48 = vrot.slane %v1738_v55, 1  ;;  %v3804_v49 = vsel %vm2767_vm1, %v3801_v41, %v3803_v58 }
 0x12c   : > { %v1861_v12 = vrot.slane %v1739_v6, 1  ;;  %v1863_v7 = vrot.slane %v1740_v46, 1  ;;  %v1743_v30 = vmul.f32 %v8135_v29, %v8134_v10  ;;  %v3805_v5 = vrot.slane %v3683_v47, 2 }
 0x12d   : > { %v3686_v34 = vmul.f32 %v8094_v33, %v7373_v15  ;;  %v3687_v2 = vmul.f32 %v8136_v59, %v7373_v15  ;;  %v3806_v31 = vrot.slane %v3684_v24, 2  ;;  %v3808_v32 = vrot.slane %v3685_v22, 2 }
 0x12e   : > { %5261 = vmatmul.mubr.bf16.vlgmr.msra.gmra.mrb[16].mxu1 %v1916_v17  ;;  %v3688_v17 = vmul.f32 %v7373_v15, %v8137_v45  ;;  %v1865_v44 = vrot.slane %v1741_v28, 1  ;;  %v1866_v25 = vrot.slane %v1742_v20, 1  ;;  %v3863_v16 = vpack.c.bf16 %v3799_v14, %v3797_v54 }
 0x12f   : > { %5453 = vmatmul.mubr.bf16.gmra.mrb[16].mxu0 %v3861_v21  ;;  %5264 = vmatprep.mubr.bf16.mxu1 %v1917_v50  ;;  %v1919_v23 = vpack.c.bf16 %v1859_v35, %v1857_v62  ;;  %v3864_v60 = vpack.c.bf16 %v3804_v49, %v3802_v56  ;;  %v1868_v63 = vrot.slane %v1743_v30, 1  ;;  %v1862_v10 = vsel %vm1308_vm0, %v1860_v48, %v1861_v12  ;;  %v8138_v50 = vld [vmem:[#allocation53_spill] sm:$0xff] }
 0x130   : > { %5456 = vmatprep.mubr.bf16.mxu0 %v3862_v51  ;;  %v3810_v53 = vrot.slane %v3686_v34, 2  ;;  %v3811_v39 = vrot.slane %v3687_v2, 2  ;;  %v3813_v38 = vrot.slane %v3688_v17, 2  ;;  %v1864_v9 = vsel %vm1308_vm0, %v1861_v12, %v1863_v7 }
 0x131   : > { %v3807_v61 = vsel %vm2767_vm1, %v3805_v5, %v3806_v31  ;;  %v3809_v37 = vsel %vm2767_vm1, %v3806_v31, %v3808_v32  ;;  %v1867_v0 = vsel %vm1308_vm0, %v1865_v44, %v1866_v25  ;;  %v1744_v13 = vmul.f32 %v8094_v33, %v8135_v29  ;;  %v7779_v31 = vld [vmem:[%s226_s26] ss:$0 sm:$0xff] }
 0x132   : > { %v1745_v57 = vmul.f32 %v8136_v59, %v8135_v29  ;;  %v1746_v4 = vmul.f32 %v8135_v29, %v8137_v45  ;;  %v1869_v21 = vsel %vm1308_vm0, %v1866_v25, %v1868_v63  ;;  %v3689_v8 = vmul.f32 %v7373_v15, %v8138_v50 }
 0x133   : > { %v3690_v40 = vmul.f32 %v7373_v15, %v8139_v36  ;;  %v8141_v26 = vunpack.c.l.bf16 %v8140_v3  ;;  %v3812_v33 = vsel %vm2767_vm1, %v3810_v53, %v3811_v39  ;;  %v3814_v18 = vsel %vm2767_vm1, %v3811_v39, %v3813_v38 }
 0x134   : > { %v1920_v42 = vpack.c.bf16 %v1864_v9, %v1862_v10  ;;  %v3865_v52 = vpack.c.bf16 %v3809_v37, %v3807_v61  ;;  %v1921_v29 = vpack.c.bf16 %v1869_v21, %v1867_v0  ;;  %v1870_v1 = vrot.slane %v1744_v13, 1 }
 0x135   : > { %v3691_v43 = vmul.f32 %v7373_v15, %v8141_v26  ;;  %v1871_v19 = vrot.slane %v1745_v57, 1  ;;  %v1873_v11 = vrot.slane %v1746_v4, 1  ;;  %v3866_v41 = vpack.c.bf16 %v3814_v18, %v3812_v33 }
 0x136   : > { %5265 = vmatmul.mubr.bf16.gmra.mrb[20].mxu1 %v1918_v27  ;;  %v3815_v55 = vrot.slane %v3689_v8, 2  ;;  %v3816_v51 = vrot.slane %v3690_v40, 2 }
 0x137   : > { %5457 = vmatmul.mubr.bf16.gmra.mrb[20].mxu0 %v3863_v16  ;;  %5268 = vmatprep.mubr.bf16.mxu1 %v1919_v23  ;;  %v3818_v58 = vrot.slane %v3691_v43, 2  ;;  %v1872_v6 = vsel %vm1308_vm0, %v1870_v1, %v1871_v19  ;;  %v1874_v15 = vsel %vm1308_vm0, %v1871_v19, %v1873_v11 }
 0x138   : > { %5460 = vmatprep.mubr.bf16.mxu0 %v3864_v60  ;;  %v3817_v46 = vsel %vm2767_vm1, %v3815_v55, %v3816_v51  ;;  %v1922_v54 = vpack.c.bf16 %v1874_v15, %v1872_v6 }
 0x139   : > { %v3819_v27 = vsel %vm2767_vm1, %v3816_v51, %v3818_v58 }
 0x13a   : > { %v3867_v14 = vpack.c.bf16 %v3819_v27, %v3817_v46 }
 0x13e   : > { %5269 = vmatmul.mubr.bf16.gmra.mrb[24].mxu1 %v1920_v42 }
 0x13f   : > { %5461 = vmatmul.mubr.bf16.gmra.mrb[24].mxu0 %v3865_v52  ;;  %5272 = vmatprep.mubr.bf16.mxu1 %v1921_v29 }
 0x140   : > { %5464 = vmatprep.mubr.bf16.mxu0 %v3866_v41 }
 0x146   : > { %5273 = vmatmul.mubr.bf16.gmra.mrb[28].mxu1 %v1922_v54 }
 0x147   : > { %5465 = vmatmul.mubr.bf16.gmra.mrb[28].mxu0 %v3867_v14 }
 0x1c1   : > { %v5198_v47 = vpop.f32.mrb[0].mxu1 }
 0x1c2   : > { %v1536_v24 = vpop.f32.mrb[1].mxu1 }
 0x1c3   : > { %v5199_v22 = vpop.f32.mrb[2].mxu1 }
 0x1c4   : > { %v1539_v28 = vpop.f32.mrb[3].mxu1 }
 0x1c9   : > { %v5202_v20 = vpop.f32.mrb[4].mxu1 }
 0x1ca   : > { %v1552_v62 = vpop.f32.mrb[5].mxu1 }
 0x1cb   : > { %v5203_v35 = vpop.f32.mrb[6].mxu1 }
 0x1cc   : > { %v1555_v56 = vpop.f32.mrb[7].mxu1 }
 0x1d1   : > { %v5206_v48 = vpop.f32.mrb[8].mxu1 }
 0x1d2   : > { %v1568_v49 = vpop.f32.mrb[9].mxu1 }
 0x1d3   : > { %v5207_v12 = vpop.f32.mrb[10].mxu1 }
 0x1d4   : > { %v1571_v7 = vpop.f32.mrb[11].mxu1 }
 0x1d9   : > { %v5210_v30 = vpop.f32.mrb[12].mxu1 }
 0x1da   : > { %v1584_v5 = vpop.f32.mrb[13].mxu1 }
 0x1db   : > { %v5211_v34 = vpop.f32.mrb[14].mxu1 }
 0x1dc   : > { %v1587_v59 = vpop.f32.mrb[15].mxu1 }
 0x1e2   : > { %v5438_v2 = vpop.f32.mrb[0].mxu0 }
 0x1e3   : > { %v5484_v45 = vadd.f32 %v5438_v2, %v5198_v47  ;;  %v3967_v17 = vpop.f32.mrb[1].mxu0 }
 0x1e4   : > { %v5485_v32 = vadd.f32 %v3967_v17, %v1536_v24  ;;  %v5439_v44 = vpop.f32.mrb[2].mxu0 }
 0x1e5   : > { %v5486_v25 = vadd.f32 %v5439_v44, %v5199_v22  ;;  %v3970_v16 = vpop.f32.mrb[3].mxu0  ;;  %v4135_v60 = vmul.f32 %v5484_v45, %v7779_v31 }
 0x1e6   : > { %v5487_v23 = vadd.f32 %v3970_v16, %v1539_v28  ;;  %v4133_v10 = vmul.f32 %v5485_v32, %v7779_v31 }
 0x1e7   : > { %v4136_v63 = vmul.f32 %v5486_v25, %v7779_v31 }
 0x1e8   : > { %v4134_v53 = vmul.f32 %v5487_v23, %v7779_v31 }
 0x1e9   : > { %v4725_v39 = vpack.c.bf16 %v4136_v63, %v4135_v60 }
 0x1ea   : > { %v4720_v38 = vpack.c.bf16 %v4134_v53, %v4133_v10  ;;  %v5442_v9 = vpop.f32.mrb[4].mxu0 }
 0x1eb   : > { %4805 = vst [vmem:[%s7788_s30 + $0x8] sm:$0xff] %v4725_v39   ;;  %v5488_v61 = vadd.f32 %v5442_v9, %v5202_v20  ;;  %v3983_v37 = vpop.f32.mrb[5].mxu0 }
 0x1ec   : > { %4721 = vst [vmem:[%s7788_s30] sm:$0xff] %v4720_v38   ;;  %v5489_v0 = vadd.f32 %v3983_v37, %v1552_v62  ;;  %v5443_v13 = vpop.f32.mrb[6].mxu0 }
 0x1ed   : > { %v5490_v57 = vadd.f32 %v5443_v13, %v5203_v35  ;;  %v3986_v4 = vpop.f32.mrb[7].mxu0  ;;  %v4139_v50 = vmul.f32 %v5488_v61, %v7779_v31 }
 0x1ee   : > { %v5491_v21 = vadd.f32 %v3986_v4, %v1555_v56  ;;  %v4137_v36 = vmul.f32 %v5489_v0, %v7779_v31 }
 0x1ef   : > { %v4140_v8 = vmul.f32 %v5490_v57, %v7779_v31 }
 0x1f0   : > { %v4138_v40 = vmul.f32 %v5491_v21, %v7779_v31 }
 0x1f1   : > { %v4735_v3 = vpack.c.bf16 %v4140_v8, %v4139_v50 }
 0x1f2   : > { %v4730_v26 = vpack.c.bf16 %v4138_v40, %v4137_v36  ;;  %v5446_v43 = vpop.f32.mrb[8].mxu0 }
 0x1f3   : > { %4807 = vst [vmem:[%s7788_s30 + $0x18] sm:$0xff] %v4735_v3   ;;  %v5492_v33 = vadd.f32 %v5446_v43, %v5206_v48  ;;  %v3999_v18 = vpop.f32.mrb[9].mxu0 }
 0x1f4   : > { %4806 = vst [vmem:[%s7788_s30 + $0x10] sm:$0xff] %v4730_v26   ;;  %v5493_v42 = vadd.f32 %v3999_v18, %v1568_v49  ;;  %v5447_v52 = vpop.f32.mrb[10].mxu0 }
 0x1f5   : > { %v5494_v29 = vadd.f32 %v5447_v52, %v5207_v12  ;;  %v4002_v1 = vpop.f32.mrb[11].mxu0  ;;  %v4143_v11 = vmul.f32 %v5492_v33, %v7779_v31 }
 0x1f6   : > { %v5495_v19 = vadd.f32 %v4002_v1, %v1571_v7  ;;  %v4141_v55 = vmul.f32 %v5493_v42, %v7779_v31 }
 0x1f7   : > { %v4144_v41 = vmul.f32 %v5494_v29, %v7779_v31 }
 0x1f8   : > { %v4142_v51 = vmul.f32 %v5495_v19, %v7779_v31 }
 0x1f9   : > { %v4745_v58 = vpack.c.bf16 %v4144_v41, %v4143_v11 }
 0x1fa   : > { %v4740_v6 = vpack.c.bf16 %v4142_v51, %v4141_v55  ;;  %v5450_v15 = vpop.f32.mrb[12].mxu0 }
 0x1fb   : > { %4809 = vst [vmem:[%s7788_s30 + $0x28] sm:$0xff] %v4745_v58   ;;  %v5496_v46 = vadd.f32 %v5450_v15, %v5210_v30  ;;  %v4015_v27 = vpop.f32.mrb[13].mxu0 }
 0x1fc   : > { %4808 = vst [vmem:[%s7788_s30 + $0x20] sm:$0xff] %v4740_v6   ;;  %v5497_v54 = vadd.f32 %v4015_v27, %v1584_v5  ;;  %v5451_v14 = vpop.f32.mrb[14].mxu0 }
 0x1fd   : > { %v5498_v47 = vadd.f32 %v5451_v14, %v5211_v34  ;;  %v4018_v24 = vpop.f32.mrb[15].mxu0  ;;  %v4147_v28 = vmul.f32 %v5496_v46, %v7779_v31 }
 0x1fe   : > { %v5499_v22 = vadd.f32 %v4018_v24, %v1587_v59  ;;  %v4145_v62 = vmul.f32 %v5497_v54, %v7779_v31 }
 0x1ff   : > { %v4148_v20 = vmul.f32 %v5498_v47, %v7779_v31 }
 0x200   : > { %v4146_v35 = vmul.f32 %v5499_v22, %v7779_v31 }
 0x201   : > { %v4755_v56 = vpack.c.bf16 %v4148_v20, %v4147_v28  ;;  %v5262_v48 = vpop.f32.mrb[16].mxu1 }
 0x202   : > { %v4750_v49 = vpack.c.bf16 %v4146_v35, %v4145_v62  ;;  %v5454_v12 = vpop.f32.mrb[16].mxu0  ;;  %v2086_v7 = vpop.f32.mrb[17].mxu1 }
 0x203   : > { %4811 = vst [vmem:[%s7788_s30 + $0x38] sm:$0xff] %v4755_v56   ;;  %v5500_v30 = vadd.f32 %v5454_v12, %v5262_v48  ;;  %v4031_v5 = vpop.f32.mrb[17].mxu0  ;;  %v5263_v34 = vpop.f32.mrb[18].mxu1 }
 0x204   : > { %4810 = vst [vmem:[%s7788_s30 + $0x30] sm:$0xff] %v4750_v49   ;;  %v5501_v59 = vadd.f32 %v4031_v5, %v2086_v7  ;;  %v5455_v2 = vpop.f32.mrb[18].mxu0  ;;  %v2089_v45 = vpop.f32.mrb[19].mxu1 }
 0x205   : > { %v5502_v17 = vadd.f32 %v5455_v2, %v5263_v34  ;;  %v4034_v32 = vpop.f32.mrb[19].mxu0  ;;  %v4151_v25 = vmul.f32 %v5500_v30, %v7779_v31 }
 0x206   : > { %v5503_v44 = vadd.f32 %v4034_v32, %v2089_v45  ;;  %v4149_v23 = vmul.f32 %v5501_v59, %v7779_v31 }
 0x207   : > { %v4152_v16 = vmul.f32 %v5502_v17, %v7779_v31 }
 0x208   : > { %v4150_v60 = vmul.f32 %v5503_v44, %v7779_v31 }
 0x209   : > { %v4765_v63 = vpack.c.bf16 %v4152_v16, %v4151_v25  ;;  %v5266_v10 = vpop.f32.mrb[20].mxu1 }
 0x20a   : > { %v4760_v53 = vpack.c.bf16 %v4150_v60, %v4149_v23  ;;  %v5458_v39 = vpop.f32.mrb[20].mxu0  ;;  %v2102_v38 = vpop.f32.mrb[21].mxu1 }
 0x20b   : > { %4813 = vst [vmem:[%s7788_s30 + $0x48] sm:$0xff] %v4765_v63   ;;  %v5504_v9 = vadd.f32 %v5458_v39, %v5266_v10  ;;  %v4047_v61 = vpop.f32.mrb[21].mxu0  ;;  %v5267_v37 = vpop.f32.mrb[22].mxu1 }
 0x20c   : > { %4812 = vst [vmem:[%s7788_s30 + $0x40] sm:$0xff] %v4760_v53   ;;  %v5505_v0 = vadd.f32 %v4047_v61, %v2102_v38  ;;  %v5459_v13 = vpop.f32.mrb[22].mxu0  ;;  %v2105_v57 = vpop.f32.mrb[23].mxu1 }
 0x20d   : > { %v5506_v4 = vadd.f32 %v5459_v13, %v5267_v37  ;;  %v4050_v21 = vpop.f32.mrb[23].mxu0  ;;  %v4155_v8 = vmul.f32 %v5504_v9, %v7779_v31 }
 0x20e   : > { %v5507_v50 = vadd.f32 %v4050_v21, %v2105_v57  ;;  %v4153_v40 = vmul.f32 %v5505_v0, %v7779_v31 }
 0x20f   : > { %v4156_v36 = vmul.f32 %v5506_v4, %v7779_v31 }
 0x210   : > { %v4154_v3 = vmul.f32 %v5507_v50, %v7779_v31 }
 0x211   : > { %v4775_v26 = vpack.c.bf16 %v4156_v36, %v4155_v8  ;;  %v5270_v43 = vpop.f32.mrb[24].mxu1 }
 0x212   : > { %v4770_v33 = vpack.c.bf16 %v4154_v3, %v4153_v40  ;;  %v5462_v18 = vpop.f32.mrb[24].mxu0  ;;  %v2118_v42 = vpop.f32.mrb[25].mxu1 }
 0x213   : > { %4815 = vst [vmem:[%s7788_s30 + $0x58] sm:$0xff] %v4775_v26   ;;  %v5508_v52 = vadd.f32 %v5462_v18, %v5270_v43  ;;  %v4063_v29 = vpop.f32.mrb[25].mxu0  ;;  %v5271_v1 = vpop.f32.mrb[26].mxu1 }
 0x214   : > { %4814 = vst [vmem:[%s7788_s30 + $0x50] sm:$0xff] %v4770_v33   ;;  %v5509_v19 = vadd.f32 %v4063_v29, %v2118_v42  ;;  %v5463_v11 = vpop.f32.mrb[26].mxu0  ;;  %v2121_v41 = vpop.f32.mrb[27].mxu1 }
 0x215   : > { %v5510_v55 = vadd.f32 %v5463_v11, %v5271_v1  ;;  %v4066_v51 = vpop.f32.mrb[27].mxu0  ;;  %v4159_v6 = vmul.f32 %v5508_v52, %v7779_v31 }
 0x216   : > { %v5511_v58 = vadd.f32 %v4066_v51, %v2121_v41  ;;  %v4157_v46 = vmul.f32 %v5509_v19, %v7779_v31 }
 0x217   : > { %v4160_v15 = vmul.f32 %v5510_v55, %v7779_v31 }
 0x218   : > { %v4158_v27 = vmul.f32 %v5511_v58, %v7779_v31 }
 0x219   : > { %v4785_v54 = vpack.c.bf16 %v4160_v15, %v4159_v6  ;;  %v5274_v14 = vpop.f32.mrb[28].mxu1 }
 0x21a   : > { %v4780_v47 = vpack.c.bf16 %v4158_v27, %v4157_v46  ;;  %v5466_v24 = vpop.f32.mrb[28].mxu0  ;;  %v2134_v22 = vpop.f32.mrb[29].mxu1 }
 0x21b   : > { %4817 = vst [vmem:[%s7788_s30 + $0x68] sm:$0xff] %v4785_v54   ;;  %v5512_v28 = vadd.f32 %v5466_v24, %v5274_v14  ;;  %v4079_v20 = vpop.f32.mrb[29].mxu0  ;;  %v5275_v62 = vpop.f32.mrb[30].mxu1 }
 0x21c   : > { %4816 = vst [vmem:[%s7788_s30 + $0x60] sm:$0xff] %v4780_v47   ;;  %v5513_v35 = vadd.f32 %v4079_v20, %v2134_v22  ;;  %v5467_v56 = vpop.f32.mrb[30].mxu0  ;;  %v2137_v48 = vpop.f32.mrb[31].mxu1 }
 0x21d   : > { %v5514_v49 = vadd.f32 %v5467_v56, %v5275_v62  ;;  %v4082_v12 = vpop.f32.mrb[31].mxu0  ;;  %v4163_v30 = vmul.f32 %v5512_v28, %v7779_v31 }
 0x21e   : > { %v5515_v7 = vadd.f32 %v4082_v12, %v2137_v48  ;;  %v4161_v34 = vmul.f32 %v5513_v35, %v7779_v31 }
 0x21f   : > { %v4164_v5 = vmul.f32 %v5514_v49, %v7779_v31 }
 0x220   : > { %v4162_v59 = vmul.f32 %v5515_v7, %v7779_v31 }
 0x221   : > { %v4795_v2 = vpack.c.bf16 %v4164_v5, %v4163_v30 }
 0x222   : > { %v4790_v45 = vpack.c.bf16 %v4162_v59, %v4161_v34 }
 0x223   : > { %4819 = vst [vmem:[%s7788_s30 + $0x78] sm:$0xff] %v4795_v2  }
 0x224   : > { %4818 = vst [vmem:[%s7788_s30 + $0x70] sm:$0xff] %v4790_v45  }
 0x225 PF: > { %s14_s15 = sadd.s32 1, %s5836_s15  }
 0x226   : > { %p11_p4 = scmp.ge.s32.totalorder %s14_s15, 4  }
 0x228   :  { %13 = sbr.rel (!%p11_p4) target bundleno = 1 (0x1), region = 80 }

</bundles_post_ra>
